<compile_context>
chip_gen: v7x
topology: tpu7x:2x2x1
jax: 0.10.0
libtpu: 0.0.40
codegen_flags: <defaults>
</compile_context>

<pallas_src>
import functools

import jax
import jax.numpy as jnp
from jax.experimental import pallas as pl
from jax.experimental.pallas import tpu as pltpu


def _dncnn_fused_kernel(x_ref, m_ref, w0_ref, wm_ref, b_ref, o_ref,
                        act0_ref, act1_ref, patch_ref, acc_ref,
                        *, H, W, C, CIN, L, OUT):
    """All L conv layers for one image, activations resident in VMEM.

    Layouts (channel-major == NCHW-native), BW = (H+2)*W + 2:
      x_ref   : (CIN, BW)        bf16  [front pad, zero row, rows 0..H-1, zero row,
                                        back pad], each row W wide
      m_ref   : (2, H*W)         bf16  column-edge masks: row0 = (x != 0),
                                        row1 = (x != W-1)
      w0_ref  : (3, C, 3*CIN)    bf16  layer-0 weights,     [dy, co, dx*CIN + ci]
      wm_ref  : (L-1, 3, C, 3*C) bf16  layer 1..L-1 weights, [l-1, dy, co, dx*C+ci]
                                        (BN scale already folded in)
      b_ref   : (L, C, 1)        f32   per-layer effective bias
      o_ref   : (OUT, H*W)       f32   last-layer output (first 3 rows are real)
      act0/1  : (C, BW)          bf16  ping-pong activations, same layout as x
      patch   : (3*C, H*W)       bf16  per-dy im2col slab (K on sublanes)
      acc     : (C, H*W)         f32   per-layer accumulator
    """
    HW = H * W
    BW = (H + 2) * W + 2
    bf16 = jnp.bfloat16

    m_left = m_ref[0:1, :]        # dx = -1 tap is zero padding at x == 0
    m_right = m_ref[1:2, :]       # dx = +1 tap is zero padding at x == W-1

    # Zero only the halo (front pad + top row / bottom row + back pad).  The
    # interior [W+1 : W+1+HW) is fully overwritten by every layer and nothing
    # ever writes the halo, so this is the only zeroing needed.  It runs every
    # grid step, which keeps it correct under megacore "parallel" scheduling.
    zhalo = jnp.zeros((C, W + 1), bf16)
    act0_ref[:, 0:W + 1] = zhalo
    act0_ref[:, W + 1 + HW:BW] = zhalo
    act1_ref[:, 0:W + 1] = zhalo
    act1_ref[:, W + 1 + HW:BW] = zhalo

    def conv3x3(src_ref, w_l, bias, relu):
        """One 3x3 'SAME' conv layer: src (cin, BW) bf16 -> (C, HW) f32.

        Transposed orientation: out^T (C, HW) = w_l[dy] (C, 3*cin) @ patch
        (3*cin, HW); N (lanes) = HW, K = 3*cin, three matmuls per layer.
        """
        cin = src_ref.shape[0]
        kdim = 3 * cin
        for dy in range(3):
            base = dy * W
            left = src_ref[:, base:base + HW]             # taps at (y+dy-1, x-1)
            center = src_ref[:, base + 1:base + 1 + HW]   # taps at (y+dy-1, x  )
            right = src_ref[:, base + 2:base + 2 + HW]    # taps at (y+dy-1, x+1)
            patch_ref[0:cin, :] = (left * m_left).astype(bf16)
            patch_ref[cin:2 * cin, :] = center
            patch_ref[2 * cin:kdim, :] = (right * m_right).astype(bf16)
            part = jnp.dot(w_l[dy], patch_ref[0:kdim, :],
                           preferred_element_type=jnp.float32)       # (C, HW)
            if dy == 0:
                acc_ref[...] = part
            else:
                acc_ref[...] = acc_ref[...] + part
        y = acc_ref[...] + bias                                       # (C,1) bcast
        if relu:
            y = jnp.maximum(y, 0.0)
        return y

    def mid_layer(li, src_ref, dst_ref):
        # li in [1, L-1): Conv + folded-BN + ReLU; weights live at wm_ref[li-1].
        y = conv3x3(src_ref, wm_ref[li - 1], b_ref[li], relu=True)
        dst_ref[:, W + 1:W + 1 + HW] = y.astype(bf16)

    # Layer 0: Conv(3 -> C) + ReLU, from the (channel-padded) input image.
    y0 = conv3x3(x_ref, w0_ref[...], b_ref[0], relu=True)
    act0_ref[:, W + 1:W + 1 + HW] = y0.astype(bf16)

    # Layers 1 .. L-2: ping-pong act0 <-> act1, two layers per loop step so the
    # src/dst refs stay static while the layer index is dynamic.
    n_mid = L - 2
    n_pairs = n_mid // 2

    @pl.loop(0, n_pairs)
    def _(i):
        la = 2 * i + 1
        mid_layer(la, act0_ref, act1_ref)
        mid_layer(la + 1, act1_ref, act0_ref)

    if n_mid % 2 == 1:
        mid_layer(L - 2, act0_ref, act1_ref)
        last_src = act1_ref
    else:
        last_src = act0_ref

    # Last layer: Conv(C -> 3, zero-padded to OUT), no ReLU, lane-dense output.
    y = conv3x3(last_src, wm_ref[L - 2], b_ref[L - 1], relu=False)
    o_ref[...] = y[0:OUT, :]


def _dncnn_pallas(xp, masks, w0, wm, b, H, W, OUT):
    N, CIN, BW = xp.shape
    Lm1 = wm.shape[0]
    C = wm.shape[2]
    L = Lm1 + 1
    HW = H * W

    kernel = functools.partial(_dncnn_fused_kernel,
                               H=H, W=W, C=C, CIN=CIN, L=L, OUT=OUT)

    # VMEM budget derived from the actual buffers (with headroom), min 32 MiB,
    # capped below v7x's 64 MiB physical VMEM.
    scratch_bytes = (2 * C * BW * 2          # activation ping-pong (bf16)
                     + 3 * C * HW * 2        # per-dy im2col slab (bf16)
                     + C * HW * 4)           # f32 accumulator
    operand_bytes = 2 * (CIN * BW * 2 + 2 * HW * 2 + w0.size * 2 + wm.size * 2
                         + L * C * 128 * 4 + OUT * HW * 4)
    vmem_limit = int(min(56 * 1024 * 1024,
                         max(32 * 1024 * 1024,
                             2 * (scratch_bytes + operand_bytes))))

    return pl.pallas_call(
        kernel,
        out_shape=jax.ShapeDtypeStruct((N, OUT, HW), jnp.float32),
        grid_spec=pltpu.PrefetchScalarGridSpec(
            num_scalar_prefetch=0,
            grid=(N,),
            in_specs=[
                pl.BlockSpec((pl.Squeezed(), CIN, BW), lambda n: (n, 0, 0)),
                pl.BlockSpec((2, HW), lambda n: (0, 0)),
                pl.BlockSpec((3, C, 3 * CIN), lambda n: (0, 0, 0)),
                pl.BlockSpec((Lm1, 3, C, 3 * C), lambda n: (0, 0, 0, 0)),
                pl.BlockSpec((L, C, 1), lambda n: (0, 0, 0)),
            ],
            out_specs=pl.BlockSpec((pl.Squeezed(), OUT, HW), lambda n: (n, 0, 0)),
            scratch_shapes=[
                pltpu.VMEM((C, BW), jnp.bfloat16),       # activation ping
                pltpu.VMEM((C, BW), jnp.bfloat16),       # activation pong
                pltpu.VMEM((3 * C, HW), jnp.bfloat16),   # per-dy im2col slab
                pltpu.VMEM((C, HW), jnp.float32),        # f32 accumulator
            ],
        ),
        compiler_params=pltpu.CompilerParams(
            dimension_semantics=("parallel",),
            vmem_limit_bytes=vmem_limit,
        ),
    )(xp, masks, w0, wm, b)


@jax.jit
def dncnn_forward_nchw(x_nchw, w0, wm, b):
    """DnCNN forward: NCHW float32 in -> NCHW float32 out (eval-mode BN)."""
    N, cin, H, W = x_nchw.shape
    CIN = w0.shape[2] // 3
    OUT = 8                                    # last layer channel-padded 3 -> 8
    # Channel pad 3 -> CIN, 1-row top/bottom zero halo, flatten rows, and add a
    # 1-element front/back pad so all nine 3x3 taps are plain static slices.
    xp = jnp.pad(x_nchw, ((0, 0), (0, CIN - cin), (1, 1), (0, 0)))
    xp = xp.reshape(N, CIN, (H + 2) * W)
    xp = jnp.pad(xp, ((0, 0), (0, 0), (1, 1))).astype(jnp.bfloat16)
    # Column-edge masks shared by every layer.
    colj = jnp.arange(H * W, dtype=jnp.int32) % W
    masks = jnp.stack([(colj != 0), (colj != W - 1)]).astype(jnp.bfloat16)
    out = _dncnn_pallas(xp, masks, w0, wm, b, H, W, OUT)   # (N, OUT, H*W) f32
    return out.reshape(N, OUT, H, W)[:, :cin]


def init_dncnn_params(key, num_layers=17, num_channels=64, eps=1e-5):
    """Deterministic init. Each layer -> (w_hwio, scale, bias, relu).
    BatchNorm2d is eval-mode, folded into the per-channel scale/bias."""
    keys = jax.random.split(key, num_layers * 6)
    it = iter(keys)

    def nrm(shape, s=0.05):
        return s * jax.random.normal(next(it), shape, jnp.float32)

    layers = []
    # first layer: Conv(3 -> C) + ReLU
    w = nrm((3, 3, 3, num_channels))
    b = nrm((num_channels,))
    layers.append((w, jnp.ones((num_channels,), jnp.float32), b, True))
    # middle layers: Conv(C -> C) + BatchNorm2d(eval, folded) + ReLU
    for _ in range(num_layers - 2):
        w = nrm((3, 3, num_channels, num_channels))
        b_conv = nrm((num_channels,))
        gamma = 1.0 + nrm((num_channels,), 0.1)
        beta = nrm((num_channels,), 0.1)
        rmean = nrm((num_channels,), 0.1)
        rvar = 1.0 + 0.1 * jax.random.uniform(next(it), (num_channels,),
                                              jnp.float32)
        seff = gamma / jnp.sqrt(rvar + eps)
        layers.append((w, seff, (b_conv - rmean) * seff + beta, True))
    # last layer: Conv(C -> 3), no activation
    w = nrm((3, 3, num_channels, 3))
    b = nrm((3,))
    layers.append((w, jnp.ones((3,), jnp.float32), b, False))
    return layers


def pack_dncnn_params(layers, num_channels=64, cin_pad=8):
    """Fold the BN scale into the weights and stack everything for the kernel.

    Returns:
      w0 : (3, C, 3*cin_pad)  bf16   layer-0 weights,      [dy, co, dx*cin_pad+ci]
      wm : (L-1, 3, C, 3*C)   bf16   layer 1..L-1 weights, [l-1, dy, co, dx*C+ci]
      b  : (L, C, 1)          f32    per-layer effective bias (BN folded)
    """
    C = num_channels

    def fold(w, s, cin_to):
        _, _, cin, cout = w.shape
        w_eff = w * s[None, None, None, :]
        wp = jnp.zeros((3, 3, cin_to, C), jnp.float32)
        wp = wp.at[:, :, :cin, :cout].set(w_eff)
        # (dy, dx, ci, co) -> (dy, co, dx, ci) -> (dy, co, dx*cin_to + ci)
        return jnp.transpose(wp, (0, 3, 1, 2)).reshape(3, C, 3 * cin_to)

    def pad_bias(bb):
        return jnp.zeros((C,), jnp.float32).at[:bb.shape[0]].set(bb)

    w_first, s_first, b_first, _ = layers[0]
    w0 = fold(w_first, s_first, cin_pad).astype(jnp.bfloat16)
    wms, bs = [], [pad_bias(b_first)]
    for (w, s, bb, _relu) in layers[1:]:
        wms.append(fold(w, s, C))
        bs.append(pad_bias(bb))
    wm = jnp.stack(wms).astype(jnp.bfloat16)
    b = jnp.stack(bs)[:, :, None].astype(jnp.float32)
    return w0, wm, b


def dncnn_reference_nchw(x_nchw, w0, wm, b):
    """Pure-JAX reference (lax conv) using the SAME packed bf16 weights and the
    same bf16 inter-layer activation quantization as the kernel."""
    N, cin, H, W = x_nchw.shape
    Lm1, _, C, _ = wm.shape
    L = Lm1 + 1
    CIN = w0.shape[2] // 3

    def unpack(wl, cin_l):
        # (3, C, 3*cin) -> (3, 3, cin, C) HWIO
        return jnp.transpose(wl.reshape(3, C, 3, cin_l), (0, 2, 3, 1))

    a = jnp.transpose(x_nchw, (0, 2, 3, 1))                          # NHWC
    a = jnp.pad(a, ((0, 0), (0, 0), (0, 0), (0, CIN - cin))).astype(jnp.bfloat16)
    y = None
    for li in range(L):
        w_hwio = unpack(w0, CIN) if li == 0 else unpack(wm[li - 1], C)
        y = jax.lax.conv_general_dilated(
            a, w_hwio, (1, 1), 'SAME',
            dimension_numbers=('NHWC', 'HWIO', 'NHWC'),
            preferred_element_type=jnp.float32)
        y = y + b[li, :, 0]
        if li < L - 1:
            a = jnp.maximum(y, 0.0).astype(jnp.bfloat16)
    return jnp.transpose(y[..., :cin], (0, 3, 1, 2))


if __name__ == "__main__":
    key = jax.random.PRNGKey(0)
    kx, kp = jax.random.split(key)
    # NCHW input, like the PyTorch module: (batch=2, channels=3, 16, 16)
    x = jax.random.normal(kx, (2, 3, 16, 16), jnp.float32)
    layers = init_dncnn_params(kp, num_layers=17, num_channels=64)
    w0, wm, b = pack_dncnn_params(layers, num_channels=64, cin_pad=8)

    out = dncnn_forward_nchw(x, w0, wm, b)
    out = jax.block_until_ready(out)
    assert out.shape == (2, 3, 16, 16), out.shape

    ref = dncnn_reference_nchw(x, w0, wm, b)
    max_err = float(jnp.max(jnp.abs(out - ref)))
    # Both sides use bf16 MXU operands and bf16 inter-layer activations; the
    # tolerance only has to cover f32 accumulation-order differences.
    assert jnp.allclose(out, ref, atol=2e-2, rtol=2e-2), max_err

    print("KERNEL_OK")
</pallas_src>

<mosaic_0001>
module attributes {stable_mosaic.version = 11 : i64} {
  func.func @_dncnn_fused_kernel(%arg0: i32, %arg1: memref<1x8x290xbf16, #tpu.memory_space<vmem>>, %arg2: memref<2x256xbf16, #tpu.memory_space<vmem>>, %arg3: memref<3x64x24xbf16, #tpu.memory_space<vmem>>, %arg4: memref<16x3x64x192xbf16, #tpu.memory_space<vmem>>, %arg5: memref<17x64x1xf32, #tpu.memory_space<vmem>>, %arg6: memref<1x8x256xf32, #tpu.memory_space<vmem>>, %arg7: memref<64x290xbf16, #tpu.memory_space<vmem>>, %arg8: memref<64x290xbf16, #tpu.memory_space<vmem>>, %arg9: memref<192x256xbf16, #tpu.memory_space<vmem>>, %arg10: memref<64x256xf32, #tpu.memory_space<vmem>>) attributes {dimension_semantics = [#tpu.dimension_semantics<parallel>], iteration_bounds = array<i64: 2>, scalar_prefetch = 0 : i64, scratch_operands = 4 : i64, tpu.core_type = #tpu.core_type<tc>, window_params = [{transform_indices = @transform_0, window_bounds = array<i64: 1, 8, 290>}, {pipeline_mode = #tpu.pipeline_mode<synchronous>, transform_indices = @transform_1, window_bounds = array<i64: 2, 256>}, {pipeline_mode = #tpu.pipeline_mode<synchronous>, transform_indices = @transform_2, window_bounds = array<i64: 3, 64, 24>}, {pipeline_mode = #tpu.pipeline_mode<synchronous>, transform_indices = @transform_3, window_bounds = array<i64: 16, 3, 64, 192>}, {pipeline_mode = #tpu.pipeline_mode<synchronous>, transform_indices = @transform_4, window_bounds = array<i64: 17, 64, 1>}, {transform_indices = @transform_5, window_bounds = array<i64: 1, 8, 256>}]} {
    %c0 = arith.constant 0 : index
    %c0_0 = arith.constant 0 : index
    %0 = vector.load %arg2[%c0, %c0_0] : memref<2x256xbf16, #tpu.memory_space<vmem>>, vector<1x256xbf16>
    %c1 = arith.constant 1 : index
    %c0_1 = arith.constant 0 : index
    %1 = vector.load %arg2[%c1, %c0_1] : memref<2x256xbf16, #tpu.memory_space<vmem>>, vector<1x256xbf16>
    %cst = arith.constant 0.000000e+00 : bf16
    %2 = vector.broadcast %cst : bf16 to vector<64x17xbf16>
    %c0_2 = arith.constant 0 : index
    %c0_3 = arith.constant 0 : index
    %3 = vector.load %arg7[%c0_2, %c0_3] : memref<64x290xbf16, #tpu.memory_space<vmem>>, vector<64x17xbf16>
    tpu.vector_store %arg7[%c0_2, %c0_3], %2 {strides = array<i32>} : memref<64x290xbf16, #tpu.memory_space<vmem>>, vector<64x17xbf16>,
    %c0_4 = arith.constant 0 : index
    %c273 = arith.constant 273 : index
    %4 = vector.load %arg7[%c0_4, %c273] : memref<64x290xbf16, #tpu.memory_space<vmem>>, vector<64x17xbf16>
    tpu.vector_store %arg7[%c0_4, %c273], %2 {strides = array<i32>} : memref<64x290xbf16, #tpu.memory_space<vmem>>, vector<64x17xbf16>,
    %c0_5 = arith.constant 0 : index
    %c0_6 = arith.constant 0 : index
    %5 = vector.load %arg8[%c0_5, %c0_6] : memref<64x290xbf16, #tpu.memory_space<vmem>>, vector<64x17xbf16>
    tpu.vector_store %arg8[%c0_5, %c0_6], %2 {strides = array<i32>} : memref<64x290xbf16, #tpu.memory_space<vmem>>, vector<64x17xbf16>,
    %c0_7 = arith.constant 0 : index
    %c273_8 = arith.constant 273 : index
    %6 = vector.load %arg8[%c0_7, %c273_8] : memref<64x290xbf16, #tpu.memory_space<vmem>>, vector<64x17xbf16>
    tpu.vector_store %arg8[%c0_7, %c273_8], %2 {strides = array<i32>} : memref<64x290xbf16, #tpu.memory_space<vmem>>, vector<64x17xbf16>,
    %c0_9 = arith.constant 0 : index
    %c0_10 = arith.constant 0 : index
    %c0_11 = arith.constant 0 : index
    %7 = vector.load %arg3[%c0_9, %c0_10, %c0_11] : memref<3x64x24xbf16, #tpu.memory_space<vmem>>, vector<3x64x24xbf16>
    %c0_12 = arith.constant 0 : index
    %c0_13 = arith.constant 0 : index
    %c0_14 = arith.constant 0 : index
    %8 = vector.load %arg5[%c0_12, %c0_13, %c0_14] : memref<17x64x1xf32, #tpu.memory_space<vmem>>, vector<1x64x1xf32>
    %9 = vector.shape_cast %8 : vector<1x64x1xf32> to vector<64x1xf32>
    %c0_15 = arith.constant 0 : index
    %c0_16 = arith.constant 0 : index
    %c0_17 = arith.constant 0 : index
    %10 = vector.load %arg1[%c0_15, %c0_16, %c0_17] : memref<1x8x290xbf16, #tpu.memory_space<vmem>>, vector<1x8x256xbf16>
    %11 = vector.shape_cast %10 : vector<1x8x256xbf16> to vector<8x256xbf16>
    %c0_18 = arith.constant 0 : index
    %c0_19 = arith.constant 0 : index
    %c1_20 = arith.constant 1 : index
    %12 = vector.load %arg1[%c0_18, %c0_19, %c1_20] : memref<1x8x290xbf16, #tpu.memory_space<vmem>>, vector<1x8x256xbf16>
    %13 = vector.shape_cast %12 : vector<1x8x256xbf16> to vector<8x256xbf16>
    %c0_21 = arith.constant 0 : index
    %c0_22 = arith.constant 0 : index
    %c2 = arith.constant 2 : index
    %14 = vector.load %arg1[%c0_21, %c0_22, %c2] : memref<1x8x290xbf16, #tpu.memory_space<vmem>>, vector<1x8x256xbf16>
    %15 = vector.shape_cast %14 : vector<1x8x256xbf16> to vector<8x256xbf16>
    %16 = vector.broadcast %0 : vector<1x256xbf16> to vector<8x256xbf16>
    %17 = arith.mulf %11, %16 : vector<8x256xbf16>
    %c0_23 = arith.constant 0 : index
    %c0_24 = arith.constant 0 : index
    %18 = vector.load %arg9[%c0_23, %c0_24] : memref<192x256xbf16, #tpu.memory_space<vmem>>, vector<8x256xbf16>
    tpu.vector_store %arg9[%c0_23, %c0_24], %17 {strides = array<i32>} : memref<192x256xbf16, #tpu.memory_space<vmem>>, vector<8x256xbf16>,
    %c8 = arith.constant 8 : index
    %c0_25 = arith.constant 0 : index
    %19 = vector.load %arg9[%c8, %c0_25] : memref<192x256xbf16, #tpu.memory_space<vmem>>, vector<8x256xbf16>
    tpu.vector_store %arg9[%c8, %c0_25], %13 {strides = array<i32>} : memref<192x256xbf16, #tpu.memory_space<vmem>>, vector<8x256xbf16>,
    %20 = vector.broadcast %1 : vector<1x256xbf16> to vector<8x256xbf16>
    %21 = arith.mulf %15, %20 : vector<8x256xbf16>
    %c16 = arith.constant 16 : index
    %c0_26 = arith.constant 0 : index
    %22 = vector.load %arg9[%c16, %c0_26] : memref<192x256xbf16, #tpu.memory_space<vmem>>, vector<8x256xbf16>
    tpu.vector_store %arg9[%c16, %c0_26], %21 {strides = array<i32>} : memref<192x256xbf16, #tpu.memory_space<vmem>>, vector<8x256xbf16>,
    %23 = vector.extract_strided_slice %7 {offsets = [0, 0, 0], sizes = [1, 64, 24], strides = [1, 1, 1]} : vector<3x64x24xbf16> to vector<1x64x24xbf16>
    %24 = vector.shape_cast %23 : vector<1x64x24xbf16> to vector<64x24xbf16>
    %c0_27 = arith.constant 0 : index
    %c0_28 = arith.constant 0 : index
    %25 = vector.load %arg9[%c0_27, %c0_28] : memref<192x256xbf16, #tpu.memory_space<vmem>>, vector<24x256xbf16>
    %cst_29 = arith.constant dense<0.000000e+00> : vector<64x256xf32>
    %26 = tpu.matmul %24, %25, %cst_29 {dimension_numbers = #tpu.dot_dimension_numbers<[1], [0], [0], [1], [0, 0, 1, 1], [], []>} : vector<64x24xbf16>, vector<24x256xbf16>, vector<64x256xf32> -> vector<64x256xf32>
    %c0_30 = arith.constant 0 : index
    %c0_31 = arith.constant 0 : index
    %27 = vector.load %arg10[%c0_30, %c0_31] : memref<64x256xf32, #tpu.memory_space<vmem>>, vector<64x256xf32>
    tpu.vector_store %arg10[%c0_30, %c0_31], %26 {strides = array<i32>} : memref<64x256xf32, #tpu.memory_space<vmem>>, vector<64x256xf32>,
    %c0_32 = arith.constant 0 : index
    %c0_33 = arith.constant 0 : index
    %c16_34 = arith.constant 16 : index
    %28 = vector.load %arg1[%c0_32, %c0_33, %c16_34] : memref<1x8x290xbf16, #tpu.memory_space<vmem>>, vector<1x8x256xbf16>
    %29 = vector.shape_cast %28 : vector<1x8x256xbf16> to vector<8x256xbf16>
    %c0_35 = arith.constant 0 : index
    %c0_36 = arith.constant 0 : index
    %c17 = arith.constant 17 : index
    %30 = vector.load %arg1[%c0_35, %c0_36, %c17] : memref<1x8x290xbf16, #tpu.memory_space<vmem>>, vector<1x8x256xbf16>
    %31 = vector.shape_cast %30 : vector<1x8x256xbf16> to vector<8x256xbf16>
    %c0_37 = arith.constant 0 : index
    %c0_38 = arith.constant 0 : index
    %c18 = arith.constant 18 : index
    %32 = vector.load %arg1[%c0_37, %c0_38, %c18] : memref<1x8x290xbf16, #tpu.memory_space<vmem>>, vector<1x8x256xbf16>
    %33 = vector.shape_cast %32 : vector<1x8x256xbf16> to vector<8x256xbf16>
    %34 = vector.broadcast %0 : vector<1x256xbf16> to vector<8x256xbf16>
    %35 = arith.mulf %29, %34 : vector<8x256xbf16>
    %c0_39 = arith.constant 0 : index
    %c0_40 = arith.constant 0 : index
    %36 = vector.load %arg9[%c0_39, %c0_40] : memref<192x256xbf16, #tpu.memory_space<vmem>>, vector<8x256xbf16>
    tpu.vector_store %arg9[%c0_39, %c0_40], %35 {strides = array<i32>} : memref<192x256xbf16, #tpu.memory_space<vmem>>, vector<8x256xbf16>,
    %c8_41 = arith.constant 8 : index
    %c0_42 = arith.constant 0 : index
    %37 = vector.load %arg9[%c8_41, %c0_42] : memref<192x256xbf16, #tpu.memory_space<vmem>>, vector<8x256xbf16>
    tpu.vector_store %arg9[%c8_41, %c0_42], %31 {strides = array<i32>} : memref<192x256xbf16, #tpu.memory_space<vmem>>, vector<8x256xbf16>,
    %38 = vector.broadcast %1 : vector<1x256xbf16> to vector<8x256xbf16>
    %39 = arith.mulf %33, %38 : vector<8x256xbf16>
    %c16_43 = arith.constant 16 : index
    %c0_44 = arith.constant 0 : index
    %40 = vector.load %arg9[%c16_43, %c0_44] : memref<192x256xbf16, #tpu.memory_space<vmem>>, vector<8x256xbf16>
    tpu.vector_store %arg9[%c16_43, %c0_44], %39 {strides = array<i32>} : memref<192x256xbf16, #tpu.memory_space<vmem>>, vector<8x256xbf16>,
    %41 = vector.extract_strided_slice %7 {offsets = [1, 0, 0], sizes = [1, 64, 24], strides = [1, 1, 1]} : vector<3x64x24xbf16> to vector<1x64x24xbf16>
    %42 = vector.shape_cast %41 : vector<1x64x24xbf16> to vector<64x24xbf16>
    %c0_45 = arith.constant 0 : index
    %c0_46 = arith.constant 0 : index
    %43 = vector.load %arg9[%c0_45, %c0_46] : memref<192x256xbf16, #tpu.memory_space<vmem>>, vector<24x256xbf16>
    %cst_47 = arith.constant dense<0.000000e+00> : vector<64x256xf32>
    %44 = tpu.matmul %42, %43, %cst_47 {dimension_numbers = #tpu.dot_dimension_numbers<[1], [0], [0], [1], [0, 0, 1, 1], [], []>} : vector<64x24xbf16>, vector<24x256xbf16>, vector<64x256xf32> -> vector<64x256xf32>
    %c0_48 = arith.constant 0 : index
    %c0_49 = arith.constant 0 : index
    %45 = vector.load %arg10[%c0_48, %c0_49] : memref<64x256xf32, #tpu.memory_space<vmem>>, vector<64x256xf32>
    %46 = arith.addf %45, %44 : vector<64x256xf32>
    %c0_50 = arith.constant 0 : index
    %c0_51 = arith.constant 0 : index
    %47 = vector.load %arg10[%c0_50, %c0_51] : memref<64x256xf32, #tpu.memory_space<vmem>>, vector<64x256xf32>
    tpu.vector_store %arg10[%c0_50, %c0_51], %46 {strides = array<i32>} : memref<64x256xf32, #tpu.memory_space<vmem>>, vector<64x256xf32>,
    %c0_52 = arith.constant 0 : index
    %c0_53 = arith.constant 0 : index
    %c32 = arith.constant 32 : index
    %48 = vector.load %arg1[%c0_52, %c0_53, %c32] : memref<1x8x290xbf16, #tpu.memory_space<vmem>>, vector<1x8x256xbf16>
    %49 = vector.shape_cast %48 : vector<1x8x256xbf16> to vector<8x256xbf16>
    %c0_54 = arith.constant 0 : index
    %c0_55 = arith.constant 0 : index
    %c33 = arith.constant 33 : index
    %50 = vector.load %arg1[%c0_54, %c0_55, %c33] : memref<1x8x290xbf16, #tpu.memory_space<vmem>>, vector<1x8x256xbf16>
    %51 = vector.shape_cast %50 : vector<1x8x256xbf16> to vector<8x256xbf16>
    %c0_56 = arith.constant 0 : index
    %c0_57 = arith.constant 0 : index
    %c34 = arith.constant 34 : index
    %52 = vector.load %arg1[%c0_56, %c0_57, %c34] : memref<1x8x290xbf16, #tpu.memory_space<vmem>>, vector<1x8x256xbf16>
    %53 = vector.shape_cast %52 : vector<1x8x256xbf16> to vector<8x256xbf16>
    %54 = vector.broadcast %0 : vector<1x256xbf16> to vector<8x256xbf16>
    %55 = arith.mulf %49, %54 : vector<8x256xbf16>
    %c0_58 = arith.constant 0 : index
    %c0_59 = arith.constant 0 : index
    %56 = vector.load %arg9[%c0_58, %c0_59] : memref<192x256xbf16, #tpu.memory_space<vmem>>, vector<8x256xbf16>
    tpu.vector_store %arg9[%c0_58, %c0_59], %55 {strides = array<i32>} : memref<192x256xbf16, #tpu.memory_space<vmem>>, vector<8x256xbf16>,
    %c8_60 = arith.constant 8 : index
    %c0_61 = arith.constant 0 : index
    %57 = vector.load %arg9[%c8_60, %c0_61] : memref<192x256xbf16, #tpu.memory_space<vmem>>, vector<8x256xbf16>
    tpu.vector_store %arg9[%c8_60, %c0_61], %51 {strides = array<i32>} : memref<192x256xbf16, #tpu.memory_space<vmem>>, vector<8x256xbf16>,
    %58 = vector.broadcast %1 : vector<1x256xbf16> to vector<8x256xbf16>
    %59 = arith.mulf %53, %58 : vector<8x256xbf16>
    %c16_62 = arith.constant 16 : index
    %c0_63 = arith.constant 0 : index
    %60 = vector.load %arg9[%c16_62, %c0_63] : memref<192x256xbf16, #tpu.memory_space<vmem>>, vector<8x256xbf16>
    tpu.vector_store %arg9[%c16_62, %c0_63], %59 {strides = array<i32>} : memref<192x256xbf16, #tpu.memory_space<vmem>>, vector<8x256xbf16>,
    %61 = vector.extract_strided_slice %7 {offsets = [2, 0, 0], sizes = [1, 64, 24], strides = [1, 1, 1]} : vector<3x64x24xbf16> to vector<1x64x24xbf16>
    %62 = vector.shape_cast %61 : vector<1x64x24xbf16> to vector<64x24xbf16>
    %c0_64 = arith.constant 0 : index
    %c0_65 = arith.constant 0 : index
    %63 = vector.load %arg9[%c0_64, %c0_65] : memref<192x256xbf16, #tpu.memory_space<vmem>>, vector<24x256xbf16>
    %cst_66 = arith.constant dense<0.000000e+00> : vector<64x256xf32>
    %64 = tpu.matmul %62, %63, %cst_66 {dimension_numbers = #tpu.dot_dimension_numbers<[1], [0], [0], [1], [0, 0, 1, 1], [], []>} : vector<64x24xbf16>, vector<24x256xbf16>, vector<64x256xf32> -> vector<64x256xf32>
    %c0_67 = arith.constant 0 : index
    %c0_68 = arith.constant 0 : index
    %65 = vector.load %arg10[%c0_67, %c0_68] : memref<64x256xf32, #tpu.memory_space<vmem>>, vector<64x256xf32>
    %66 = arith.addf %65, %64 : vector<64x256xf32>
    %c0_69 = arith.constant 0 : index
    %c0_70 = arith.constant 0 : index
    %67 = vector.load %arg10[%c0_69, %c0_70] : memref<64x256xf32, #tpu.memory_space<vmem>>, vector<64x256xf32>
    tpu.vector_store %arg10[%c0_69, %c0_70], %66 {strides = array<i32>} : memref<64x256xf32, #tpu.memory_space<vmem>>, vector<64x256xf32>,
    %c0_71 = arith.constant 0 : index
    %c0_72 = arith.constant 0 : index
    %68 = vector.load %arg10[%c0_71, %c0_72] : memref<64x256xf32, #tpu.memory_space<vmem>>, vector<64x256xf32>
    %69 = vector.broadcast %9 : vector<64x1xf32> to vector<64x256xf32>
    %70 = arith.addf %68, %69 : vector<64x256xf32>
    %cst_73 = arith.constant 0.000000e+00 : f32
    %71 = vector.broadcast %cst_73 : f32 to vector<64x256xf32>
    %72 = arith.maximumf %70, %71 : vector<64x256xf32>
    %73 = arith.truncf %72 : vector<64x256xf32> to vector<64x256xbf16>
    %c0_74 = arith.constant 0 : index
    %c17_75 = arith.constant 17 : index
    %74 = vector.load %arg7[%c0_74, %c17_75] : memref<64x290xbf16, #tpu.memory_space<vmem>>, vector<64x256xbf16>
    tpu.vector_store %arg7[%c0_74, %c17_75], %73 {strides = array<i32>} : memref<64x290xbf16, #tpu.memory_space<vmem>>, vector<64x256xbf16>,
    %c0_i32 = arith.constant 0 : i32
    %c7_i32 = arith.constant 7 : i32
    %75 = arith.addi %c0_i32, %c7_i32 : i32
    %c1_i32 = arith.constant 1 : i32
    scf.for %arg11 = %c0_i32 to %75 step %c1_i32  : i32 {
      %c1_i32_207 = arith.constant 1 : i32
      %196 = arith.muli %arg11, %c1_i32_207 : i32
      %c0_i32_208 = arith.constant 0 : i32
      %197 = arith.addi %c0_i32_208, %196 : i32
      %c2_i32 = arith.constant 2 : i32
      %198 = arith.muli %c2_i32, %197 : i32
      %c1_i32_209 = arith.constant 1 : i32
      %199 = arith.addi %198, %c1_i32_209 : i32
      %c1_i32_210 = arith.constant 1 : i32
      %200 = arith.subi %199, %c1_i32_210 : i32
      %201 = arith.index_cast %200 : i32 to index
      %c0_211 = arith.constant 0 : index
      %c0_212 = arith.constant 0 : index
      %c0_213 = arith.constant 0 : index
      %202 = vector.load %arg4[%201, %c0_211, %c0_212, %c0_213] : memref<16x3x64x192xbf16, #tpu.memory_space<vmem>>, vector<1x3x64x192xbf16>
      %203 = vector.shape_cast %202 : vector<1x3x64x192xbf16> to vector<3x64x192xbf16>
      %204 = arith.index_cast %199 : i32 to index
      %c0_214 = arith.constant 0 : index
      %c0_215 = arith.constant 0 : index
      %205 = vector.load %arg5[%204, %c0_214, %c0_215] : memref<17x64x1xf32, #tpu.memory_space<vmem>>, vector<1x64x1xf32>
      %206 = vector.shape_cast %205 : vector<1x64x1xf32> to vector<64x1xf32>
      %c0_216 = arith.constant 0 : index
      %c0_217 = arith.constant 0 : index
      %207 = vector.load %arg7[%c0_216, %c0_217] : memref<64x290xbf16, #tpu.memory_space<vmem>>, vector<64x256xbf16>
      %c0_218 = arith.constant 0 : index
      %c1_219 = arith.constant 1 : index
      %208 = vector.load %arg7[%c0_218, %c1_219] : memref<64x290xbf16, #tpu.memory_space<vmem>>, vector<64x256xbf16>
      %c0_220 = arith.constant 0 : index
      %c2_221 = arith.constant 2 : index
      %209 = vector.load %arg7[%c0_220, %c2_221] : memref<64x290xbf16, #tpu.memory_space<vmem>>, vector<64x256xbf16>
      %210 = vector.broadcast %0 : vector<1x256xbf16> to vector<64x256xbf16>
      %211 = arith.mulf %207, %210 : vector<64x256xbf16>
      %c0_222 = arith.constant 0 : index
      %c0_223 = arith.constant 0 : index
      %212 = vector.load %arg9[%c0_222, %c0_223] : memref<192x256xbf16, #tpu.memory_space<vmem>>, vector<64x256xbf16>
      tpu.vector_store %arg9[%c0_222, %c0_223], %211 {strides = array<i32>} : memref<192x256xbf16, #tpu.memory_space<vmem>>, vector<64x256xbf16>,
      %c64_224 = arith.constant 64 : index
      %c0_225 = arith.constant 0 : index
      %213 = vector.load %arg9[%c64_224, %c0_225] : memref<192x256xbf16, #tpu.memory_space<vmem>>, vector<64x256xbf16>
      tpu.vector_store %arg9[%c64_224, %c0_225], %208 {strides = array<i32>} : memref<192x256xbf16, #tpu.memory_space<vmem>>, vector<64x256xbf16>,
      %214 = vector.broadcast %1 : vector<1x256xbf16> to vector<64x256xbf16>
      %215 = arith.mulf %209, %214 : vector<64x256xbf16>
      %c128_226 = arith.constant 128 : index
      %c0_227 = arith.constant 0 : index
      %216 = vector.load %arg9[%c128_226, %c0_227] : memref<192x256xbf16, #tpu.memory_space<vmem>>, vector<64x256xbf16>
      tpu.vector_store %arg9[%c128_226, %c0_227], %215 {strides = array<i32>} : memref<192x256xbf16, #tpu.memory_space<vmem>>, vector<64x256xbf16>,
      %217 = vector.extract_strided_slice %203 {offsets = [0, 0, 0], sizes = [1, 64, 192], strides = [1, 1, 1]} : vector<3x64x192xbf16> to vector<1x64x192xbf16>
      %218 = vector.shape_cast %217 : vector<1x64x192xbf16> to vector<64x192xbf16>
      %c0_228 = arith.constant 0 : index
      %c0_229 = arith.constant 0 : index
      %219 = vector.load %arg9[%c0_228, %c0_229] : memref<192x256xbf16, #tpu.memory_space<vmem>>, vector<192x256xbf16>
      %cst_230 = arith.constant dense<0.000000e+00> : vector<64x256xf32>
      %220 = tpu.matmul %218, %219, %cst_230 {dimension_numbers = #tpu.dot_dimension_numbers<[1], [0], [0], [1], [0, 0, 1, 1], [], []>} : vector<64x192xbf16>, vector<192x256xbf16>, vector<64x256xf32> -> vector<64x256xf32>
      %c0_231 = arith.constant 0 : index
      %c0_232 = arith.constant 0 : index
      %221 = vector.load %arg10[%c0_231, %c0_232] : memref<64x256xf32, #tpu.memory_space<vmem>>, vector<64x256xf32>
      tpu.vector_store %arg10[%c0_231, %c0_232], %220 {strides = array<i32>} : memref<64x256xf32, #tpu.memory_space<vmem>>, vector<64x256xf32>,
      %c0_233 = arith.constant 0 : index
      %c16_234 = arith.constant 16 : index
      %222 = vector.load %arg7[%c0_233, %c16_234] : memref<64x290xbf16, #tpu.memory_space<vmem>>, vector<64x256xbf16>
      %c0_235 = arith.constant 0 : index
      %c17_236 = arith.constant 17 : index
      %223 = vector.load %arg7[%c0_235, %c17_236] : memref<64x290xbf16, #tpu.memory_space<vmem>>, vector<64x256xbf16>
      %c0_237 = arith.constant 0 : index
      %c18_238 = arith.constant 18 : index
      %224 = vector.load %arg7[%c0_237, %c18_238] : memref<64x290xbf16, #tpu.memory_space<vmem>>, vector<64x256xbf16>
      %225 = vector.broadcast %0 : vector<1x256xbf16> to vector<64x256xbf16>
      %226 = arith.mulf %222, %225 : vector<64x256xbf16>
      %c0_239 = arith.constant 0 : index
      %c0_240 = arith.constant 0 : index
      %227 = vector.load %arg9[%c0_239, %c0_240] : memref<192x256xbf16, #tpu.memory_space<vmem>>, vector<64x256xbf16>
      tpu.vector_store %arg9[%c0_239, %c0_240], %226 {strides = array<i32>} : memref<192x256xbf16, #tpu.memory_space<vmem>>, vector<64x256xbf16>,
      %c64_241 = arith.constant 64 : index
      %c0_242 = arith.constant 0 : index
      %228 = vector.load %arg9[%c64_241, %c0_242] : memref<192x256xbf16, #tpu.memory_space<vmem>>, vector<64x256xbf16>
      tpu.vector_store %arg9[%c64_241, %c0_242], %223 {strides = array<i32>} : memref<192x256xbf16, #tpu.memory_space<vmem>>, vector<64x256xbf16>,
      %229 = vector.broadcast %1 : vector<1x256xbf16> to vector<64x256xbf16>
      %230 = arith.mulf %224, %229 : vector<64x256xbf16>
      %c128_243 = arith.constant 128 : index
      %c0_244 = arith.constant 0 : index
      %231 = vector.load %arg9[%c128_243, %c0_244] : memref<192x256xbf16, #tpu.memory_space<vmem>>, vector<64x256xbf16>
      tpu.vector_store %arg9[%c128_243, %c0_244], %230 {strides = array<i32>} : memref<192x256xbf16, #tpu.memory_space<vmem>>, vector<64x256xbf16>,
      %232 = vector.extract_strided_slice %203 {offsets = [1, 0, 0], sizes = [1, 64, 192], strides = [1, 1, 1]} : vector<3x64x192xbf16> to vector<1x64x192xbf16>
      %233 = vector.shape_cast %232 : vector<1x64x192xbf16> to vector<64x192xbf16>
      %c0_245 = arith.constant 0 : index
      %c0_246 = arith.constant 0 : index
      %234 = vector.load %arg9[%c0_245, %c0_246] : memref<192x256xbf16, #tpu.memory_space<vmem>>, vector<192x256xbf16>
      %cst_247 = arith.constant dense<0.000000e+00> : vector<64x256xf32>
      %235 = tpu.matmul %233, %234, %cst_247 {dimension_numbers = #tpu.dot_dimension_numbers<[1], [0], [0], [1], [0, 0, 1, 1], [], []>} : vector<64x192xbf16>, vector<192x256xbf16>, vector<64x256xf32> -> vector<64x256xf32>
      %c0_248 = arith.constant 0 : index
      %c0_249 = arith.constant 0 : index
      %236 = vector.load %arg10[%c0_248, %c0_249] : memref<64x256xf32, #tpu.memory_space<vmem>>, vector<64x256xf32>
      %237 = arith.addf %236, %235 : vector<64x256xf32>
      %c0_250 = arith.constant 0 : index
      %c0_251 = arith.constant 0 : index
      %238 = vector.load %arg10[%c0_250, %c0_251] : memref<64x256xf32, #tpu.memory_space<vmem>>, vector<64x256xf32>
      tpu.vector_store %arg10[%c0_250, %c0_251], %237 {strides = array<i32>} : memref<64x256xf32, #tpu.memory_space<vmem>>, vector<64x256xf32>,
      %c0_252 = arith.constant 0 : index
      %c32_253 = arith.constant 32 : index
      %239 = vector.load %arg7[%c0_252, %c32_253] : memref<64x290xbf16, #tpu.memory_space<vmem>>, vector<64x256xbf16>
      %c0_254 = arith.constant 0 : index
      %c33_255 = arith.constant 33 : index
      %240 = vector.load %arg7[%c0_254, %c33_255] : memref<64x290xbf16, #tpu.memory_space<vmem>>, vector<64x256xbf16>
      %c0_256 = arith.constant 0 : index
      %c34_257 = arith.constant 34 : index
      %241 = vector.load %arg7[%c0_256, %c34_257] : memref<64x290xbf16, #tpu.memory_space<vmem>>, vector<64x256xbf16>
      %242 = vector.broadcast %0 : vector<1x256xbf16> to vector<64x256xbf16>
      %243 = arith.mulf %239, %242 : vector<64x256xbf16>
      %c0_258 = arith.constant 0 : index
      %c0_259 = arith.constant 0 : index
      %244 = vector.load %arg9[%c0_258, %c0_259] : memref<192x256xbf16, #tpu.memory_space<vmem>>, vector<64x256xbf16>
      tpu.vector_store %arg9[%c0_258, %c0_259], %243 {strides = array<i32>} : memref<192x256xbf16, #tpu.memory_space<vmem>>, vector<64x256xbf16>,
      %c64_260 = arith.constant 64 : index
      %c0_261 = arith.constant 0 : index
      %245 = vector.load %arg9[%c64_260, %c0_261] : memref<192x256xbf16, #tpu.memory_space<vmem>>, vector<64x256xbf16>
      tpu.vector_store %arg9[%c64_260, %c0_261], %240 {strides = array<i32>} : memref<192x256xbf16, #tpu.memory_space<vmem>>, vector<64x256xbf16>,
      %246 = vector.broadcast %1 : vector<1x256xbf16> to vector<64x256xbf16>
      %247 = arith.mulf %241, %246 : vector<64x256xbf16>
      %c128_262 = arith.constant 128 : index
      %c0_263 = arith.constant 0 : index
      %248 = vector.load %arg9[%c128_262, %c0_263] : memref<192x256xbf16, #tpu.memory_space<vmem>>, vector<64x256xbf16>
      tpu.vector_store %arg9[%c128_262, %c0_263], %247 {strides = array<i32>} : memref<192x256xbf16, #tpu.memory_space<vmem>>, vector<64x256xbf16>,
      %249 = vector.extract_strided_slice %203 {offsets = [2, 0, 0], sizes = [1, 64, 192], strides = [1, 1, 1]} : vector<3x64x192xbf16> to vector<1x64x192xbf16>
      %250 = vector.shape_cast %249 : vector<1x64x192xbf16> to vector<64x192xbf16>
      %c0_264 = arith.constant 0 : index
      %c0_265 = arith.constant 0 : index
      %251 = vector.load %arg9[%c0_264, %c0_265] : memref<192x256xbf16, #tpu.memory_space<vmem>>, vector<192x256xbf16>
      %cst_266 = arith.constant dense<0.000000e+00> : vector<64x256xf32>
      %252 = tpu.matmul %250, %251, %cst_266 {dimension_numbers = #tpu.dot_dimension_numbers<[1], [0], [0], [1], [0, 0, 1, 1], [], []>} : vector<64x192xbf16>, vector<192x256xbf16>, vector<64x256xf32> -> vector<64x256xf32>
      %c0_267 = arith.constant 0 : index
      %c0_268 = arith.constant 0 : index
      %253 = vector.load %arg10[%c0_267, %c0_268] : memref<64x256xf32, #tpu.memory_space<vmem>>, vector<64x256xf32>
      %254 = arith.addf %253, %252 : vector<64x256xf32>
      %c0_269 = arith.constant 0 : index
      %c0_270 = arith.constant 0 : index
      %255 = vector.load %arg10[%c0_269, %c0_270] : memref<64x256xf32, #tpu.memory_space<vmem>>, vector<64x256xf32>
      tpu.vector_store %arg10[%c0_269, %c0_270], %254 {strides = array<i32>} : memref<64x256xf32, #tpu.memory_space<vmem>>, vector<64x256xf32>,
      %c0_271 = arith.constant 0 : index
      %c0_272 = arith.constant 0 : index
      %256 = vector.load %arg10[%c0_271, %c0_272] : memref<64x256xf32, #tpu.memory_space<vmem>>, vector<64x256xf32>
      %257 = vector.broadcast %206 : vector<64x1xf32> to vector<64x256xf32>
      %258 = arith.addf %256, %257 : vector<64x256xf32>
      %cst_273 = arith.constant 0.000000e+00 : f32
      %259 = vector.broadcast %cst_273 : f32 to vector<64x256xf32>
      %260 = arith.maximumf %258, %259 : vector<64x256xf32>
      %261 = arith.truncf %260 : vector<64x256xf32> to vector<64x256xbf16>
      %c0_274 = arith.constant 0 : index
      %c17_275 = arith.constant 17 : index
      %262 = vector.load %arg8[%c0_274, %c17_275] : memref<64x290xbf16, #tpu.memory_space<vmem>>, vector<64x256xbf16>
      tpu.vector_store %arg8[%c0_274, %c17_275], %261 {strides = array<i32>} : memref<64x290xbf16, #tpu.memory_space<vmem>>, vector<64x256xbf16>,
      %c1_i32_276 = arith.constant 1 : i32
      %263 = arith.addi %199, %c1_i32_276 : i32
      %c1_i32_277 = arith.constant 1 : i32
      %264 = arith.subi %263, %c1_i32_277 : i32
      %265 = arith.index_cast %264 : i32 to index
      %c0_278 = arith.constant 0 : index
      %c0_279 = arith.constant 0 : index
      %c0_280 = arith.constant 0 : index
      %266 = vector.load %arg4[%265, %c0_278, %c0_279, %c0_280] : memref<16x3x64x192xbf16, #tpu.memory_space<vmem>>, vector<1x3x64x192xbf16>
      %267 = vector.shape_cast %266 : vector<1x3x64x192xbf16> to vector<3x64x192xbf16>
      %268 = arith.index_cast %263 : i32 to index
      %c0_281 = arith.constant 0 : index
      %c0_282 = arith.constant 0 : index
      %269 = vector.load %arg5[%268, %c0_281, %c0_282] : memref<17x64x1xf32, #tpu.memory_space<vmem>>, vector<1x64x1xf32>
      %270 = vector.shape_cast %269 : vector<1x64x1xf32> to vector<64x1xf32>
      %c0_283 = arith.constant 0 : index
      %c0_284 = arith.constant 0 : index
      %271 = vector.load %arg8[%c0_283, %c0_284] : memref<64x290xbf16, #tpu.memory_space<vmem>>, vector<64x256xbf16>
      %c0_285 = arith.constant 0 : index
      %c1_286 = arith.constant 1 : index
      %272 = vector.load %arg8[%c0_285, %c1_286] : memref<64x290xbf16, #tpu.memory_space<vmem>>, vector<64x256xbf16>
      %c0_287 = arith.constant 0 : index
      %c2_288 = arith.constant 2 : index
      %273 = vector.load %arg8[%c0_287, %c2_288] : memref<64x290xbf16, #tpu.memory_space<vmem>>, vector<64x256xbf16>
      %274 = vector.broadcast %0 : vector<1x256xbf16> to vector<64x256xbf16>
      %275 = arith.mulf %271, %274 : vector<64x256xbf16>
      %c0_289 = arith.constant 0 : index
      %c0_290 = arith.constant 0 : index
      %276 = vector.load %arg9[%c0_289, %c0_290] : memref<192x256xbf16, #tpu.memory_space<vmem>>, vector<64x256xbf16>
      tpu.vector_store %arg9[%c0_289, %c0_290], %275 {strides = array<i32>} : memref<192x256xbf16, #tpu.memory_space<vmem>>, vector<64x256xbf16>,
      %c64_291 = arith.constant 64 : index
      %c0_292 = arith.constant 0 : index
      %277 = vector.load %arg9[%c64_291, %c0_292] : memref<192x256xbf16, #tpu.memory_space<vmem>>, vector<64x256xbf16>
      tpu.vector_store %arg9[%c64_291, %c0_292], %272 {strides = array<i32>} : memref<192x256xbf16, #tpu.memory_space<vmem>>, vector<64x256xbf16>,
      %278 = vector.broadcast %1 : vector<1x256xbf16> to vector<64x256xbf16>
      %279 = arith.mulf %273, %278 : vector<64x256xbf16>
      %c128_293 = arith.constant 128 : index
      %c0_294 = arith.constant 0 : index
      %280 = vector.load %arg9[%c128_293, %c0_294] : memref<192x256xbf16, #tpu.memory_space<vmem>>, vector<64x256xbf16>
      tpu.vector_store %arg9[%c128_293, %c0_294], %279 {strides = array<i32>} : memref<192x256xbf16, #tpu.memory_space<vmem>>, vector<64x256xbf16>,
      %281 = vector.extract_strided_slice %267 {offsets = [0, 0, 0], sizes = [1, 64, 192], strides = [1, 1, 1]} : vector<3x64x192xbf16> to vector<1x64x192xbf16>
      %282 = vector.shape_cast %281 : vector<1x64x192xbf16> to vector<64x192xbf16>
      %c0_295 = arith.constant 0 : index
      %c0_296 = arith.constant 0 : index
      %283 = vector.load %arg9[%c0_295, %c0_296] : memref<192x256xbf16, #tpu.memory_space<vmem>>, vector<192x256xbf16>
      %cst_297 = arith.constant dense<0.000000e+00> : vector<64x256xf32>
      %284 = tpu.matmul %282, %283, %cst_297 {dimension_numbers = #tpu.dot_dimension_numbers<[1], [0], [0], [1], [0, 0, 1, 1], [], []>} : vector<64x192xbf16>, vector<192x256xbf16>, vector<64x256xf32> -> vector<64x256xf32>
      %c0_298 = arith.constant 0 : index
      %c0_299 = arith.constant 0 : index
      %285 = vector.load %arg10[%c0_298, %c0_299] : memref<64x256xf32, #tpu.memory_space<vmem>>, vector<64x256xf32>
      tpu.vector_store %arg10[%c0_298, %c0_299], %284 {strides = array<i32>} : memref<64x256xf32, #tpu.memory_space<vmem>>, vector<64x256xf32>,
      %c0_300 = arith.constant 0 : index
      %c16_301 = arith.constant 16 : index
      %286 = vector.load %arg8[%c0_300, %c16_301] : memref<64x290xbf16, #tpu.memory_space<vmem>>, vector<64x256xbf16>
      %c0_302 = arith.constant 0 : index
      %c17_303 = arith.constant 17 : index
      %287 = vector.load %arg8[%c0_302, %c17_303] : memref<64x290xbf16, #tpu.memory_space<vmem>>, vector<64x256xbf16>
      %c0_304 = arith.constant 0 : index
      %c18_305 = arith.constant 18 : index
      %288 = vector.load %arg8[%c0_304, %c18_305] : memref<64x290xbf16, #tpu.memory_space<vmem>>, vector<64x256xbf16>
      %289 = vector.broadcast %0 : vector<1x256xbf16> to vector<64x256xbf16>
      %290 = arith.mulf %286, %289 : vector<64x256xbf16>
      %c0_306 = arith.constant 0 : index
      %c0_307 = arith.constant 0 : index
      %291 = vector.load %arg9[%c0_306, %c0_307] : memref<192x256xbf16, #tpu.memory_space<vmem>>, vector<64x256xbf16>
      tpu.vector_store %arg9[%c0_306, %c0_307], %290 {strides = array<i32>} : memref<192x256xbf16, #tpu.memory_space<vmem>>, vector<64x256xbf16>,
      %c64_308 = arith.constant 64 : index
      %c0_309 = arith.constant 0 : index
      %292 = vector.load %arg9[%c64_308, %c0_309] : memref<192x256xbf16, #tpu.memory_space<vmem>>, vector<64x256xbf16>
      tpu.vector_store %arg9[%c64_308, %c0_309], %287 {strides = array<i32>} : memref<192x256xbf16, #tpu.memory_space<vmem>>, vector<64x256xbf16>,
      %293 = vector.broadcast %1 : vector<1x256xbf16> to vector<64x256xbf16>
      %294 = arith.mulf %288, %293 : vector<64x256xbf16>
      %c128_310 = arith.constant 128 : index
      %c0_311 = arith.constant 0 : index
      %295 = vector.load %arg9[%c128_310, %c0_311] : memref<192x256xbf16, #tpu.memory_space<vmem>>, vector<64x256xbf16>
      tpu.vector_store %arg9[%c128_310, %c0_311], %294 {strides = array<i32>} : memref<192x256xbf16, #tpu.memory_space<vmem>>, vector<64x256xbf16>,
      %296 = vector.extract_strided_slice %267 {offsets = [1, 0, 0], sizes = [1, 64, 192], strides = [1, 1, 1]} : vector<3x64x192xbf16> to vector<1x64x192xbf16>
      %297 = vector.shape_cast %296 : vector<1x64x192xbf16> to vector<64x192xbf16>
      %c0_312 = arith.constant 0 : index
      %c0_313 = arith.constant 0 : index
      %298 = vector.load %arg9[%c0_312, %c0_313] : memref<192x256xbf16, #tpu.memory_space<vmem>>, vector<192x256xbf16>
      %cst_314 = arith.constant dense<0.000000e+00> : vector<64x256xf32>
      %299 = tpu.matmul %297, %298, %cst_314 {dimension_numbers = #tpu.dot_dimension_numbers<[1], [0], [0], [1], [0, 0, 1, 1], [], []>} : vector<64x192xbf16>, vector<192x256xbf16>, vector<64x256xf32> -> vector<64x256xf32>
      %c0_315 = arith.constant 0 : index
      %c0_316 = arith.constant 0 : index
      %300 = vector.load %arg10[%c0_315, %c0_316] : memref<64x256xf32, #tpu.memory_space<vmem>>, vector<64x256xf32>
      %301 = arith.addf %300, %299 : vector<64x256xf32>
      %c0_317 = arith.constant 0 : index
      %c0_318 = arith.constant 0 : index
      %302 = vector.load %arg10[%c0_317, %c0_318] : memref<64x256xf32, #tpu.memory_space<vmem>>, vector<64x256xf32>
      tpu.vector_store %arg10[%c0_317, %c0_318], %301 {strides = array<i32>} : memref<64x256xf32, #tpu.memory_space<vmem>>, vector<64x256xf32>,
      %c0_319 = arith.constant 0 : index
      %c32_320 = arith.constant 32 : index
      %303 = vector.load %arg8[%c0_319, %c32_320] : memref<64x290xbf16, #tpu.memory_space<vmem>>, vector<64x256xbf16>
      %c0_321 = arith.constant 0 : index
      %c33_322 = arith.constant 33 : index
      %304 = vector.load %arg8[%c0_321, %c33_322] : memref<64x290xbf16, #tpu.memory_space<vmem>>, vector<64x256xbf16>
      %c0_323 = arith.constant 0 : index
      %c34_324 = arith.constant 34 : index
      %305 = vector.load %arg8[%c0_323, %c34_324] : memref<64x290xbf16, #tpu.memory_space<vmem>>, vector<64x256xbf16>
      %306 = vector.broadcast %0 : vector<1x256xbf16> to vector<64x256xbf16>
      %307 = arith.mulf %303, %306 : vector<64x256xbf16>
      %c0_325 = arith.constant 0 : index
      %c0_326 = arith.constant 0 : index
      %308 = vector.load %arg9[%c0_325, %c0_326] : memref<192x256xbf16, #tpu.memory_space<vmem>>, vector<64x256xbf16>
      tpu.vector_store %arg9[%c0_325, %c0_326], %307 {strides = array<i32>} : memref<192x256xbf16, #tpu.memory_space<vmem>>, vector<64x256xbf16>,
      %c64_327 = arith.constant 64 : index
      %c0_328 = arith.constant 0 : index
      %309 = vector.load %arg9[%c64_327, %c0_328] : memref<192x256xbf16, #tpu.memory_space<vmem>>, vector<64x256xbf16>
      tpu.vector_store %arg9[%c64_327, %c0_328], %304 {strides = array<i32>} : memref<192x256xbf16, #tpu.memory_space<vmem>>, vector<64x256xbf16>,
      %310 = vector.broadcast %1 : vector<1x256xbf16> to vector<64x256xbf16>
      %311 = arith.mulf %305, %310 : vector<64x256xbf16>
      %c128_329 = arith.constant 128 : index
      %c0_330 = arith.constant 0 : index
      %312 = vector.load %arg9[%c128_329, %c0_330] : memref<192x256xbf16, #tpu.memory_space<vmem>>, vector<64x256xbf16>
      tpu.vector_store %arg9[%c128_329, %c0_330], %311 {strides = array<i32>} : memref<192x256xbf16, #tpu.memory_space<vmem>>, vector<64x256xbf16>,
      %313 = vector.extract_strided_slice %267 {offsets = [2, 0, 0], sizes = [1, 64, 192], strides = [1, 1, 1]} : vector<3x64x192xbf16> to vector<1x64x192xbf16>
      %314 = vector.shape_cast %313 : vector<1x64x192xbf16> to vector<64x192xbf16>
      %c0_331 = arith.constant 0 : index
      %c0_332 = arith.constant 0 : index
      %315 = vector.load %arg9[%c0_331, %c0_332] : memref<192x256xbf16, #tpu.memory_space<vmem>>, vector<192x256xbf16>
      %cst_333 = arith.constant dense<0.000000e+00> : vector<64x256xf32>
      %316 = tpu.matmul %314, %315, %cst_333 {dimension_numbers = #tpu.dot_dimension_numbers<[1], [0], [0], [1], [0, 0, 1, 1], [], []>} : vector<64x192xbf16>, vector<192x256xbf16>, vector<64x256xf32> -> vector<64x256xf32>
      %c0_334 = arith.constant 0 : index
      %c0_335 = arith.constant 0 : index
      %317 = vector.load %arg10[%c0_334, %c0_335] : memref<64x256xf32, #tpu.memory_space<vmem>>, vector<64x256xf32>
      %318 = arith.addf %317, %316 : vector<64x256xf32>
      %c0_336 = arith.constant 0 : index
      %c0_337 = arith.constant 0 : index
      %319 = vector.load %arg10[%c0_336, %c0_337] : memref<64x256xf32, #tpu.memory_space<vmem>>, vector<64x256xf32>
      tpu.vector_store %arg10[%c0_336, %c0_337], %318 {strides = array<i32>} : memref<64x256xf32, #tpu.memory_space<vmem>>, vector<64x256xf32>,
      %c0_338 = arith.constant 0 : index
      %c0_339 = arith.constant 0 : index
      %320 = vector.load %arg10[%c0_338, %c0_339] : memref<64x256xf32, #tpu.memory_space<vmem>>, vector<64x256xf32>
      %321 = vector.broadcast %270 : vector<64x1xf32> to vector<64x256xf32>
      %322 = arith.addf %320, %321 : vector<64x256xf32>
      %cst_340 = arith.constant 0.000000e+00 : f32
      %323 = vector.broadcast %cst_340 : f32 to vector<64x256xf32>
      %324 = arith.maximumf %322, %323 : vector<64x256xf32>
      %325 = arith.truncf %324 : vector<64x256xf32> to vector<64x256xbf16>
      %c0_341 = arith.constant 0 : index
      %c17_342 = arith.constant 17 : index
      %326 = vector.load %arg7[%c0_341, %c17_342] : memref<64x290xbf16, #tpu.memory_space<vmem>>, vector<64x256xbf16>
      tpu.vector_store %arg7[%c0_341, %c17_342], %325 {strides = array<i32>} : memref<64x290xbf16, #tpu.memory_space<vmem>>, vector<64x256xbf16>,
    }
    %c7_i32_76 = arith.constant 7 : i32
    %c14 = arith.constant 14 : index
    %c0_77 = arith.constant 0 : index
    %c0_78 = arith.constant 0 : index
    %c0_79 = arith.constant 0 : index
    %76 = vector.load %arg4[%c14, %c0_77, %c0_78, %c0_79] : memref<16x3x64x192xbf16, #tpu.memory_space<vmem>>, vector<1x3x64x192xbf16>
    %77 = vector.shape_cast %76 : vector<1x3x64x192xbf16> to vector<3x64x192xbf16>
    %c15 = arith.constant 15 : index
    %c0_80 = arith.constant 0 : index
    %c0_81 = arith.constant 0 : index
    %78 = vector.load %arg5[%c15, %c0_80, %c0_81] : memref<17x64x1xf32, #tpu.memory_space<vmem>>, vector<1x64x1xf32>
    %79 = vector.shape_cast %78 : vector<1x64x1xf32> to vector<64x1xf32>
    %c0_82 = arith.constant 0 : index
    %c0_83 = arith.constant 0 : index
    %80 = vector.load %arg7[%c0_82, %c0_83] : memref<64x290xbf16, #tpu.memory_space<vmem>>, vector<64x256xbf16>
    %c0_84 = arith.constant 0 : index
    %c1_85 = arith.constant 1 : index
    %81 = vector.load %arg7[%c0_84, %c1_85] : memref<64x290xbf16, #tpu.memory_space<vmem>>, vector<64x256xbf16>
    %c0_86 = arith.constant 0 : index
    %c2_87 = arith.constant 2 : index
    %82 = vector.load %arg7[%c0_86, %c2_87] : memref<64x290xbf16, #tpu.memory_space<vmem>>, vector<64x256xbf16>
    %83 = vector.broadcast %0 : vector<1x256xbf16> to vector<64x256xbf16>
    %84 = arith.mulf %80, %83 : vector<64x256xbf16>
    %c0_88 = arith.constant 0 : index
    %c0_89 = arith.constant 0 : index
    %85 = vector.load %arg9[%c0_88, %c0_89] : memref<192x256xbf16, #tpu.memory_space<vmem>>, vector<64x256xbf16>
    tpu.vector_store %arg9[%c0_88, %c0_89], %84 {strides = array<i32>} : memref<192x256xbf16, #tpu.memory_space<vmem>>, vector<64x256xbf16>,
    %c64 = arith.constant 64 : index
    %c0_90 = arith.constant 0 : index
    %86 = vector.load %arg9[%c64, %c0_90] : memref<192x256xbf16, #tpu.memory_space<vmem>>, vector<64x256xbf16>
    tpu.vector_store %arg9[%c64, %c0_90], %81 {strides = array<i32>} : memref<192x256xbf16, #tpu.memory_space<vmem>>, vector<64x256xbf16>,
    %87 = vector.broadcast %1 : vector<1x256xbf16> to vector<64x256xbf16>
    %88 = arith.mulf %82, %87 : vector<64x256xbf16>
    %c128 = arith.constant 128 : index
    %c0_91 = arith.constant 0 : index
    %89 = vector.load %arg9[%c128, %c0_91] : memref<192x256xbf16, #tpu.memory_space<vmem>>, vector<64x256xbf16>
    tpu.vector_store %arg9[%c128, %c0_91], %88 {strides = array<i32>} : memref<192x256xbf16, #tpu.memory_space<vmem>>, vector<64x256xbf16>,
    %90 = vector.extract_strided_slice %77 {offsets = [0, 0, 0], sizes = [1, 64, 192], strides = [1, 1, 1]} : vector<3x64x192xbf16> to vector<1x64x192xbf16>
    %91 = vector.shape_cast %90 : vector<1x64x192xbf16> to vector<64x192xbf16>
    %c0_92 = arith.constant 0 : index
    %c0_93 = arith.constant 0 : index
    %92 = vector.load %arg9[%c0_92, %c0_93] : memref<192x256xbf16, #tpu.memory_space<vmem>>, vector<192x256xbf16>
    %cst_94 = arith.constant dense<0.000000e+00> : vector<64x256xf32>
    %93 = tpu.matmul %91, %92, %cst_94 {dimension_numbers = #tpu.dot_dimension_numbers<[1], [0], [0], [1], [0, 0, 1, 1], [], []>} : vector<64x192xbf16>, vector<192x256xbf16>, vector<64x256xf32> -> vector<64x256xf32>
    %c0_95 = arith.constant 0 : index
    %c0_96 = arith.constant 0 : index
    %94 = vector.load %arg10[%c0_95, %c0_96] : memref<64x256xf32, #tpu.memory_space<vmem>>, vector<64x256xf32>
    tpu.vector_store %arg10[%c0_95, %c0_96], %93 {strides = array<i32>} : memref<64x256xf32, #tpu.memory_space<vmem>>, vector<64x256xf32>,
    %c0_97 = arith.constant 0 : index
    %c16_98 = arith.constant 16 : index
    %95 = vector.load %arg7[%c0_97, %c16_98] : memref<64x290xbf16, #tpu.memory_space<vmem>>, vector<64x256xbf16>
    %c0_99 = arith.constant 0 : index
    %c17_100 = arith.constant 17 : index
    %96 = vector.load %arg7[%c0_99, %c17_100] : memref<64x290xbf16, #tpu.memory_space<vmem>>, vector<64x256xbf16>
    %c0_101 = arith.constant 0 : index
    %c18_102 = arith.constant 18 : index
    %97 = vector.load %arg7[%c0_101, %c18_102] : memref<64x290xbf16, #tpu.memory_space<vmem>>, vector<64x256xbf16>
    %98 = vector.broadcast %0 : vector<1x256xbf16> to vector<64x256xbf16>
    %99 = arith.mulf %95, %98 : vector<64x256xbf16>
    %c0_103 = arith.constant 0 : index
    %c0_104 = arith.constant 0 : index
    %100 = vector.load %arg9[%c0_103, %c0_104] : memref<192x256xbf16, #tpu.memory_space<vmem>>, vector<64x256xbf16>
    tpu.vector_store %arg9[%c0_103, %c0_104], %99 {strides = array<i32>} : memref<192x256xbf16, #tpu.memory_space<vmem>>, vector<64x256xbf16>,
    %c64_105 = arith.constant 64 : index
    %c0_106 = arith.constant 0 : index
    %101 = vector.load %arg9[%c64_105, %c0_106] : memref<192x256xbf16, #tpu.memory_space<vmem>>, vector<64x256xbf16>
    tpu.vector_store %arg9[%c64_105, %c0_106], %96 {strides = array<i32>} : memref<192x256xbf16, #tpu.memory_space<vmem>>, vector<64x256xbf16>,
    %102 = vector.broadcast %1 : vector<1x256xbf16> to vector<64x256xbf16>
    %103 = arith.mulf %97, %102 : vector<64x256xbf16>
    %c128_107 = arith.constant 128 : index
    %c0_108 = arith.constant 0 : index
    %104 = vector.load %arg9[%c128_107, %c0_108] : memref<192x256xbf16, #tpu.memory_space<vmem>>, vector<64x256xbf16>
    tpu.vector_store %arg9[%c128_107, %c0_108], %103 {strides = array<i32>} : memref<192x256xbf16, #tpu.memory_space<vmem>>, vector<64x256xbf16>,
    %105 = vector.extract_strided_slice %77 {offsets = [1, 0, 0], sizes = [1, 64, 192], strides = [1, 1, 1]} : vector<3x64x192xbf16> to vector<1x64x192xbf16>
    %106 = vector.shape_cast %105 : vector<1x64x192xbf16> to vector<64x192xbf16>
    %c0_109 = arith.constant 0 : index
    %c0_110 = arith.constant 0 : index
    %107 = vector.load %arg9[%c0_109, %c0_110] : memref<192x256xbf16, #tpu.memory_space<vmem>>, vector<192x256xbf16>
    %cst_111 = arith.constant dense<0.000000e+00> : vector<64x256xf32>
    %108 = tpu.matmul %106, %107, %cst_111 {dimension_numbers = #tpu.dot_dimension_numbers<[1], [0], [0], [1], [0, 0, 1, 1], [], []>} : vector<64x192xbf16>, vector<192x256xbf16>, vector<64x256xf32> -> vector<64x256xf32>
    %c0_112 = arith.constant 0 : index
    %c0_113 = arith.constant 0 : index
    %109 = vector.load %arg10[%c0_112, %c0_113] : memref<64x256xf32, #tpu.memory_space<vmem>>, vector<64x256xf32>
    %110 = arith.addf %109, %108 : vector<64x256xf32>
    %c0_114 = arith.constant 0 : index
    %c0_115 = arith.constant 0 : index
    %111 = vector.load %arg10[%c0_114, %c0_115] : memref<64x256xf32, #tpu.memory_space<vmem>>, vector<64x256xf32>
    tpu.vector_store %arg10[%c0_114, %c0_115], %110 {strides = array<i32>} : memref<64x256xf32, #tpu.memory_space<vmem>>, vector<64x256xf32>,
    %c0_116 = arith.constant 0 : index
    %c32_117 = arith.constant 32 : index
    %112 = vector.load %arg7[%c0_116, %c32_117] : memref<64x290xbf16, #tpu.memory_space<vmem>>, vector<64x256xbf16>
    %c0_118 = arith.constant 0 : index
    %c33_119 = arith.constant 33 : index
    %113 = vector.load %arg7[%c0_118, %c33_119] : memref<64x290xbf16, #tpu.memory_space<vmem>>, vector<64x256xbf16>
    %c0_120 = arith.constant 0 : index
    %c34_121 = arith.constant 34 : index
    %114 = vector.load %arg7[%c0_120, %c34_121] : memref<64x290xbf16, #tpu.memory_space<vmem>>, vector<64x256xbf16>
    %115 = vector.broadcast %0 : vector<1x256xbf16> to vector<64x256xbf16>
    %116 = arith.mulf %112, %115 : vector<64x256xbf16>
    %c0_122 = arith.constant 0 : index
    %c0_123 = arith.constant 0 : index
    %117 = vector.load %arg9[%c0_122, %c0_123] : memref<192x256xbf16, #tpu.memory_space<vmem>>, vector<64x256xbf16>
    tpu.vector_store %arg9[%c0_122, %c0_123], %116 {strides = array<i32>} : memref<192x256xbf16, #tpu.memory_space<vmem>>, vector<64x256xbf16>,
    %c64_124 = arith.constant 64 : index
    %c0_125 = arith.constant 0 : index
    %118 = vector.load %arg9[%c64_124, %c0_125] : memref<192x256xbf16, #tpu.memory_space<vmem>>, vector<64x256xbf16>
    tpu.vector_store %arg9[%c64_124, %c0_125], %113 {strides = array<i32>} : memref<192x256xbf16, #tpu.memory_space<vmem>>, vector<64x256xbf16>,
    %119 = vector.broadcast %1 : vector<1x256xbf16> to vector<64x256xbf16>
    %120 = arith.mulf %114, %119 : vector<64x256xbf16>
    %c128_126 = arith.constant 128 : index
    %c0_127 = arith.constant 0 : index
    %121 = vector.load %arg9[%c128_126, %c0_127] : memref<192x256xbf16, #tpu.memory_space<vmem>>, vector<64x256xbf16>
    tpu.vector_store %arg9[%c128_126, %c0_127], %120 {strides = array<i32>} : memref<192x256xbf16, #tpu.memory_space<vmem>>, vector<64x256xbf16>,
    %122 = vector.extract_strided_slice %77 {offsets = [2, 0, 0], sizes = [1, 64, 192], strides = [1, 1, 1]} : vector<3x64x192xbf16> to vector<1x64x192xbf16>
    %123 = vector.shape_cast %122 : vector<1x64x192xbf16> to vector<64x192xbf16>
    %c0_128 = arith.constant 0 : index
    %c0_129 = arith.constant 0 : index
    %124 = vector.load %arg9[%c0_128, %c0_129] : memref<192x256xbf16, #tpu.memory_space<vmem>>, vector<192x256xbf16>
    %cst_130 = arith.constant dense<0.000000e+00> : vector<64x256xf32>
    %125 = tpu.matmul %123, %124, %cst_130 {dimension_numbers = #tpu.dot_dimension_numbers<[1], [0], [0], [1], [0, 0, 1, 1], [], []>} : vector<64x192xbf16>, vector<192x256xbf16>, vector<64x256xf32> -> vector<64x256xf32>
    %c0_131 = arith.constant 0 : index
    %c0_132 = arith.constant 0 : index
    %126 = vector.load %arg10[%c0_131, %c0_132] : memref<64x256xf32, #tpu.memory_space<vmem>>, vector<64x256xf32>
    %127 = arith.addf %126, %125 : vector<64x256xf32>
    %c0_133 = arith.constant 0 : index
    %c0_134 = arith.constant 0 : index
    %128 = vector.load %arg10[%c0_133, %c0_134] : memref<64x256xf32, #tpu.memory_space<vmem>>, vector<64x256xf32>
    tpu.vector_store %arg10[%c0_133, %c0_134], %127 {strides = array<i32>} : memref<64x256xf32, #tpu.memory_space<vmem>>, vector<64x256xf32>,
    %c0_135 = arith.constant 0 : index
    %c0_136 = arith.constant 0 : index
    %129 = vector.load %arg10[%c0_135, %c0_136] : memref<64x256xf32, #tpu.memory_space<vmem>>, vector<64x256xf32>
    %130 = vector.broadcast %79 : vector<64x1xf32> to vector<64x256xf32>
    %131 = arith.addf %129, %130 : vector<64x256xf32>
    %cst_137 = arith.constant 0.000000e+00 : f32
    %132 = vector.broadcast %cst_137 : f32 to vector<64x256xf32>
    %133 = arith.maximumf %131, %132 : vector<64x256xf32>
    %134 = arith.truncf %133 : vector<64x256xf32> to vector<64x256xbf16>
    %c0_138 = arith.constant 0 : index
    %c17_139 = arith.constant 17 : index
    %135 = vector.load %arg8[%c0_138, %c17_139] : memref<64x290xbf16, #tpu.memory_space<vmem>>, vector<64x256xbf16>
    tpu.vector_store %arg8[%c0_138, %c17_139], %134 {strides = array<i32>} : memref<64x290xbf16, #tpu.memory_space<vmem>>, vector<64x256xbf16>,
    %c15_140 = arith.constant 15 : index
    %c0_141 = arith.constant 0 : index
    %c0_142 = arith.constant 0 : index
    %c0_143 = arith.constant 0 : index
    %136 = vector.load %arg4[%c15_140, %c0_141, %c0_142, %c0_143] : memref<16x3x64x192xbf16, #tpu.memory_space<vmem>>, vector<1x3x64x192xbf16>
    %137 = vector.shape_cast %136 : vector<1x3x64x192xbf16> to vector<3x64x192xbf16>
    %c16_144 = arith.constant 16 : index
    %c0_145 = arith.constant 0 : index
    %c0_146 = arith.constant 0 : index
    %138 = vector.load %arg5[%c16_144, %c0_145, %c0_146] : memref<17x64x1xf32, #tpu.memory_space<vmem>>, vector<1x64x1xf32>
    %139 = vector.shape_cast %138 : vector<1x64x1xf32> to vector<64x1xf32>
    %c0_147 = arith.constant 0 : index
    %c0_148 = arith.constant 0 : index
    %140 = vector.load %arg8[%c0_147, %c0_148] : memref<64x290xbf16, #tpu.memory_space<vmem>>, vector<64x256xbf16>
    %c0_149 = arith.constant 0 : index
    %c1_150 = arith.constant 1 : index
    %141 = vector.load %arg8[%c0_149, %c1_150] : memref<64x290xbf16, #tpu.memory_space<vmem>>, vector<64x256xbf16>
    %c0_151 = arith.constant 0 : index
    %c2_152 = arith.constant 2 : index
    %142 = vector.load %arg8[%c0_151, %c2_152] : memref<64x290xbf16, #tpu.memory_space<vmem>>, vector<64x256xbf16>
    %143 = vector.broadcast %0 : vector<1x256xbf16> to vector<64x256xbf16>
    %144 = arith.mulf %140, %143 : vector<64x256xbf16>
    %c0_153 = arith.constant 0 : index
    %c0_154 = arith.constant 0 : index
    %145 = vector.load %arg9[%c0_153, %c0_154] : memref<192x256xbf16, #tpu.memory_space<vmem>>, vector<64x256xbf16>
    tpu.vector_store %arg9[%c0_153, %c0_154], %144 {strides = array<i32>} : memref<192x256xbf16, #tpu.memory_space<vmem>>, vector<64x256xbf16>,
    %c64_155 = arith.constant 64 : index
    %c0_156 = arith.constant 0 : index
    %146 = vector.load %arg9[%c64_155, %c0_156] : memref<192x256xbf16, #tpu.memory_space<vmem>>, vector<64x256xbf16>
    tpu.vector_store %arg9[%c64_155, %c0_156], %141 {strides = array<i32>} : memref<192x256xbf16, #tpu.memory_space<vmem>>, vector<64x256xbf16>,
    %147 = vector.broadcast %1 : vector<1x256xbf16> to vector<64x256xbf16>
    %148 = arith.mulf %142, %147 : vector<64x256xbf16>
    %c128_157 = arith.constant 128 : index
    %c0_158 = arith.constant 0 : index
    %149 = vector.load %arg9[%c128_157, %c0_158] : memref<192x256xbf16, #tpu.memory_space<vmem>>, vector<64x256xbf16>
    tpu.vector_store %arg9[%c128_157, %c0_158], %148 {strides = array<i32>} : memref<192x256xbf16, #tpu.memory_space<vmem>>, vector<64x256xbf16>,
    %150 = vector.extract_strided_slice %137 {offsets = [0, 0, 0], sizes = [1, 64, 192], strides = [1, 1, 1]} : vector<3x64x192xbf16> to vector<1x64x192xbf16>
    %151 = vector.shape_cast %150 : vector<1x64x192xbf16> to vector<64x192xbf16>
    %c0_159 = arith.constant 0 : index
    %c0_160 = arith.constant 0 : index
    %152 = vector.load %arg9[%c0_159, %c0_160] : memref<192x256xbf16, #tpu.memory_space<vmem>>, vector<192x256xbf16>
    %cst_161 = arith.constant dense<0.000000e+00> : vector<64x256xf32>
    %153 = tpu.matmul %151, %152, %cst_161 {dimension_numbers = #tpu.dot_dimension_numbers<[1], [0], [0], [1], [0, 0, 1, 1], [], []>} : vector<64x192xbf16>, vector<192x256xbf16>, vector<64x256xf32> -> vector<64x256xf32>
    %c0_162 = arith.constant 0 : index
    %c0_163 = arith.constant 0 : index
    %154 = vector.load %arg10[%c0_162, %c0_163] : memref<64x256xf32, #tpu.memory_space<vmem>>, vector<64x256xf32>
    tpu.vector_store %arg10[%c0_162, %c0_163], %153 {strides = array<i32>} : memref<64x256xf32, #tpu.memory_space<vmem>>, vector<64x256xf32>,
    %c0_164 = arith.constant 0 : index
    %c16_165 = arith.constant 16 : index
    %155 = vector.load %arg8[%c0_164, %c16_165] : memref<64x290xbf16, #tpu.memory_space<vmem>>, vector<64x256xbf16>
    %c0_166 = arith.constant 0 : index
    %c17_167 = arith.constant 17 : index
    %156 = vector.load %arg8[%c0_166, %c17_167] : memref<64x290xbf16, #tpu.memory_space<vmem>>, vector<64x256xbf16>
    %c0_168 = arith.constant 0 : index
    %c18_169 = arith.constant 18 : index
    %157 = vector.load %arg8[%c0_168, %c18_169] : memref<64x290xbf16, #tpu.memory_space<vmem>>, vector<64x256xbf16>
    %158 = vector.broadcast %0 : vector<1x256xbf16> to vector<64x256xbf16>
    %159 = arith.mulf %155, %158 : vector<64x256xbf16>
    %c0_170 = arith.constant 0 : index
    %c0_171 = arith.constant 0 : index
    %160 = vector.load %arg9[%c0_170, %c0_171] : memref<192x256xbf16, #tpu.memory_space<vmem>>, vector<64x256xbf16>
    tpu.vector_store %arg9[%c0_170, %c0_171], %159 {strides = array<i32>} : memref<192x256xbf16, #tpu.memory_space<vmem>>, vector<64x256xbf16>,
    %c64_172 = arith.constant 64 : index
    %c0_173 = arith.constant 0 : index
    %161 = vector.load %arg9[%c64_172, %c0_173] : memref<192x256xbf16, #tpu.memory_space<vmem>>, vector<64x256xbf16>
    tpu.vector_store %arg9[%c64_172, %c0_173], %156 {strides = array<i32>} : memref<192x256xbf16, #tpu.memory_space<vmem>>, vector<64x256xbf16>,
    %162 = vector.broadcast %1 : vector<1x256xbf16> to vector<64x256xbf16>
    %163 = arith.mulf %157, %162 : vector<64x256xbf16>
    %c128_174 = arith.constant 128 : index
    %c0_175 = arith.constant 0 : index
    %164 = vector.load %arg9[%c128_174, %c0_175] : memref<192x256xbf16, #tpu.memory_space<vmem>>, vector<64x256xbf16>
    tpu.vector_store %arg9[%c128_174, %c0_175], %163 {strides = array<i32>} : memref<192x256xbf16, #tpu.memory_space<vmem>>, vector<64x256xbf16>,
    %165 = vector.extract_strided_slice %137 {offsets = [1, 0, 0], sizes = [1, 64, 192], strides = [1, 1, 1]} : vector<3x64x192xbf16> to vector<1x64x192xbf16>
    %166 = vector.shape_cast %165 : vector<1x64x192xbf16> to vector<64x192xbf16>
    %c0_176 = arith.constant 0 : index
    %c0_177 = arith.constant 0 : index
    %167 = vector.load %arg9[%c0_176, %c0_177] : memref<192x256xbf16, #tpu.memory_space<vmem>>, vector<192x256xbf16>
    %cst_178 = arith.constant dense<0.000000e+00> : vector<64x256xf32>
    %168 = tpu.matmul %166, %167, %cst_178 {dimension_numbers = #tpu.dot_dimension_numbers<[1], [0], [0], [1], [0, 0, 1, 1], [], []>} : vector<64x192xbf16>, vector<192x256xbf16>, vector<64x256xf32> -> vector<64x256xf32>
    %c0_179 = arith.constant 0 : index
    %c0_180 = arith.constant 0 : index
    %169 = vector.load %arg10[%c0_179, %c0_180] : memref<64x256xf32, #tpu.memory_space<vmem>>, vector<64x256xf32>
    %170 = arith.addf %169, %168 : vector<64x256xf32>
    %c0_181 = arith.constant 0 : index
    %c0_182 = arith.constant 0 : index
    %171 = vector.load %arg10[%c0_181, %c0_182] : memref<64x256xf32, #tpu.memory_space<vmem>>, vector<64x256xf32>
    tpu.vector_store %arg10[%c0_181, %c0_182], %170 {strides = array<i32>} : memref<64x256xf32, #tpu.memory_space<vmem>>, vector<64x256xf32>,
    %c0_183 = arith.constant 0 : index
    %c32_184 = arith.constant 32 : index
    %172 = vector.load %arg8[%c0_183, %c32_184] : memref<64x290xbf16, #tpu.memory_space<vmem>>, vector<64x256xbf16>
    %c0_185 = arith.constant 0 : index
    %c33_186 = arith.constant 33 : index
    %173 = vector.load %arg8[%c0_185, %c33_186] : memref<64x290xbf16, #tpu.memory_space<vmem>>, vector<64x256xbf16>
    %c0_187 = arith.constant 0 : index
    %c34_188 = arith.constant 34 : index
    %174 = vector.load %arg8[%c0_187, %c34_188] : memref<64x290xbf16, #tpu.memory_space<vmem>>, vector<64x256xbf16>
    %175 = vector.broadcast %0 : vector<1x256xbf16> to vector<64x256xbf16>
    %176 = arith.mulf %172, %175 : vector<64x256xbf16>
    %c0_189 = arith.constant 0 : index
    %c0_190 = arith.constant 0 : index
    %177 = vector.load %arg9[%c0_189, %c0_190] : memref<192x256xbf16, #tpu.memory_space<vmem>>, vector<64x256xbf16>
    tpu.vector_store %arg9[%c0_189, %c0_190], %176 {strides = array<i32>} : memref<192x256xbf16, #tpu.memory_space<vmem>>, vector<64x256xbf16>,
    %c64_191 = arith.constant 64 : index
    %c0_192 = arith.constant 0 : index
    %178 = vector.load %arg9[%c64_191, %c0_192] : memref<192x256xbf16, #tpu.memory_space<vmem>>, vector<64x256xbf16>
    tpu.vector_store %arg9[%c64_191, %c0_192], %173 {strides = array<i32>} : memref<192x256xbf16, #tpu.memory_space<vmem>>, vector<64x256xbf16>,
    %179 = vector.broadcast %1 : vector<1x256xbf16> to vector<64x256xbf16>
    %180 = arith.mulf %174, %179 : vector<64x256xbf16>
    %c128_193 = arith.constant 128 : index
    %c0_194 = arith.constant 0 : index
    %181 = vector.load %arg9[%c128_193, %c0_194] : memref<192x256xbf16, #tpu.memory_space<vmem>>, vector<64x256xbf16>
    tpu.vector_store %arg9[%c128_193, %c0_194], %180 {strides = array<i32>} : memref<192x256xbf16, #tpu.memory_space<vmem>>, vector<64x256xbf16>,
    %182 = vector.extract_strided_slice %137 {offsets = [2, 0, 0], sizes = [1, 64, 192], strides = [1, 1, 1]} : vector<3x64x192xbf16> to vector<1x64x192xbf16>
    %183 = vector.shape_cast %182 : vector<1x64x192xbf16> to vector<64x192xbf16>
    %c0_195 = arith.constant 0 : index
    %c0_196 = arith.constant 0 : index
    %184 = vector.load %arg9[%c0_195, %c0_196] : memref<192x256xbf16, #tpu.memory_space<vmem>>, vector<192x256xbf16>
    %cst_197 = arith.constant dense<0.000000e+00> : vector<64x256xf32>
    %185 = tpu.matmul %183, %184, %cst_197 {dimension_numbers = #tpu.dot_dimension_numbers<[1], [0], [0], [1], [0, 0, 1, 1], [], []>} : vector<64x192xbf16>, vector<192x256xbf16>, vector<64x256xf32> -> vector<64x256xf32>
    %c0_198 = arith.constant 0 : index
    %c0_199 = arith.constant 0 : index
    %186 = vector.load %arg10[%c0_198, %c0_199] : memref<64x256xf32, #tpu.memory_space<vmem>>, vector<64x256xf32>
    %187 = arith.addf %186, %185 : vector<64x256xf32>
    %c0_200 = arith.constant 0 : index
    %c0_201 = arith.constant 0 : index
    %188 = vector.load %arg10[%c0_200, %c0_201] : memref<64x256xf32, #tpu.memory_space<vmem>>, vector<64x256xf32>
    tpu.vector_store %arg10[%c0_200, %c0_201], %187 {strides = array<i32>} : memref<64x256xf32, #tpu.memory_space<vmem>>, vector<64x256xf32>,
    %c0_202 = arith.constant 0 : index
    %c0_203 = arith.constant 0 : index
    %189 = vector.load %arg10[%c0_202, %c0_203] : memref<64x256xf32, #tpu.memory_space<vmem>>, vector<64x256xf32>
    %190 = vector.broadcast %139 : vector<64x1xf32> to vector<64x256xf32>
    %191 = arith.addf %189, %190 : vector<64x256xf32>
    %192 = vector.extract_strided_slice %191 {offsets = [0, 0], sizes = [8, 256], strides = [1, 1]} : vector<64x256xf32> to vector<8x256xf32>
    %c0_204 = arith.constant 0 : index
    %c0_205 = arith.constant 0 : index
    %c0_206 = arith.constant 0 : index
    %193 = vector.load %arg6[%c0_204, %c0_205, %c0_206] : memref<1x8x256xf32, #tpu.memory_space<vmem>>, vector<1x8x256xf32>
    %194 = vector.shape_cast %193 : vector<1x8x256xf32> to vector<8x256xf32>
    %195 = vector.shape_cast %192 : vector<8x256xf32> to vector<1x8x256xf32>
    tpu.vector_store %arg6[%c0_204, %c0_205, %c0_206], %195 {strides = array<i32>} : memref<1x8x256xf32, #tpu.memory_space<vmem>>, vector<1x8x256xf32>,
    return
  }
  func.func @transform_0(%arg0: i32) -> (i32, i32, i32) {
    %c0_i32 = arith.constant 0 : i32
    %c0_i32_0 = arith.constant 0 : i32
    %c0_i32_1 = arith.constant 0 : i32
    return %arg0, %c0_i32, %c0_i32_0 : i32, i32, i32
  }
  func.func @transform_1(%arg0: i32) -> (i32, i32) {
    %c0_i32 = arith.constant 0 : i32
    %c0_i32_0 = arith.constant 0 : i32
    %c0_i32_1 = arith.constant 0 : i32
    return %c0_i32, %c0_i32_0 : i32, i32
  }
  func.func @transform_2(%arg0: i32) -> (i32, i32, i32) {
    %c0_i32 = arith.constant 0 : i32
    %c0_i32_0 = arith.constant 0 : i32
    %c0_i32_1 = arith.constant 0 : i32
    %c0_i32_2 = arith.constant 0 : i32
    return %c0_i32, %c0_i32_0, %c0_i32_1 : i32, i32, i32
  }
  func.func @transform_3(%arg0: i32) -> (i32, i32, i32, i32) {
    %c0_i32 = arith.constant 0 : i32
    %c0_i32_0 = arith.constant 0 : i32
    %c0_i32_1 = arith.constant 0 : i32
    %c0_i32_2 = arith.constant 0 : i32
    %c0_i32_3 = arith.constant 0 : i32
    return %c0_i32, %c0_i32_0, %c0_i32_1, %c0_i32_2 : i32, i32, i32, i32
  }
  func.func @transform_4(%arg0: i32) -> (i32, i32, i32) {
    %c0_i32 = arith.constant 0 : i32
    %c0_i32_0 = arith.constant 0 : i32
    %c0_i32_1 = arith.constant 0 : i32
    %c0_i32_2 = arith.constant 0 : i32
    return %c0_i32, %c0_i32_0, %c0_i32_1 : i32, i32, i32
  }
  func.func @transform_5(%arg0: i32) -> (i32, i32, i32) {
    %c0_i32 = arith.constant 0 : i32
    %c0_i32_0 = arith.constant 0 : i32
    %c0_i32_1 = arith.constant 0 : i32
    return %arg0, %c0_i32, %c0_i32_0 : i32, i32, i32
  }
}

</mosaic_0001>

<bundles_post_ra>
// kernel: dncnn_forward_nchw.1
= control target key start
LH: loop header
LB: loop body
LE: loop exit
PB: predicated region body
PF: predicated region fallthrough
CT: control target
= control target key end

     0   :  { %10 = vsyncpa [#allocation7], 0  ;;  %s7325_s18 = smov 0   ;;  %s9705_s0 = inlined_call_operand.vmem [shape: bf16[2,8,290], index: 0, kind: input, shape index: {}]   ;;  %s9706_s1 = inlined_call_operand.vmem [shape: bf16[2,256], index: 1, kind: input, shape index: {}]   ;;  %s9707_s2 = inlined_call_operand.vmem [shape: bf16[3,64,24], index: 2, kind: input, shape index: {}]   ;;  %s9708_s3 = inlined_call_operand.hbm [shape: bf16[16,3,64,192], index: 3, kind: input, shape index: {}]   ;;  %s9709_s4 = inlined_call_operand.vmem [shape: f32[17,64,1], index: 4, kind: input, shape index: {}]   ;;  %s9710_s5 = inlined_call_operand.vmem [shape: f32[2,8,256], index: 5, kind: output, shape index: {}]  }
   0x1 LB: > { %s7331_s19 = sadd.s32 4294967295, %s7255_s18   ;;  %p6517_p0 = scmp.ge.s32.totalorder %s7255_s18, 1  ;;  %s7255_s18 = sphi %s7325_s18, %s16_s18  }
   0x2   : > { %p157_p1 = scmp.lt.s32.totalorder %s7255_s18, 3  ;;  %s7261_s20 = smov [#allocation6]  }
   0x3   : > { %s175_s21 = sshll.u32 %s7261_s20, 4  ;;  %p9711_p3 = scmp.eq.s32.totalorder %s7331_s19, 0  ;;  %s176_s21 = int_to_ptr.vmem [resolvable:$true] %s175_s21 }
   0x4   : > { %p7335_p2 = pnand %p6517_p0, %p157_p1  ;;  %s7213_s26 = scalar_lea.hbm %s9708_s3, 49152 }
   0x5   : > { %p7214_p6 = scmp.ne.s32.totalorder %s9708_s3, %s7213_s26  ;;  %p7220_p10 = scmp.lt.u32.totalorder %s7213_s26, %s9708_s3 }
   0x6   : > { %s9723_s22 = scalar_select %p7335_p2, 1, 0 }
   0x7   : > { %p6990_p4 = pneg %p7335_p2 }
   0x9   : > { %p7344_p5 = pnand %p9711_p3, %p6990_p4 }
   0xb   : > { %p7215_p7 = pneg %p7344_p5 }
   0xd   : > { %p7216_p8 = pnand %p7215_p7, %p7214_p6 }
   0xf   : > { %p7217_p9 = pneg %p7216_p8 }
  0x11   : > { %p7222_p11 = pnand %p7220_p10, %p7217_p9 }
  0x13   : > { %7225 = shalt.err (!%p7222_p11)
}
  0x14   : > { %s7226_s6 = scalar_lea.vmem %s176_s21, 49152  ;;  %p7234_p1 = scmp.lt.s32.totalorder %s176_s21, %s176_s21 }
  0x15   : > { %p7227_p12 = scmp.ne.s32.totalorder %s176_s21, %s7226_s6  ;;  %p7235_p4 = scmp.lt.s32.totalorder %s7226_s6, %s7226_s6 }
  0x17   : > { %p7229_p13 = pnand %p7227_p12, %p7215_p7  ;;  %p7236_p3 = por %p7235_p4, %p7234_p1 }
  0x19   : > { %p7230_p0 = pneg %p7229_p13 }
  0x1b   : > { %p7237_p2 = pnand %p7236_p3, %p7230_p0 }
  0x1d   : > { %7240 = shalt.err (!%p7237_p2)
}
  0x1e   : > { %s7262_s7 = smov 128   ;;  %s7263_s8 = smov 8  }
  0x1f   : > { %6993 = dma.hbm_to_vmem [thread:$0]  (!%p7344_p5), %s9708_s3, 49152, %s176_s21, [#allocation7], %s7262_s7, %s7262_s7, %s7263_s8  }
  0x20   : > { %p9725_p6 = scmp.ne.s32.totalorder %s9723_s22, 0 }
  0x21   : > { %p9726_p8 = scmp.eq.s32.totalorder (!%p9725_p6), %s7331_s19, 0 }
  0x22   : > { %202 = sbr.rel (%p9725_p6) target bundleno = 3324 (0xcfc), region = 40 }
  0x29   : > { %7250 = dma.done.wait (%p9726_p8), [#allocation7], 49152   ;;  %p9727_p7 = pmov %p9726_p8 }
  0x2a   : > { %v306_v0 = vlaneseq  ;;  %v7264_v1 = vmov 1966171168   ;;  %p230_p2 = scmp.lt.s32.totalorder %s7331_s19, 1  ;;  %s7266_s23 = smov 18   ;;  %vm555_vm0 = vcmask 130048   ;;  %vm390_vm1 = vcmask 15360  }
  0x2b   : > { %7252 = vsyncadd (%p9727_p7), [#allocation7], 4294918144  ;;  %v304_v2 = vunpack.c.l.s4 %v7264_v1  ;;  %v6525_v6 = vld.sshfl [vmem:[%s9706_s1] sm:$0x11 pattern:$0x75316420] }
  0x2c   : > { %v307_v3 = vshrl.u32 %v306_v0, 7  ;;  %s9734_s19 = smov (!%p230_p2, %s7331_s19), 1  ;;  %v302_v7 = vcombine.high %v6525_v6, %v6525_v6  ;;  %s7267_s24 = smov 16   ;;  %vm801_vm2 = vcmask 261120   ;;  %vm361_vm3 = vcmask 1039360  }
  0x2d   : > { %v305_v4 = vunpack.c.0.s8 %v304_v2  ;;  %s6785_s11 = sshll.u32 %s9734_s19, 4  ;;  %s6985_s17 = smul.u32 12, %s9734_s19  ;;  %vm606_vm4 = vcmask 146432   ;;  %vm596_vm5 = vcmask 908288   ;;  %vm852_vm6 = vcmask 277504  }
  0x2e   : > { %s7378_s16 = scalar_lea.vmem %s9710_s5, %s6785_s11  ;;  %v322_v10 = vsub.s32 0, %v307_v3  ;;  %s7265_s19 = smov 2   ;;  %vm575_vm7 = vcmask 916480   ;;  %vm410_vm8 = vcmask 1031168   ;;  %vm626_vm9 = vcmask 900096  }
  0x2f   : > { %v308_v5 = vsub.s32 %v305_v4, %v307_v3  ;;  %s7385_s22 = scalar_lea.vmem %s9705_s0, %s6985_s17  ;;  %s7268_s25 = smov 32   ;;  %v7274_v3 = vmov 0   ;;  %vm454_vm10 = vcmask 1043456   ;;  %vm821_vm11 = vcmask 785408  }
  0x30   : > { %v7392_v20 = vld [vmem:[%s7385_s22] sm:$0xff]  ;;  %v293_v28 = vld [vmem:[%s7385_s22 + $0x8] sm:$0xf]  ;;  %s7269_s26 = smov 34   ;;  %s7270_s27 = smov 127   ;;  %493 = vmatprep.mubr.bf16.mxu1 %v7274_v3  ;;  %707 = vmatprep.mubr.bf16.mxu0 %v7274_v3  ;;  %vm441_vm12 = vcmask 195584  }
  0x31   : > { %v309_v8 = vrot.slane %v6525_v6, %v308_v5  ;;  %v316_v9 = vrot.slane %v302_v7, %v308_v5  ;;  %v7407_v27 = vcombine.high %v7392_v20, %v7392_v20  ;;  %v6531_v29 = vcombine.low %v293_v28, %v293_v28  ;;  %v551_v31 = vld [vmem:[%s7385_s22 + $0x8] sm:$0xf]  ;;  %s7271_s28 = smov 111   ;;  %s7272_s29 = smov 112   ;;  %7046 = vset.pattern.permute.xlu1 %v7274_v3 }
  0x32   : > { %v7415_v30 = vcombine.low %v7392_v20, %v7392_v20  ;;  %v6550_v32 = vcombine.low %v551_v31, %v551_v31  ;;  %s7273_s30 = smov 126   ;;  %7047 = vset.pattern.permute.xlu0 %v7274_v3  ;;  %s9719_s6 = smov 96   ;;  %vm842_vm13 = vcmask 777216   ;;  %vm872_vm14 = vcmask 769024  }
  0x33   : > { %v368_v11 = vshrl.u32 %v309_v8, 16  ;;  %v318_v12 = vpack.i.b16 %v309_v8, %v309_v8  ;;  %v375_v14 = vshrl.u32 %v316_v9, 16  ;;  %v325_v16 = vpack.i.b16 %v316_v9, %v316_v9  ;;  %s9721_s7 = smov 110   ;;  %s9717_s8 = smov 95  }
  0x34   : > { %s9715_s9 = smov 94   ;;  %vm242_vm15 = vcmask 138240   ;;  %s9713_s10 = smov 17  }
  0x35   : > { %v369_v13 = vpack.i.b16 %v368_v11, %v368_v11  ;;  %v7380_v15 = vrot.slane %v318_v12, %v322_v10  ;;  %v376_v18 = vpack.i.b16 %v375_v14, %v375_v14  ;;  %v7389_v19 = vrot.slane %v325_v16, %v322_v10  ;;  %243 = vst.msk [vmem:[#allocation2] sm:$0xff] %vm242_vm15, %v7274_v3  ;;  %s7618_s11 = smov 0  }
  0x36   : > { %252 = vst.msk [vmem:[#allocation3] sm:$0xff] %vm242_vm15, %v7274_v3  ;;  %253 = vst.msk [vmem:[#allocation3 + $0x18] sm:$0xff] %vm242_vm15, %v7274_v3 }
  0x37   : > { %v7387_v17 = vrot.slane %v369_v13, %v322_v10  ;;  %v7394_v21 = vrot.slane %v376_v18, %v322_v10  ;;  %v6526_v22 = vcombine.low %v7380_v15, %v7389_v19  ;;  %v797_v10 = vld [vmem:[%s7385_s22 + $0x8] sm:$0xf]  ;;  %254 = vst.msk [vmem:[#allocation3 + $0x30] sm:$0xff] %vm242_vm15, %v7274_v3  ;;  %255 = vst.msk [vmem:[#allocation3 + $0x48] sm:$0xff] %vm242_vm15, %v7274_v3 }
  0x38   : > { %244 = vst.msk [vmem:[#allocation2 + $0x18] sm:$0xff] %vm242_vm15, %v7274_v3  ;;  %245 = vst.msk [vmem:[#allocation2 + $0x30] sm:$0xff] %vm242_vm15, %v7274_v3 }
  0x39   : > { %v6532_v23 = vcombine.low %v7387_v17, %v7394_v21  ;;  %v337_v24 = vmul.bf16 %v6526_v22, %v7392_v20  ;;  %246 = vst.msk [vmem:[#allocation2 + $0x48] sm:$0xff] %vm242_vm15, %v7274_v3 }
  0x3b   : > { %387 = vrot.lane.b32.xlu0 %v6532_v23, %s7265_s19  ;;  %603 = vrot.lane.b32.xlu1 %v6532_v23, %s7266_s23  ;;  %v6527_v25 = vcombine.low %v337_v24, %v337_v24  ;;  %v6528_v26 = vcombine.high %v337_v24, %v337_v24 }
  0x3d   : > { %345 = vst [vmem:[#allocation4] sm:$0xf] %v6527_v25  ;;  %346 = vst [vmem:[#allocation4 + $0x8] sm:$0xf] %v6528_v26 }
  0x3f   : > { %552 = vrot.lane.b32.xlu0 %v6526_v22, %s7267_s24  ;;  %798 = vrot.lane.b32.xlu1 %v6526_v22, %s7268_s25 }
  0x43   : > { %849 = vrot.lane.b32.xlu0 %v6532_v23, %s7269_s26  ;;  %357 = vrot.lane.b32.xlu1 %v7407_v27, %s7270_s27  ;;  %v6568_v23 = vcombine.low %v797_v10, %v797_v10 }
  0x47   : > { %359 = vrot.lane.b32.xlu0 %v6531_v29, %s7270_s27  ;;  %355 = vrot.lane.b32.xlu1 %v7415_v30, %s7270_s27  ;;  %v285_v29 = vld [vmem:[%s9709_s4 + $0x8] sm:$0xff] }
  0x4b   : > { %594 = vrot.lane.b32.xlu0 %v6550_v32, %s7271_s28  ;;  %592 = vrot.lane.b32.xlu1 %v7407_v27, %s7271_s28  ;;  %v287_v32 = vld [vmem:[%s9709_s4 + $0x18] sm:$0xff] }
  0x4f   : > { %590 = vrot.lane.b32.xlu0 %v7415_v30, %s7271_s28 }
  0xad   : > { %v388_v33 = vpop.permute.xlu0 %387  ;;  %v604_v34 = vpop.permute.xlu1 %603 }
  0xae   : > { %v389_v37 = vrot.slane %v388_v33, 4  ;;  %v605_v56 = vrot.slane %v604_v34, 4 }
  0xb0   : > { %v395_v45 = vmul.bf16 %v389_v37, %v293_v28  ;;  %v391_v47 = vsel %vm390_vm1, %v389_v37, %v388_v33  ;;  %v607_v62 = vsel %vm606_vm4, %v605_v56, %v604_v34  ;;  %v611_v63 = vmul.bf16 %v605_v56, %v551_v31  ;;  %v290_v33 = vld [vmem:[%s9709_s4 + $0x30] sm:$0xff]  ;;  %v289_v34 = vld [vmem:[%s9709_s4 + $0x28] sm:$0xff] }
  0xb1   : > { %v553_v35 = vpop.permute.xlu0 %552  ;;  %v7426_v36 = vpop.permute.xlu1 %798  ;;  %v394_v52 = vmul.bf16 %v391_v47, %v7392_v20  ;;  %v610_v5 = vmul.bf16 %v607_v62, %v7392_v20 }
  0xb2   : > { %v554_v38 = vrot.slane %v553_v35, 4  ;;  %v800_v42 = vrot.slane %v7426_v36, 4  ;;  %v6535_v53 = vcombine.low %v395_v45, %v395_v45  ;;  %v6553_v9 = vcombine.low %v611_v63, %v611_v63 }
  0xb3   : > { %v6533_v61 = vcombine.low %v394_v52, %v394_v52  ;;  %v6534_v0 = vcombine.high %v394_v52, %v394_v52  ;;  %v6552_v12 = vcombine.high %v610_v5, %v610_v5  ;;  %v6551_v14 = vcombine.low %v610_v5, %v610_v5  ;;  %v7054_v5 = vld [vmem:[%s9707_s2 + $0x8] sm:$0xff]  }
  0xb4   : > { %v556_v39 = vsel %vm555_vm0, %v554_v38, %v553_v35  ;;  %v560_v40 = vmul.bf16 %v554_v38, %v551_v31  ;;  %v802_v49 = vsel %vm801_vm2, %v800_v42, %v7426_v36  ;;  %v806_v13 = vmul.bf16 %v800_v42, %v797_v10  ;;  %v288_v31 = vld [vmem:[%s9709_s4 + $0x20] sm:$0xff]  ;;  %v291_v35 = vld [vmem:[%s9709_s4 + $0x38] sm:$0xff] }
  0xb5   : > { %v559_v41 = vmul.bf16 %v556_v39, %v7392_v20  ;;  %v7431_v43 = vpop.permute.xlu0 %849  ;;  %v358_v44 = vpop.permute.xlu1 %357  ;;  %v805_v58 = vmul.bf16 %v802_v49, %v7392_v20 }
  0xb6   : > { %v6547_v46 = vcombine.low %v560_v40, %v560_v40  ;;  %v851_v11 = vrot.slane %v7431_v43, 4  ;;  %v6565_v18 = vcombine.low %v806_v13, %v806_v13 }
  0xb7   : > { %v6546_v48 = vcombine.high %v559_v41, %v559_v41  ;;  %v6545_v57 = vcombine.low %v559_v41, %v559_v41  ;;  %v6564_v1 = vcombine.high %v805_v58, %v805_v58  ;;  %v6563_v24 = vcombine.low %v805_v58, %v805_v58 }
  0xb8   : > { %573 = vrot.lane.b32.xlu0 %v6547_v46, %s7272_s29  ;;  %v853_v16 = vsel %vm852_vm6, %v851_v11, %v7431_v43  ;;  %v857_v26 = vmul.bf16 %v851_v11, %v797_v10 }
  0xb9   : > { %571 = vrot.lane.b32.xlu1 %v6546_v48, %s7272_s29  ;;  %v360_v50 = vpop.permute.xlu0 %359  ;;  %v356_v51 = vpop.permute.xlu1 %355  ;;  %v856_v22 = vmul.bf16 %v853_v16, %v7392_v20  ;;  %v284_v20 = vld [vmem:[%s9709_s4] sm:$0xff]  ;;  %v7056_v16 = vld [vmem:[%s9707_s2 + $0x10] sm:$0xff]  }
  0xba   : > { %v363_v54 = vsel %vm361_vm3, %v358_v44, %v360_v50  ;;  %v362_v55 = vsel %vm361_vm3, %v356_v51, %v358_v44  ;;  %v6571_v28 = vcombine.low %v857_v26, %v857_v26  ;;  %v7058_v26 = vld [vmem:[%s9707_s2 + $0x18] sm:$0xff]  }
  0xbb   : > { %367 = vst [vmem:[#allocation4 + $0x8] sm:$0xf0] %v363_v54  ;;  %366 = vst [vmem:[#allocation4] sm:$0xf0] %v362_v55  ;;  %v6569_v25 = vcombine.low %v856_v22, %v856_v22 }
  0xbc   : > { %408 = vrot.lane.b32.xlu0 %v6535_v53, %s7273_s30 }
  0xbd   : > { %569 = vrot.lane.b32.xlu1 %v6545_v57, %s7272_s29  ;;  %v595_v59 = vpop.permute.xlu0 %594  ;;  %v593_v60 = vpop.permute.xlu1 %592  ;;  %v7053_v57 = vld [vmem:[%s9707_s2] sm:$0xff]  }
  0xbe   : > { %v598_v2 = vsel %vm596_vm5, %v593_v60, %v595_v59 }
  0xc0   : > { %404 = vrot.lane.b32.xlu0 %v6533_v61, %s7273_s30 }
  0xc1   : > { %406 = vrot.lane.b32.xlu1 %v6534_v0, %s7273_s30  ;;  %v591_v4 = vpop.permute.xlu0 %590 }
  0xc2   : > { %v418_v6 = vld [vmem:[#allocation4 + $0x8] sm:$0xff]  ;;  %v417_v7 = vld [vmem:[#allocation4] sm:$0xff]  ;;  %v597_v8 = vsel %vm596_vm5, %v591_v4, %v593_v60 }
  0xc3   : > { %602 = vst [vmem:[#allocation4 + $0x8] sm:$0xf0] %v598_v2  ;;  %601 = vst [vmem:[#allocation4] sm:$0xf0] %v597_v8  ;;  %461 = vmatprep.subr.bf16.mxu1 %v418_v6  ;;  %v7055_v6 = vld [vmem:[%s9707_s2 + $0x20] sm:$0xff]  }
  0xc4   : > { %817 = vrot.lane.b32.xlu0 %v6564_v1, %s9719_s6  ;;  %462 = vmatpush1.bf16.msra.mxu1 %v417_v7 }
  0xc5   : > { %624 = vrot.lane.b32.xlu1 %v6553_v9, %s9721_s7 }
  0xc8   : > { %622 = vrot.lane.b32.xlu0 %v6552_v12, %s9721_s7 }
  0xc9   : > { %620 = vrot.lane.b32.xlu1 %v6551_v14, %s9721_s7 }
  0xcc   : > { %838 = vrot.lane.b32.xlu0 %v7407_v27, %s9717_s8  ;;  %v6570_v27 = vcombine.high %v856_v22, %v856_v22 }
  0xcd   : > { %819 = vrot.lane.b32.xlu1 %v6565_v18, %s9719_s6  ;;  %v7057_v18 = vld [vmem:[%s9707_s2 + $0x28] sm:$0xff]  }
  0xd0   : > { %815 = vrot.lane.b32.xlu0 %v6563_v24, %s9719_s6 }
  0xd1   : > { %840 = vrot.lane.b32.xlu1 %v6568_v23, %s9717_s8 }
  0xd4   : > { %866 = vrot.lane.b32.xlu0 %v6569_v25, %s9715_s9 }
  0xd5   : > { %836 = vrot.lane.b32.xlu1 %v7415_v30, %s9717_s8  ;;  %v286_v30 = vld [vmem:[%s9709_s4 + $0x10] sm:$0xff] }
  0xd8   : > { %870 = vrot.lane.b32.xlu0 %v6571_v28, %s9715_s9  ;;  %v7059_v28 = vld [vmem:[%s9707_s2 + $0x40] sm:$0xff]  }
  0xd9   : > { %868 = vrot.lane.b32.xlu1 %v6570_v27, %s9715_s9  ;;  %v7060_v27 = vld [vmem:[%s9707_s2 + $0x30] sm:$0xff]  }
  0xdc   : > { %1065 = vperm.xlu0 %7047, %v285_v29   ;;  %v7062_v29 = vld [vmem:[%s9707_s2 + $0x38] sm:$0xff]  }
  0xdd   : > { %1060 = vperm.xlu1 %7046, %v284_v20   ;;  %v7061_v20 = vld [vmem:[%s9707_s2 + $0x48] sm:$0xff]  }
  0xe0   : > { %1080 = vperm.xlu0 %7047, %v288_v31   ;;  %v7064_v31 = vld [vmem:[%s9707_s2 + $0x58] sm:$0xff]  }
  0xe1   : > { %1070 = vperm.xlu1 %7046, %v286_v30   ;;  %v7063_v30 = vld [vmem:[%s9707_s2 + $0x50] sm:$0xff]  }
  0xe4   : > { %1090 = vperm.xlu0 %7047, %v290_v33  }
  0xe5   : > { %1075 = vperm.xlu1 %7046, %v287_v32  }
  0xe9   : > { %1085 = vperm.xlu1 %7046, %v289_v34  }
  0xed   : > { %1095 = vperm.xlu1 %7046, %v291_v35  }
 0x12a   : > { %v574_v36 = vpop.permute.xlu0 %573 }
 0x12b   : > { %v572_v37 = vpop.permute.xlu1 %571 }
 0x12c   : > { %v577_v38 = vsel %vm575_vm7, %v572_v37, %v574_v36 }
 0x12d   : > { %581 = vst [vmem:[#allocation4 + $0x8] sm:$0xf] %v577_v38 }
 0x12e   : > { %v409_v39 = vpop.permute.xlu0 %408 }
 0x12f   : > { %v570_v40 = vpop.permute.xlu1 %569 }
 0x130   : > { %v576_v41 = vsel %vm575_vm7, %v570_v40, %v572_v37 }
 0x131   : > { %580 = vst [vmem:[#allocation4] sm:$0xf] %v576_v41 }
 0x132   : > { %v405_v42 = vpop.permute.xlu0 %404 }
 0x133   : > { %v407_v43 = vpop.permute.xlu1 %406 }
 0x134   : > { %v411_v44 = vsel %vm410_vm8, %v405_v42, %v407_v43  ;;  %v412_v45 = vsel %vm410_vm8, %v407_v43, %v409_v39  ;;  %v634_v46 = vld [vmem:[#allocation4 + $0x8] sm:$0xff] }
 0x135   : > { %415 = vst [vmem:[#allocation4 + $0x10] sm:$0xf] %v411_v44  ;;  %416 = vst [vmem:[#allocation4 + $0x18] sm:$0xf] %v412_v45  ;;  %675 = vmatprep.subr.bf16.mxu0 %v634_v46 }
 0x136   : > { %v818_v47 = vpop.permute.xlu0 %817 }
 0x137   : > { %v625_v48 = vpop.permute.xlu1 %624 }
 0x138   : > { %v633_v49 = vld [vmem:[#allocation4] sm:$0xff] }
 0x139   : > { %676 = vmatpush1.bf16.msra.mxu0 %v633_v49 }
 0x13a   : > { %v623_v50 = vpop.permute.xlu0 %622 }
 0x13b   : > { %v628_v51 = vsel %vm626_vm9, %v623_v50, %v625_v48  ;;  %v621_v52 = vpop.permute.xlu1 %620 }
 0x13c   : > { %v627_v53 = vsel %vm626_vm9, %v621_v52, %v623_v50  ;;  %v420_v54 = vld [vmem:[#allocation4 + $0x18] sm:$0xf]  ;;  %v419_v55 = vld [vmem:[#allocation4 + $0x10] sm:$0xf] }
 0x13d   : > { %6540 = vmatprep.subr.msk.bf16.mxu1 %vm454_vm10, %v420_v54  ;;  %632 = vst [vmem:[#allocation4 + $0x18] sm:$0xf] %v628_v51  ;;  %v456_v56 = vsel %vm454_vm10, %v419_v55, 0  ;;  %631 = vst [vmem:[#allocation4 + $0x10] sm:$0xf] %v627_v53 }
 0x13e   : > { %v839_v58 = vpop.permute.xlu0 %838  ;;  %464 = vmatpush1.bf16.msra.mxu1 %v456_v56 }
 0x13f   : > { %v820_v59 = vpop.permute.xlu1 %819  ;;  %6789 = vmatprep.subr.bf16.mxu1 %v634_v46 }
 0x140   : > { %v823_v60 = vsel %vm821_vm11, %v818_v47, %v820_v59 }
 0x141   : > { %827 = vst [vmem:[#allocation4 + $0x8] sm:$0xf] %v823_v60  ;;  %6541 = vmatmul.mubr.msk.bf16.vlgmr.msra.gmra.mrb[0].mxu1 %vm441_vm12, %v7053_v57 }
 0x142   : > { %v816_v61 = vpop.permute.xlu0 %815  ;;  %6791 = vmatpush1.bf16.msra.mxu1 %v633_v49  ;;  %503 = vmatprep.mubr.bf16.mxu1 %v7274_v3 }
 0x143   : > { %v822_v62 = vsel %vm821_vm11, %v816_v61, %v818_v47  ;;  %v841_v63 = vpop.permute.xlu1 %840 }
 0x144   : > { %826 = vst [vmem:[#allocation4] sm:$0xf] %v822_v62  ;;  %v844_v0 = vsel %vm842_vm13, %v839_v58, %v841_v63  ;;  %v636_v1 = vld [vmem:[#allocation4 + $0x18] sm:$0xf]  ;;  %v635_v2 = vld [vmem:[#allocation4 + $0x10] sm:$0xf] }
 0x145   : > { %848 = vst [vmem:[#allocation4 + $0x8] sm:$0xf0] %v844_v0  ;;  %6558 = vmatprep.subr.msk.bf16.mxu0 %vm454_vm10, %v636_v1  ;;  %6790 = vmatprep.subr.msk.bf16.mxu1 %vm454_vm10, %v636_v1  ;;  %v670_v4 = vsel %vm454_vm10, %v635_v2, 0 }
 0x146   : > { %v867_v7 = vpop.permute.xlu0 %866  ;;  %678 = vmatpush1.bf16.msra.mxu0 %v670_v4  ;;  %6792 = vmatpush1.bf16.msra.mxu1 %v670_v4 }
 0x147   : > { %v837_v8 = vpop.permute.xlu1 %836 }
 0x148   : > { %v843_v9 = vsel %vm842_vm13, %v837_v8, %v839_v58 }
 0x149   : > { %847 = vst [vmem:[#allocation4] sm:$0xf0] %v843_v9  ;;  %6542 = vmatmul.mubr.msk.bf16.gmra.mrb[4].mxu1 %vm441_vm12, %v7054_v5  ;;  %6559 = vmatmul.mubr.msk.bf16.vlgmr.msra.gmra.mrb[0].mxu0 %vm441_vm12, %v7055_v6 }
 0x14a   : > { %v871_v10 = vpop.permute.xlu0 %870  ;;  %513 = vmatprep.mubr.bf16.mxu1 %v7274_v3  ;;  %717 = vmatprep.mubr.bf16.mxu0 %v7274_v3 }
 0x14b   : > { %v869_v11 = vpop.permute.xlu1 %868 }
 0x14c   : > { %v873_v12 = vsel %vm872_vm14, %v867_v7, %v869_v11  ;;  %v874_v13 = vsel %vm872_vm14, %v869_v11, %v871_v10  ;;  %v880_v14 = vld [vmem:[#allocation4 + $0x8] sm:$0xff] }
 0x14d   : > { %877 = vst [vmem:[#allocation4 + $0x10] sm:$0xf] %v873_v12  ;;  %878 = vst [vmem:[#allocation4 + $0x18] sm:$0xf] %v874_v13  ;;  %921 = vmatprep.subr.bf16.mxu0 %v880_v14 }
 0x150   : > { %v879_v22 = vld [vmem:[#allocation4] sm:$0xff] }
 0x151   : > { %6543 = vmatmul.mubr.msk.bf16.gmra.mrb[8].mxu1 %vm441_vm12, %v7056_v16  ;;  %6560 = vmatmul.mubr.msk.bf16.gmra.mrb[4].mxu0 %vm441_vm12, %v7057_v18 }
 0x152   : > { %922 = vmatpush1.bf16.msra.mxu0 %v879_v22  ;;  %523 = vmatprep.mubr.bf16.mxu1 %v7274_v3 }
 0x153   : > { %953 = vmatprep.mubr.bf16.mxu0 %v7274_v3 }
 0x154   : > { %v882_v23 = vld [vmem:[#allocation4 + $0x18] sm:$0xf]  ;;  %v881_v24 = vld [vmem:[#allocation4 + $0x10] sm:$0xf] }
 0x155   : > { %6576 = vmatprep.subr.msk.bf16.mxu0 %vm454_vm10, %v882_v23  ;;  %v916_v25 = vsel %vm454_vm10, %v881_v24, 0  ;;  %vm247_vm10 = vcmask 277640  }
 0x156   : > { %924 = vmatpush1.bf16.msra.mxu0 %v916_v25  ;;  %248 = vst.msk [vmem:[#allocation2 + $0x10] sm:$0xff] %vm247_vm10, %v7274_v3  ;;  %256 = vst.msk [vmem:[#allocation3 + $0x10] sm:$0xff] %vm247_vm10, %v7274_v3 }
 0x157   : > { %257 = vst.msk [vmem:[#allocation3 + $0x28] sm:$0xff] %vm247_vm10, %v7274_v3  ;;  %258 = vst.msk [vmem:[#allocation3 + $0x40] sm:$0xff] %vm247_vm10, %v7274_v3 }
 0x158   : > { %259 = vst.msk [vmem:[#allocation3 + $0x58] sm:$0xff] %vm247_vm10, %v7274_v3  ;;  %249 = vst.msk [vmem:[#allocation2 + $0x28] sm:$0xff] %vm247_vm10, %v7274_v3 }
 0x159   : > { %6544 = vmatmul.mubr.msk.bf16.gmra.mrb[12].mxu1 %vm441_vm12, %v7058_v26  ;;  %6577 = vmatmul.mubr.msk.bf16.vlgmr.msra.gmra.mrb[0].mxu0 %vm441_vm12, %v7059_v28  ;;  %250 = vst.msk [vmem:[#allocation2 + $0x40] sm:$0xff] %vm247_vm10, %v7274_v3  ;;  %251 = vst.msk [vmem:[#allocation2 + $0x58] sm:$0xff] %vm247_vm10, %v7274_v3 }
 0x15a   : > { %727 = vmatprep.mubr.bf16.mxu1 %v7274_v3  ;;  %963 = vmatprep.mubr.bf16.mxu0 %v7274_v3 }
 0x15b   : > { %v1066_v46 = vpop.permute.xlu0 %1065 }
 0x15c   : > { %v1061_v41 = vpop.permute.xlu1 %1060 }
 0x15f   : > { %v1081_v22 = vpop.permute.xlu0 %1080 }
 0x160   : > { %v1071_v54 = vpop.permute.xlu1 %1070 }
 0x161   : > { %6561 = vmatmul.mubr.msk.bf16.vlgmr.msra.gmra.mrb[8].mxu1 %vm441_vm12, %v7060_v27  ;;  %6578 = vmatmul.mubr.msk.bf16.gmra.mrb[4].mxu0 %vm441_vm12, %v7061_v20 }
 0x162   : > { %737 = vmatprep.mubr.bf16.mxu1 %v7274_v3  ;;  %973 = vmatprep.mubr.bf16.mxu0 %v7274_v3 }
 0x164   : > { %v1076_v12 = vpop.permute.xlu1 %1075 }
 0x169   : > { %6562 = vmatmul.mubr.msk.bf16.gmra.mrb[12].mxu1 %vm441_vm12, %v7062_v29  ;;  %6579 = vmatmul.mubr.msk.bf16.gmra.mrb[8].mxu0 %vm441_vm12, %v7063_v30 }
 0x16a   : > { %983 = vmatprep.mubr.bf16.mxu0 %v7274_v3 }
 0x171   : > { %6580 = vmatmul.mubr.msk.bf16.gmra.mrb[12].mxu0 %vm441_vm12, %v7064_v31  ;;  %vm1179_vm12 = vcmask 1047688  }
 0x214   : > { %v495_v32 = vpop.f32.mrb[0].mxu1 }
 0x215   : > { %v497_v33 = vpop.f32.mrb[1].mxu1 }
 0x216   : > { %v499_v34 = vpop.f32.mrb[2].mxu1 }
 0x217   : > { %v501_v35 = vpop.f32.mrb[3].mxu1 }
 0x21c   : > { %v505_v36 = vpop.f32.mrb[4].mxu1 }
 0x21d   : > { %v507_v37 = vpop.f32.mrb[5].mxu1 }
 0x21e   : > { %v509_v38 = vpop.f32.mrb[6].mxu1 }
 0x21f   : > { %v511_v39 = vpop.f32.mrb[7].mxu1 }
 0x22c   : > { %v955_v40 = vpop.f32.mrb[0].mxu0 }
 0x22d   : > { %v6795_v42 = vadd.f32 %v955_v40, %v495_v32  ;;  %v957_v43 = vpop.f32.mrb[1].mxu0 }
 0x22e   : > { %v6798_v44 = vadd.f32 %v957_v43, %v497_v33  ;;  %v959_v45 = vpop.f32.mrb[2].mxu0 }
 0x22f   : > { %v6801_v47 = vadd.f32 %v959_v45, %v499_v34  ;;  %v961_v48 = vpop.f32.mrb[3].mxu0  ;;  %v1098_v49 = vadd.f32 %v6795_v42, %v1061_v41 }
 0x230   : > { %v6804_v50 = vadd.f32 %v961_v48, %v501_v35  ;;  %v1099_v51 = vadd.f32 %v6798_v44, %v1061_v41 }
 0x231   : > { %v1100_v52 = vadd.f32 %v6801_v47, %v1066_v46  ;;  %v1114_v55 = vmax.f32 %v1098_v49, 0.0 }
 0x232   : > { %v1101_v53 = vadd.f32 %v6804_v50, %v1066_v46  ;;  %v1115_v59 = vmax.f32 %v1099_v51, 0.0 }
 0x233   : > { %v1116_v56 = vmax.f32 %v1100_v52, 0.0 }
 0x234   : > { %v729_v57 = vpop.f32.mrb[8].mxu1  ;;  %v965_v58 = vpop.f32.mrb[4].mxu0  ;;  %v1117_v60 = vmax.f32 %v1101_v53, 0.0 }
 0x235   : > { %v6807_v61 = vadd.f32 %v965_v58, %v505_v36  ;;  %v731_v62 = vpop.f32.mrb[9].mxu1  ;;  %v967_v63 = vpop.f32.mrb[5].mxu0  ;;  %v1130_v0 = vpack.c.bf16 %v1116_v56, %v1114_v55 }
 0x236   : > { %v6810_v1 = vadd.f32 %v967_v63, %v507_v37  ;;  %v733_v2 = vpop.f32.mrb[10].mxu1  ;;  %v969_v4 = vpop.f32.mrb[6].mxu0  ;;  %v1131_v5 = vpack.c.bf16 %v1117_v60, %v1115_v59 }
 0x237   : > { %v6813_v6 = vadd.f32 %v969_v4, %v509_v38  ;;  %v735_v7 = vpop.f32.mrb[11].mxu1  ;;  %v971_v8 = vpop.f32.mrb[7].mxu0  ;;  %v1102_v9 = vadd.f32 %v6807_v61, %v1071_v54  ;;  %1146 = vrot.lane.b32.xlu0 %v1130_v0, %s9713_s10 }
 0x238   : > { %v6816_v10 = vadd.f32 %v971_v8, %v511_v39  ;;  %v1103_v11 = vadd.f32 %v6810_v1, %v1071_v54  ;;  %1148 = vrot.lane.b32.xlu1 %v1131_v5, %s9713_s10  ;;  %v1086_v39 = vpop.permute.xlu1 %1085  ;;  %v1091_v53 = vpop.permute.xlu0 %1090 }
 0x239   : > { %v1104_v13 = vadd.f32 %v6813_v6, %v1076_v12  ;;  %v1118_v16 = vmax.f32 %v1102_v9, 0.0 }
 0x23a   : > { %v1105_v14 = vadd.f32 %v6816_v10, %v1076_v12  ;;  %v1119_v23 = vmax.f32 %v1103_v11, 0.0 }
 0x23b   : > { %v1120_v18 = vmax.f32 %v1104_v13, 0.0 }
 0x23c   : > { %v739_v24 = vpop.f32.mrb[12].mxu1  ;;  %v975_v25 = vpop.f32.mrb[8].mxu0  ;;  %v1121_v26 = vmax.f32 %v1105_v14, 0.0 }
 0x23d   : > { %v6819_v28 = vadd.f32 %v975_v25, %v729_v57  ;;  %v741_v27 = vpop.f32.mrb[13].mxu1  ;;  %v977_v20 = vpop.f32.mrb[9].mxu0  ;;  %v1132_v29 = vpack.c.bf16 %v1120_v18, %v1118_v16 }
 0x23e   : > { %v6822_v30 = vadd.f32 %v977_v20, %v731_v62  ;;  %v743_v31 = vpop.f32.mrb[14].mxu1  ;;  %v979_v32 = vpop.f32.mrb[10].mxu0  ;;  %v1133_v33 = vpack.c.bf16 %v1121_v26, %v1119_v23 }
 0x23f   : > { %v6825_v34 = vadd.f32 %v979_v32, %v733_v2  ;;  %v981_v35 = vpop.f32.mrb[11].mxu0  ;;  %v745_v36 = vpop.f32.mrb[15].mxu1  ;;  %v1106_v37 = vadd.f32 %v6819_v28, %v1081_v22  ;;  %1150 = vrot.lane.b32.xlu0 %v1132_v29, %s9713_s10 }
 0x240   : > { %v6828_v38 = vadd.f32 %v981_v35, %v735_v7  ;;  %v1107_v40 = vadd.f32 %v6822_v30, %v1081_v22  ;;  %1152 = vrot.lane.b32.xlu1 %v1133_v33, %s9713_s10  ;;  %v1096_v59 = vpop.permute.xlu1 %1095 }
 0x241   : > { %v1108_v41 = vadd.f32 %v6825_v34, %v1086_v39  ;;  %v1122_v44 = vmax.f32 %v1106_v37, 0.0 }
 0x242   : > { %v1109_v42 = vadd.f32 %v6828_v38, %v1086_v39  ;;  %v1123_v47 = vmax.f32 %v1107_v40, 0.0 }
 0x243   : > { %v1124_v43 = vmax.f32 %v1108_v41, 0.0 }
 0x244   : > { %v985_v45 = vpop.f32.mrb[12].mxu0  ;;  %v1125_v46 = vmax.f32 %v1109_v42, 0.0 }
 0x245   : > { %v6831_v48 = vadd.f32 %v985_v45, %v739_v24  ;;  %v987_v49 = vpop.f32.mrb[13].mxu0  ;;  %v1134_v50 = vpack.c.bf16 %v1124_v43, %v1122_v44 }
 0x246   : > { %v6834_v51 = vadd.f32 %v987_v49, %v741_v27  ;;  %v989_v52 = vpop.f32.mrb[14].mxu0  ;;  %v1135_v54 = vpack.c.bf16 %v1125_v46, %v1123_v47 }
 0x247   : > { %v6837_v55 = vadd.f32 %v989_v52, %v743_v31  ;;  %v991_v56 = vpop.f32.mrb[15].mxu0  ;;  %v1110_v57 = vadd.f32 %v6831_v48, %v1091_v53  ;;  %1154 = vrot.lane.b32.xlu0 %v1134_v50, %s9713_s10 }
 0x248   : > { %v6840_v58 = vadd.f32 %v991_v56, %v745_v36  ;;  %v1111_v60 = vadd.f32 %v6834_v51, %v1091_v53  ;;  %1156 = vrot.lane.b32.xlu1 %v1135_v54, %s9713_s10 }
 0x249   : > { %v1112_v61 = vadd.f32 %v6837_v55, %v1096_v59  ;;  %v1126_v0 = vmax.f32 %v1110_v57, 0.0 }
 0x24a   : > { %v1113_v62 = vadd.f32 %v6840_v58, %v1096_v59  ;;  %v1127_v2 = vmax.f32 %v1111_v60, 0.0 }
 0x24b   : > { %v1128_v63 = vmax.f32 %v1112_v61, 0.0 }
 0x24c   : > { %v1129_v1 = vmax.f32 %v1113_v62, 0.0 }
 0x24d   : > { %v1136_v4 = vpack.c.bf16 %v1128_v63, %v1126_v0 }
 0x24e   : > { %v1137_v5 = vpack.c.bf16 %v1129_v1, %v1127_v2 }
 0x24f   : > { %1158 = vrot.lane.b32.xlu0 %v1136_v4, %s9713_s10 }
 0x250   : > { %1160 = vrot.lane.b32.xlu1 %v1137_v5, %s9713_s10 }
 0x2a9   : > { %v1147_v6 = vpop.permute.xlu0 %1146 }
 0x2aa   : > { %1180 = vst.msk [vmem:[#allocation2] sm:$0xff] %vm1179_vm12, %v1147_v6  ;;  %v1149_v7 = vpop.permute.xlu1 %1148 }
 0x2ab   : > { %v1163_v8 = vsel %vm242_vm15, %v1147_v6, %v1149_v7  ;;  %1182 = vst.msk [vmem:[#allocation2 + $0x10] sm:$0xff] %vm242_vm15, %v1149_v7 }
 0x2ac   : > { %1181 = vst [vmem:[#allocation2 + $0x8] sm:$0xff] %v1163_v8 }
 0x2b1   : > { %v1151_v9 = vpop.permute.xlu0 %1150 }
 0x2b2   : > { %1183 = vst.msk [vmem:[#allocation2 + $0x18] sm:$0xff] %vm1179_vm12, %v1151_v9  ;;  %v1153_v10 = vpop.permute.xlu1 %1152 }
 0x2b3   : > { %v1164_v11 = vsel %vm242_vm15, %v1151_v9, %v1153_v10  ;;  %1185 = vst.msk [vmem:[#allocation2 + $0x28] sm:$0xff] %vm242_vm15, %v1153_v10 }
 0x2b4   : > { %1184 = vst [vmem:[#allocation2 + $0x20] sm:$0xff] %v1164_v11 }
 0x2b9   : > { %v1155_v12 = vpop.permute.xlu0 %1154 }
 0x2ba   : > { %1186 = vst.msk [vmem:[#allocation2 + $0x30] sm:$0xff] %vm1179_vm12, %v1155_v12  ;;  %v1157_v13 = vpop.permute.xlu1 %1156 }
 0x2bb   : > { %v1165_v14 = vsel %vm242_vm15, %v1155_v12, %v1157_v13  ;;  %1188 = vst.msk [vmem:[#allocation2 + $0x40] sm:$0xff] %vm242_vm15, %v1157_v13 }
 0x2bc   : > { %1187 = vst [vmem:[#allocation2 + $0x38] sm:$0xff] %v1165_v14 }
 0x2c1   : > { %v1159_v16 = vpop.permute.xlu0 %1158 }
 0x2c2   : > { %1189 = vst.msk [vmem:[#allocation2 + $0x48] sm:$0xff] %vm1179_vm12, %v1159_v16  ;;  %v1161_v18 = vpop.permute.xlu1 %1160 }
 0x2c3   : > { %v1166_v22 = vsel %vm242_vm15, %v1159_v16, %v1161_v18  ;;  %1191 = vst.msk [vmem:[#allocation2 + $0x58] sm:$0xff] %vm242_vm15, %v1161_v18 }
 0x2c4   : > { %1190 = vst [vmem:[#allocation2 + $0x50] sm:$0xff] %v1166_v22 }
 0x2c5 LB: >> { %v7623_v23 = vld [vmem:[#allocation2 + $0x8] sm:$0xff]  ;;  %v7625_v24 = vld [vmem:[#allocation2] sm:$0xff]  ;;  %s7280_s12 = smov 2   ;;  %s7281_s13 = smov 16   ;;  %v7637_v20 = vld [vmem:[#allocation2 + $0x18] sm:$0xff]  ;;  %vm1465_vm10 = vcmask 523264   ;;  %s7259_s11 = sphi %s7618_s11, %s1197_s11  }
 0x2c6   : >> { %1325 = vrot.lane.b32.xlu0 %v7387_v17, %s7280_s12  ;;  %1579 = vrot.lane.b32.xlu1 %v7380_v15, %s7281_s13  ;;  %v1250_v25 = vmul.bf16 %v7623_v23, %v7389_v19  ;;  %v1249_v26 = vmul.bf16 %v7625_v24, %v7380_v15  ;;  %v7633_v28 = vld [vmem:[#allocation2 + $0x20] sm:$0xff]  ;;  %v1251_v29 = vmul.bf16 %v7637_v20, %v7380_v15  ;;  %v7643_v30 = vld [vmem:[#allocation2 + $0x38] sm:$0xff]  ;;  %v7645_v31 = vld [vmem:[#allocation2 + $0x10] sm:$0xff]  ;;  %s7282_s14 = smov 127   ;;  %s7283_s15 = smov 18  }
 0x2c7   : >> { %v1252_v27 = vmul.bf16 %v7633_v28, %v7389_v19  ;;  %v1254_v32 = vmul.bf16 %v7643_v30, %v7389_v19  ;;  %v7649_v33 = vld [vmem:[#allocation2 + $0x30] sm:$0xff]  ;;  %v7671_v39 = vld [vmem:[#allocation2 + $0x28] sm:$0xff]  ;;  %v7677_v40 = vld [vmem:[#allocation2 + $0x40] sm:$0xff]  ;;  %s7284_s17 = smov 32   ;;  %s7285_s20 = smov 111  }
 0x2c8   : >> { %1478 = vmatprep.subr.bf16.mxu0 %v1250_v25  ;;  %v1253_v34 = vmul.bf16 %v7649_v33, %v7380_v15  ;;  %s7286_s21 = smov 34   ;;  %s7287_s22 = smov 126  }
 0x2c9   : >> { %1479 = vmatpush1.bf16.msra.mxu0 %v1249_v26  ;;  %v7661_v37 = vld [vmem:[#allocation2 + $0x48] sm:$0xff]  ;;  %s7292_s10 = smov 94   ;;  %s6787_s9 = sshll.u32 %s7259_s11, 7 }
 0x2ca   : >> { %1327 = vrot.lane.b32.xlu0 %v7394_v21, %s7280_s12  ;;  %1581 = vrot.lane.b32.xlu1 %v7389_v19, %s7281_s13  ;;  %v1255_v38 = vmul.bf16 %v7661_v37, %v7380_v15  ;;  %v7687_v41 = vld [vmem:[#allocation2 + $0x58] sm:$0xff]  ;;  %s7288_s12 = smov 112   ;;  %s6786_s13 = smul.u32 384, %s7259_s11 }
 0x2cb   : >> { %1480 = vmatprep.subr.bf16.mxu0 %v1252_v27  ;;  %v7657_v35 = vld [vmem:[#allocation2 + $0x50] sm:$0xff]  ;;  %s8028_s7 = scalar_lea.vmem %s9709_s4, %s6787_s9  ;;  %s7294_s6 = smov 17  }
 0x2cc   : >> { %v1256_v36 = vmul.bf16 %v7657_v35, %v7389_v19  ;;  %s1197_s11 = sadd.s32 1, %s7259_s11  }
 0x2cd   : >> { %1481 = vmatpush1.bf16.msra.mxu0 %v1251_v29  ;;  %p1194_p3 = scmp.ge.s32.totalorder %s1197_s11, 7  }
 0x2ce   : >> { %1279 = vrot.lane.b32.xlu0 %v7623_v23, %s7282_s14  ;;  %1281 = vrot.lane.b32.xlu1 %v7645_v31, %s7282_s14 }
 0x2cf   : >> { %1482 = vmatprep.subr.bf16.mxu0 %v1254_v32 }
 0x2d1   : >> { %1483 = vmatpush1.bf16.msra.mxu0 %v1253_v34 }
 0x2d2   : >> { %1277 = vrot.lane.b32.xlu0 %v7625_v24, %s7282_s14  ;;  %1719 = vrot.lane.b32.xlu1 %v7387_v17, %s7283_s15 }
 0x2d3   : >> { %1484 = vmatprep.subr.bf16.mxu0 %v1256_v36 }
 0x2d5   : >> { %1485 = vmatpush1.bf16.msra.mxu0 %v1255_v38 }
 0x2d6   : >> { %1721 = vrot.lane.b32.xlu0 %v7394_v21, %s7283_s15  ;;  %1285 = vrot.lane.b32.xlu1 %v7633_v28, %s7282_s14  ;;  %s7811_s15 = scalar_lea.vmem [#allocation6], %s6786_s13  ;;  %s7291_s13 = smov 95  }
 0x2da   : >> { %1287 = vrot.lane.b32.xlu0 %v7671_v39, %s7282_s14  ;;  %1283 = vrot.lane.b32.xlu1 %v7637_v20, %s7282_s14 }
 0x2de   : >> { %1291 = vrot.lane.b32.xlu0 %v7643_v30, %s7282_s14  ;;  %1293 = vrot.lane.b32.xlu1 %v7677_v40, %s7282_s14 }
 0x2e2   : >> { %1289 = vrot.lane.b32.xlu0 %v7649_v33, %s7282_s14  ;;  %1297 = vrot.lane.b32.xlu1 %v7657_v35, %s7282_s14 }
 0x2e6   : >> { %1299 = vrot.lane.b32.xlu0 %v7687_v41, %s7282_s14  ;;  %1295 = vrot.lane.b32.xlu1 %v7661_v37, %s7282_s14 }
 0x2ea   : >> { %2004 = vrot.lane.b32.xlu1 %v7380_v15, %s7284_s17  ;;  %2006 = vrot.lane.b32.xlu0 %v7389_v19, %s7284_s17  ;;  %s7289_s17 = smov 110  }
 0x2ee   : >> { %1673 = vrot.lane.b32.xlu0 %v7623_v23, %s7285_s20  ;;  %1675 = vrot.lane.b32.xlu1 %v7645_v31, %s7285_s20 }
 0x2f2   : >> { %1671 = vrot.lane.b32.xlu0 %v7625_v24, %s7285_s20  ;;  %2144 = vrot.lane.b32.xlu1 %v7387_v17, %s7286_s21 }
 0x2f6   : >> { %2146 = vrot.lane.b32.xlu0 %v7394_v21, %s7286_s21  ;;  %1679 = vrot.lane.b32.xlu1 %v7633_v28, %s7285_s20  ;;  %s7290_s21 = smov 96  }
 0x2fa   : >> { %1681 = vrot.lane.b32.xlu0 %v7671_v39, %s7285_s20  ;;  %1677 = vrot.lane.b32.xlu1 %v7637_v20, %s7285_s20 }
 0x2fe   : >> { %1685 = vrot.lane.b32.xlu0 %v7643_v30, %s7285_s20  ;;  %1687 = vrot.lane.b32.xlu1 %v7677_v40, %s7285_s20 }
 0x302   : >> { %1683 = vrot.lane.b32.xlu0 %v7649_v33, %s7285_s20  ;;  %1691 = vrot.lane.b32.xlu1 %v7657_v35, %s7285_s20 }
 0x306   : >> { %1689 = vrot.lane.b32.xlu1 %v7661_v37, %s7285_s20  ;;  %1693 = vrot.lane.b32.xlu0 %v7687_v41, %s7285_s20 }
 0x338   : >> { %v7721_v42 = vpop.permute.xlu0 %1325  ;;  %v7723_v43 = vpop.permute.xlu1 %1579 }
 0x339   : >> { %v1333_v44 = vmul.bf16 %v7721_v42, %v7625_v24  ;;  %v1336_v51 = vmul.bf16 %v7721_v42, %v7637_v20  ;;  %v1339_v52 = vmul.bf16 %v7721_v42, %v7649_v33  ;;  %v1587_v59 = vmul.bf16 %v7723_v43, %v7625_v24 }
 0x33a   : >> { %v1342_v62 = vmul.bf16 %v7721_v42, %v7661_v37  ;;  %v1590_v8 = vmul.bf16 %v7723_v43, %v7637_v20  ;;  %v1593_v9 = vmul.bf16 %v7723_v43, %v7649_v33  ;;  %v1596_v26 = vmul.bf16 %v7723_v43, %v7661_v37 }
 0x33b   : >> { %1357 = vrot.lane.b32.xlu0 %v1333_v44, %s7287_s22 }
 0x33c   : >> { %v7728_v45 = vpop.permute.xlu0 %1327  ;;  %v7730_v46 = vpop.permute.xlu1 %1581 }
 0x33d   : >> { %v1335_v47 = vmul.bf16 %v7728_v45, %v7645_v31  ;;  %v1338_v48 = vmul.bf16 %v7728_v45, %v7671_v39  ;;  %v1341_v56 = vmul.bf16 %v7728_v45, %v7677_v40  ;;  %v1344_v57 = vmul.bf16 %v7728_v45, %v7687_v41 }
 0x33e   : >> { %v1589_v63 = vmul.bf16 %v7730_v46, %v7645_v31  ;;  %v1592_v0 = vmul.bf16 %v7730_v46, %v7671_v39  ;;  %v1595_v13 = vmul.bf16 %v7730_v46, %v7677_v40  ;;  %v1598_v14 = vmul.bf16 %v7730_v46, %v7687_v41 }
 0x33f   : >> { %1361 = vrot.lane.b32.xlu1 %v1335_v47, %s7287_s22  ;;  %1367 = vrot.lane.b32.xlu0 %v1338_v48, %s7287_s22  ;;  %v7785_v18 = vsel %vm390_vm1, %v7721_v42, %v7728_v45  ;;  %v7805_v38 = vsel %vm555_vm0, %v7723_v43, %v7730_v46  ;;  %v7069_v47 = vld [vmem:[%s7811_s15 + $0x4] ss:$8 sps:$4 sm:$0xff]  }
 0x340   : >> { %v1280_v49 = vpop.permute.xlu0 %1279  ;;  %v1282_v50 = vpop.permute.xlu1 %1281  ;;  %v1334_v27 = vmul.bf16 %v7785_v18, %v7623_v23  ;;  %v1337_v34 = vmul.bf16 %v7785_v18, %v7633_v28  ;;  %v1340_v36 = vmul.bf16 %v7785_v18, %v7643_v30  ;;  %v1588_v48 = vmul.bf16 %v7805_v38, %v7623_v23  ;;  %6602 = vmatprep.mubr.msk.bf16.mxu0 %vm1465_vm10, %v7069_v47 }
 0x341   : >> { %v1302_v53 = vsel %vm361_vm3, %v1280_v49, %v1282_v50  ;;  %v1594_v50 = vmul.bf16 %v7805_v38, %v7643_v30 }
 0x342   : >> { %1486 = vmatprep.subr.bf16.mxu0 %v1302_v53 }
 0x343   : >> { %1363 = vrot.lane.b32.xlu1 %v1336_v51, %s7287_s22  ;;  %1369 = vrot.lane.b32.xlu0 %v1339_v52, %s7287_s22  ;;  %v1591_v52 = vmul.bf16 %v7805_v38, %v7633_v28 }
 0x344   : >> { %v1278_v54 = vpop.permute.xlu0 %1277  ;;  %v7745_v55 = vpop.permute.xlu1 %1719 }
 0x345   : >> { %v1301_v58 = vsel %vm361_vm3, %v1278_v54, %v1280_v49  ;;  %v1343_v49 = vmul.bf16 %v7785_v18, %v7657_v35  ;;  %v1597_v54 = vmul.bf16 %v7805_v38, %v7657_v35 }
 0x346   : >> { %1487 = vmatpush1.bf16.msra.mxu0 %v1301_v58 }
 0x347   : >> { %1373 = vrot.lane.b32.xlu1 %v1341_v56, %s7287_s22  ;;  %1379 = vrot.lane.b32.xlu0 %v1344_v57, %s7287_s22  ;;  %v1727_v56 = vmul.bf16 %v7745_v55, %v7625_v24 }
 0x348   : >> { %v7756_v60 = vpop.permute.xlu0 %1721  ;;  %v1286_v61 = vpop.permute.xlu1 %1285 }
 0x349   : >> { %v1729_v44 = vmul.bf16 %v7756_v60, %v7645_v31  ;;  %v7826_v51 = vsel %vm606_vm4, %v7745_v55, %v7756_v60  ;;  %v1732_v58 = vmul.bf16 %v7756_v60, %v7671_v39 }
 0x34a   : >> { %v1728_v53 = vmul.bf16 %v7826_v51, %v7623_v23  ;;  %v1731_v57 = vmul.bf16 %v7826_v51, %v7633_v28 }
 0x34b   : >> { %1375 = vrot.lane.b32.xlu1 %v1342_v62, %s7287_s22  ;;  %1611 = vrot.lane.b32.xlu0 %v1587_v59, %s7288_s12  ;;  %v1730_v59 = vmul.bf16 %v7745_v55, %v7637_v20  ;;  %v1735_v62 = vmul.bf16 %v7756_v60, %v7677_v40 }
 0x34c   : >> { %v1288_v1 = vpop.permute.xlu0 %1287  ;;  %v1284_v2 = vpop.permute.xlu1 %1283 }
 0x34d   : >> { %v1304_v4 = vsel %vm361_vm3, %v1286_v61, %v1288_v1  ;;  %v1303_v5 = vsel %vm361_vm3, %v1284_v2, %v1286_v61  ;;  %v1734_v61 = vmul.bf16 %v7826_v51, %v7643_v30 }
 0x34e   : >> { %1488 = vmatprep.subr.bf16.mxu0 %v1304_v4  ;;  %v1737_v4 = vmul.bf16 %v7826_v51, %v7657_v35 }
 0x34f   : >> { %1615 = vrot.lane.b32.xlu1 %v1589_v63, %s7288_s12  ;;  %1621 = vrot.lane.b32.xlu0 %v1592_v0, %s7288_s12  ;;  %v1733_v63 = vmul.bf16 %v7745_v55, %v7649_v33 }
 0x350   : >> { %v1292_v6 = vpop.permute.xlu0 %1291  ;;  %v1294_v7 = vpop.permute.xlu1 %1293  ;;  %1489 = vmatpush1.bf16.msra.mxu0 %v1303_v5  ;;  %v1738_v5 = vmul.bf16 %v7756_v60, %v7687_v41 }
 0x351   : >> { %v1306_v10 = vsel %vm361_vm3, %v1292_v6, %v1294_v7  ;;  %v1736_v7 = vmul.bf16 %v7745_v55, %v7661_v37 }
 0x352   : >> { %1490 = vmatprep.subr.bf16.mxu0 %v1306_v10 }
 0x353   : >> { %1617 = vrot.lane.b32.xlu1 %v1590_v8, %s7288_s12  ;;  %1623 = vrot.lane.b32.xlu0 %v1593_v9, %s7288_s12 }
 0x354   : >> { %v1290_v11 = vpop.permute.xlu0 %1289  ;;  %v1298_v12 = vpop.permute.xlu1 %1297 }
 0x355   : >> { %v1305_v16 = vsel %vm361_vm3, %v1290_v11, %v1292_v6 }
 0x356   : >> { %1491 = vmatpush1.bf16.msra.mxu0 %v1305_v16 }
 0x357   : >> { %1627 = vrot.lane.b32.xlu1 %v1595_v13, %s7288_s12  ;;  %1633 = vrot.lane.b32.xlu0 %v1598_v14, %s7288_s12 }
 0x358   : >> { %v1300_v22 = vpop.permute.xlu0 %1299  ;;  %v1296_v25 = vpop.permute.xlu1 %1295 }
 0x359   : >> { %v1308_v29 = vsel %vm361_vm3, %v1298_v12, %v1300_v22  ;;  %v1307_v32 = vsel %vm361_vm3, %v1296_v25, %v1298_v12 }
 0x35a   : >> { %1492 = vmatprep.subr.bf16.mxu0 %v1308_v29 }
 0x35b   : >> { %1629 = vrot.lane.b32.xlu1 %v1596_v26, %s7288_s12  ;;  %1359 = vrot.lane.b32.xlu0 %v1334_v27, %s7287_s22 }
 0x35c   : >> { %1493 = vmatpush1.bf16.msra.mxu0 %v1307_v32  ;;  %v7858_v0 = vpop.permute.xlu1 %2004  ;;  %v7860_v1 = vpop.permute.xlu0 %2006 }
 0x35d   : >> { %v7867_v2 = vsel %vm801_vm2, %v7858_v0, %v7860_v1  ;;  %v2014_v9 = vmul.bf16 %v7860_v1, %v7645_v31  ;;  %v2012_v10 = vmul.bf16 %v7858_v0, %v7625_v24  ;;  %v2017_v12 = vmul.bf16 %v7860_v1, %v7671_v39 }
 0x35e   : >> { %v2013_v6 = vmul.bf16 %v7867_v2, %v7623_v23  ;;  %v2016_v11 = vmul.bf16 %v7867_v2, %v7633_v28  ;;  %v2015_v16 = vmul.bf16 %v7858_v0, %v7637_v20  ;;  %v2019_v22 = vmul.bf16 %v7867_v2, %v7643_v30 }
 0x35f   : >> { %1365 = vrot.lane.b32.xlu1 %v1337_v34, %s7287_s22  ;;  %1371 = vrot.lane.b32.xlu0 %v1340_v36, %s7287_s22  ;;  %v2020_v27 = vmul.bf16 %v7860_v1, %v7677_v40  ;;  %v2018_v29 = vmul.bf16 %v7858_v0, %v7649_v33  ;;  %v2022_v32 = vmul.bf16 %v7867_v2, %v7657_v35 }
 0x360   : >> { %v7881_v8 = vpop.permute.xlu0 %1673  ;;  %v7893_v13 = vpop.permute.xlu1 %1675  ;;  %v2023_v34 = vmul.bf16 %v7860_v1, %v7687_v41  ;;  %v2021_v47 = vmul.bf16 %v7858_v0, %v7661_v37 }
 0x363   : >> { %1755 = vrot.lane.b32.xlu1 %v1729_v44, %s7289_s17  ;;  %1613 = vrot.lane.b32.xlu0 %v1588_v48, %s7288_s12 }
 0x364   : >> { %v7895_v14 = vpop.permute.xlu0 %1671  ;;  %v7905_v25 = vpop.permute.xlu1 %2144 }
 0x367   : >> { %1377 = vrot.lane.b32.xlu1 %v1343_v49, %s7287_s22  ;;  %1625 = vrot.lane.b32.xlu0 %v1594_v50, %s7288_s12 }
 0x368   : >> { %v7907_v26 = vpop.permute.xlu0 %2146  ;;  %v7919_v36 = vpop.permute.xlu1 %1679 }
 0x36b   : >> { %1619 = vrot.lane.b32.xlu1 %v1591_v52, %s7288_s12  ;;  %1753 = vrot.lane.b32.xlu0 %v1728_v53, %s7289_s17 }
 0x36c   : >> { %v7921_v44 = vpop.permute.xlu0 %1681  ;;  %v7930_v48 = vpop.permute.xlu1 %1677 }
 0x36f   : >> { %1631 = vrot.lane.b32.xlu1 %v1597_v54, %s7288_s12  ;;  %1751 = vrot.lane.b32.xlu0 %v1727_v56, %s7289_s17 }
 0x370   : >> { %v7932_v49 = vpop.permute.xlu0 %1685  ;;  %v7938_v50 = vpop.permute.xlu1 %1687 }
 0x373   : >> { %1759 = vrot.lane.b32.xlu1 %v1731_v57, %s7289_s17  ;;  %1761 = vrot.lane.b32.xlu0 %v1732_v58, %s7289_s17  ;;  %v7963_v58 = vsel %vm852_vm6, %v7905_v25, %v7907_v26 }
 0x374   : >> { %v7940_v52 = vpop.permute.xlu0 %1683  ;;  %v7946_v53 = vpop.permute.xlu1 %1691 }
 0x377   : >> { %1757 = vrot.lane.b32.xlu1 %v1730_v59, %s7289_s17  ;;  %1765 = vrot.lane.b32.xlu0 %v1734_v61, %s7289_s17 }
 0x378   : >> { %v7952_v54 = vpop.permute.xlu0 %1693  ;;  %v7958_v56 = vpop.permute.xlu1 %1689 }
 0x37b   : >> { %1767 = vrot.lane.b32.xlu1 %v1735_v62, %s7289_s17  ;;  %1763 = vrot.lane.b32.xlu0 %v1733_v63, %s7289_s17  ;;  %v2153_v62 = vmul.bf16 %v7963_v58, %v7623_v23 }
 0x37f   : >> { %1771 = vrot.lane.b32.xlu1 %v1737_v4, %s7289_s17  ;;  %1773 = vrot.lane.b32.xlu0 %v1738_v5, %s7289_s17  ;;  %v2154_v5 = vmul.bf16 %v7907_v26, %v7645_v31 }
 0x383   : >> { %1769 = vrot.lane.b32.xlu1 %v1736_v7, %s7289_s17  ;;  %2038 = vrot.lane.b32.xlu0 %v2013_v6, %s7290_s21  ;;  %v2152_v6 = vmul.bf16 %v7905_v25, %v7625_v24 }
 0x387   : >> { %2040 = vrot.lane.b32.xlu1 %v2014_v9, %s7290_s21  ;;  %2036 = vrot.lane.b32.xlu0 %v2012_v10, %s7290_s21  ;;  %v2156_v9 = vmul.bf16 %v7963_v58, %v7633_v28  ;;  %v2157_v10 = vmul.bf16 %v7907_v26, %v7671_v39 }
 0x38b   : >> { %2044 = vrot.lane.b32.xlu1 %v2016_v11, %s7290_s21  ;;  %2046 = vrot.lane.b32.xlu0 %v2017_v12, %s7290_s21  ;;  %v2159_v12 = vmul.bf16 %v7963_v58, %v7643_v30 }
 0x38f   : >> { %2042 = vrot.lane.b32.xlu1 %v2015_v16, %s7290_s21  ;;  %2050 = vrot.lane.b32.xlu0 %v2019_v22, %s7290_s21  ;;  %v2158_v22 = vmul.bf16 %v7905_v25, %v7649_v33 }
 0x393   : >> { %2052 = vrot.lane.b32.xlu1 %v2020_v27, %s7290_s21  ;;  %2048 = vrot.lane.b32.xlu0 %v2018_v29, %s7290_s21  ;;  %v2163_v29 = vmul.bf16 %v7907_v26, %v7687_v41 }
 0x397   : >> { %2056 = vrot.lane.b32.xlu1 %v2022_v32, %s7290_s21  ;;  %2058 = vrot.lane.b32.xlu0 %v2023_v34, %s7290_s21 }
 0x39b   : >> { %2054 = vrot.lane.b32.xlu1 %v2021_v47, %s7290_s21  ;;  %2098 = vrot.lane.b32.xlu0 %v7623_v23, %s7291_s13 }
 0x39f   : >> { %2100 = vrot.lane.b32.xlu1 %v7645_v31, %s7291_s13  ;;  %2096 = vrot.lane.b32.xlu0 %v7625_v24, %s7291_s13  ;;  %v2155_v24 = vmul.bf16 %v7905_v25, %v7637_v20 }
 0x3a3   : >> { %2104 = vrot.lane.b32.xlu1 %v7633_v28, %s7291_s13  ;;  %2106 = vrot.lane.b32.xlu0 %v7671_v39, %s7291_s13  ;;  %v2160_v39 = vmul.bf16 %v7907_v26, %v7677_v40 }
 0x3a7   : >> { %2102 = vrot.lane.b32.xlu1 %v7637_v20, %s7291_s13  ;;  %2110 = vrot.lane.b32.xlu0 %v7643_v30, %s7291_s13  ;;  %v2162_v30 = vmul.bf16 %v7963_v58, %v7657_v35 }
 0x3ab   : >> { %2112 = vrot.lane.b32.xlu1 %v7677_v40, %s7291_s13  ;;  %2108 = vrot.lane.b32.xlu0 %v7649_v33, %s7291_s13  ;;  %v2161_v33 = vmul.bf16 %v7905_v25, %v7661_v37 }
 0x3ad   : >> { %v1358_v57 = vpop.permute.xlu0 %1357 }
 0x3af   : >> { %2116 = vrot.lane.b32.xlu1 %v7657_v35, %s7291_s13  ;;  %2118 = vrot.lane.b32.xlu0 %v7687_v41, %s7291_s13 }
 0x3b1   : >> { %v1362_v59 = vpop.permute.xlu1 %1361  ;;  %v1368_v61 = vpop.permute.xlu0 %1367 }
 0x3b3   : >> { %2114 = vrot.lane.b32.xlu1 %v7661_v37, %s7291_s13  ;;  %2178 = vrot.lane.b32.xlu0 %v2153_v62, %s7292_s10 }
 0x3b5   : >> { %v1364_v63 = vpop.permute.xlu1 %1363  ;;  %v1370_v4 = vpop.permute.xlu0 %1369 }
 0x3b7   : >> { %2180 = vrot.lane.b32.xlu1 %v2154_v5, %s7292_s10  ;;  %2176 = vrot.lane.b32.xlu0 %v2152_v6, %s7292_s10 }
 0x3b9   : >> { %v1374_v7 = vpop.permute.xlu1 %1373  ;;  %v1380_v23 = vpop.permute.xlu0 %1379 }
 0x3bb   : >> { %2184 = vrot.lane.b32.xlu1 %v2156_v9, %s7292_s10  ;;  %2186 = vrot.lane.b32.xlu0 %v2157_v10, %s7292_s10 }
 0x3bd   : >> { %v1376_v31 = vpop.permute.xlu1 %1375  ;;  %v1612_v11 = vpop.permute.xlu0 %1611 }
 0x3bf   : >> { %2182 = vrot.lane.b32.xlu1 %v2155_v24, %s7292_s10  ;;  %2190 = vrot.lane.b32.xlu0 %v2159_v12, %s7292_s10 }
 0x3c1   : >> { %v1616_v28 = vpop.permute.xlu1 %1615  ;;  %v1622_v16 = vpop.permute.xlu0 %1621 }
 0x3c3   : >> { %2192 = vrot.lane.b32.xlu1 %v2160_v39, %s7292_s10  ;;  %2188 = vrot.lane.b32.xlu0 %v2158_v22, %s7292_s10  ;;  %v7293_v22 = vmov 0  }
 0x3c4   : >> { %7066 = vset.pattern.permute.xlu1 %v7293_v22  ;;  %7065 = vset.pattern.permute.xlu0 %v7293_v22 }
 0x3c5   : >> { %v1618_v20 = vpop.permute.xlu1 %1617  ;;  %v7998_v27 = vpop.permute.xlu0 %1623 }
 0x3c7   : >> { %2196 = vrot.lane.b32.xlu1 %v2162_v30, %s7292_s10  ;;  %2198 = vrot.lane.b32.xlu0 %v2163_v29, %s7292_s10 }
 0x3c9   : >> { %v1628_v40 = vpop.permute.xlu1 %1627  ;;  %v8006_v32 = vpop.permute.xlu0 %1633 }
 0x3cb   : >> { %2194 = vrot.lane.b32.xlu1 %v2161_v33, %s7292_s10 }
 0x3cd   : >> { %v8011_v34 = vpop.permute.xlu1 %1629  ;;  %v1360_v47 = vpop.permute.xlu0 %1359 }
 0x3ce   : >> { %v1381_v35 = vsel %vm410_vm8, %v1358_v57, %v1360_v47  ;;  %v1382_v62 = vsel %vm410_vm8, %v1360_v47, %v1362_v59  ;;  %v6589_v47 = vld [vmem:[%s8028_s7 + $0x58] sm:$0xff] }
 0x3cf   : >> { %1494 = vmatprep.subr.bf16.mxu0 %v1382_v62 }
 0x3d0   : >> { %1495 = vmatpush1.bf16.msra.mxu0 %v1381_v35 }
 0x3d1   : >> { %v1366_v41 = vpop.permute.xlu1 %1365  ;;  %v1372_v5 = vpop.permute.xlu0 %1371 }
 0x3d2   : >> { %v1383_v6 = vsel %vm410_vm8, %v1364_v63, %v1366_v41  ;;  %v1384_v9 = vsel %vm410_vm8, %v1366_v41, %v1368_v61  ;;  %v1386_v37 = vsel %vm410_vm8, %v1372_v5, %v1374_v7  ;;  %v1385_v59 = vsel %vm410_vm8, %v1370_v4, %v1372_v5  ;;  %v7067_v61 = vld [vmem:[%s7811_s15] ss:$8 sps:$4 sm:$0xff]   ;;  %v7070_v7 = vld [vmem:[%s7811_s15 + $0x14] ss:$8 sps:$4 sm:$0xff]  }
 0x3d3   : >> { %1496 = vmatprep.subr.bf16.mxu0 %v1384_v9  ;;  %v6591_v9 = vld [vmem:[%s8028_s7 + $0x68] sm:$0xff] }
 0x3d4   : >> { %1497 = vmatpush1.bf16.msra.mxu0 %v1383_v6  ;;  %v6590_v6 = vld [vmem:[%s8028_s7 + $0x60] sm:$0xff] }
 0x3d5   : >> { %v8018_v10 = vpop.permute.xlu1 %1755  ;;  %v1614_v57 = vpop.permute.xlu0 %1613  ;;  %1498 = vmatprep.subr.bf16.mxu0 %v1386_v37 }
 0x3d6   : >> { %v1636_v4 = vsel %vm575_vm7, %v1614_v57, %v1616_v28  ;;  %v1635_v33 = vsel %vm575_vm7, %v1612_v11, %v1614_v57  ;;  %v6588_v28 = vld [vmem:[%s8028_s7 + $0x50] sm:$0xff] }
 0x3d7   : >> { %v7072_v11 = vld [vmem:[%s7811_s15 + $0x10] ss:$8 sps:$4 sm:$0xff]  }
 0x3d8   : >> { %1499 = vmatpush1.bf16.msra.mxu0 %v1385_v59 }
 0x3d9   : >> { %v1378_v24 = vpop.permute.xlu1 %1377  ;;  %v1626_v12 = vpop.permute.xlu0 %1625 }
 0x3da   : >> { %v1387_v39 = vsel %vm410_vm8, %v1376_v31, %v1378_v24  ;;  %v1388_v63 = vsel %vm410_vm8, %v1378_v24, %v1380_v23  ;;  %v6587_v31 = vld [vmem:[%s8028_s7 + $0x48] sm:$0xff]  ;;  %v6586_v23 = vld [vmem:[%s8028_s7 + $0x40] sm:$0xff]  ;;  %v1640_v37 = vsel %vm575_vm7, %v1626_v12, %v1628_v40  ;;  %v1639_v24 = vsel %vm575_vm7, %v7998_v27, %v1626_v12  ;;  %v7076_v12 = vld [vmem:[%s7811_s15 + $0x34] ss:$8 sps:$4 sm:$0xff]  }
 0x3db   : >> { %1500 = vmatprep.subr.bf16.mxu0 %v1388_v63  ;;  %2440 = vperm.xlu1 %7066, %v6587_v31   ;;  %v1696_v27 = vsel %vm596_vm5, %v7881_v8, %v7893_v13  ;;  %v1695_v31 = vsel %vm596_vm5, %v7895_v14, %v7881_v8  ;;  %v1700_v8 = vsel %vm596_vm5, %v7932_v49, %v7938_v50  ;;  %v7081_v14 = vld [vmem:[%s7811_s15 + $0x44] ss:$8 sps:$4 sm:$0xff]  }
 0x3dc   : >> { %1501 = vmatpush1.bf16.msra.mxu0 %v1387_v39  ;;  %2435 = vperm.xlu0 %7065, %v6586_v23   ;;  %v6592_v39 = vld [vmem:[%s8028_s7 + $0x70] sm:$0xff]  ;;  %v1701_v50 = vsel %vm596_vm5, %v7958_v56, %v7946_v53 }
 0x3dd   : >> { %v1620_v30 = vpop.permute.xlu1 %1619  ;;  %v8034_v29 = vpop.permute.xlu0 %1753  ;;  %1871 = vmatprep.subr.bf16.mxu0 %v1636_v4 }
 0x3de   : >> { %v1638_v35 = vsel %vm575_vm7, %v1620_v30, %v1622_v16  ;;  %v1637_v5 = vsel %vm575_vm7, %v1618_v20, %v1620_v30  ;;  %v7073_v16 = vld [vmem:[%s7811_s15 + $0x24] ss:$8 sps:$4 sm:$0xff]   ;;  %v6593_v20 = vld [vmem:[%s8028_s7 + $0x78] sm:$0xff]  ;;  %v1697_v30 = vsel %vm596_vm5, %v7930_v48, %v7919_v36 }
 0x3df   : >> { %1511 = vmatmul.mubr.bf16.vlgmr.msra.gmra.mrb[0].mxu0 %v7067_v61  ;;  %2445 = vperm.xlu1 %7066, %v6588_v28  }
 0x3e0   : >> { %1872 = vmatpush1.bf16.msra.mxu0 %v1635_v33  ;;  %6603 = vmatprep.mubr.msk.bf16.mxu0 %vm1465_vm10, %v7070_v7  ;;  %v7075_v7 = vld [vmem:[%s7811_s15 + $0x20] ss:$8 sps:$4 sm:$0xff]   ;;  %v7078_v33 = vld [vmem:[%s7811_s15 + $0x30] ss:$8 sps:$4 sm:$0xff]  }
 0x3e1   : >> { %v1632_v62 = vpop.permute.xlu1 %1631  ;;  %v8041_v41 = vpop.permute.xlu0 %1751  ;;  %1873 = vmatprep.subr.bf16.mxu0 %v1638_v35  ;;  %2450 = vperm.xlu0 %7065, %v6589_v47   ;;  %v1702_v35 = vsel %vm596_vm5, %v7946_v53, %v7952_v54 }
 0x3e2   : >> { %v1642_v63 = vsel %vm575_vm7, %v1632_v62, %v8006_v32  ;;  %v1641_v4 = vsel %vm575_vm7, %v8011_v34, %v1632_v62  ;;  %v1698_v34 = vsel %vm596_vm5, %v7919_v36, %v7921_v44  ;;  %v1699_v44 = vsel %vm596_vm5, %v7940_v52, %v7932_v49 }
 0x3e3   : >> { %2455 = vperm.xlu1 %7066, %v6590_v6   ;;  %v1776_v62 = vsel %vm626_vm9, %v8034_v29, %v8018_v10  ;;  %v1775_v54 = vsel %vm626_vm9, %v8041_v41, %v8034_v29 }
 0x3e4   : >> { %1874 = vmatpush1.bf16.msra.mxu0 %v1637_v5 }
 0x3e5   : >> { %v1760_v57 = vpop.permute.xlu1 %1759  ;;  %v1762_v59 = vpop.permute.xlu0 %1761  ;;  %1875 = vmatprep.subr.bf16.mxu0 %v1640_v37  ;;  %2460 = vperm.xlu0 %7065, %v6591_v9  }
 0x3e6   : >> { %v1778_v5 = vsel %vm626_vm9, %v1760_v57, %v1762_v59 }
 0x3e7   : >> { %1521 = vmatmul.mubr.bf16.gmra.mrb[4].mxu0 %v7072_v11  ;;  %2465 = vperm.xlu1 %7066, %v6592_v39   ;;  %v7082_v39 = vld [vmem:[%s7811_s15 + $0x54] ss:$8 sps:$4 sm:$0xff]  }
 0x3e8   : >> { %1876 = vmatpush1.bf16.msra.mxu0 %v1639_v24  ;;  %6604 = vmatprep.mubr.msk.bf16.mxu0 %vm1465_vm10, %v7073_v16  ;;  %v7079_v24 = vld [vmem:[%s7811_s15 + $0x40] ss:$8 sps:$4 sm:$0xff]  }
 0x3e9   : >> { %v1758_v40 = vpop.permute.xlu1 %1757  ;;  %v1766_v61 = vpop.permute.xlu0 %1765  ;;  %1877 = vmatprep.subr.bf16.mxu0 %v1642_v63  ;;  %2470 = vperm.xlu0 %7065, %v6593_v20  }
 0x3ea   : >> { %v1777_v53 = vsel %vm626_vm9, %v1758_v40, %v1760_v57 }
 0x3ec   : >> { %1878 = vmatpush1.bf16.msra.mxu0 %v1641_v4 }
 0x3ed   : >> { %v1768_v32 = vpop.permute.xlu1 %1767  ;;  %v1764_v22 = vpop.permute.xlu0 %1763  ;;  %1879 = vmatprep.subr.bf16.mxu0 %v1696_v27 }
 0x3ee   : >> { %v1780_v56 = vsel %vm626_vm9, %v1766_v61, %v1768_v32  ;;  %v1779_v37 = vsel %vm626_vm9, %v1764_v22, %v1766_v61  ;;  %v7085_v22 = vld [vmem:[%s7811_s15 + $0x64] ss:$8 sps:$4 sm:$0xff]  }
 0x3ef   : >> { %1531 = vmatmul.mubr.bf16.gmra.mrb[8].mxu0 %v7075_v7 }
 0x3f0   : >> { %1880 = vmatpush1.bf16.msra.mxu0 %v1695_v31  ;;  %6605 = vmatprep.mubr.msk.bf16.mxu0 %vm1465_vm10, %v7076_v12  ;;  %v7084_v12 = vld [vmem:[%s7811_s15 + $0x50] ss:$8 sps:$4 sm:$0xff]  }
 0x3f1   : >> { %v1772_v23 = vpop.permute.xlu1 %1771  ;;  %v1774_v13 = vpop.permute.xlu0 %1773  ;;  %1881 = vmatprep.subr.bf16.mxu0 %v1698_v34 }
 0x3f2   : >> { %v1782_v29 = vsel %vm626_vm9, %v1772_v23, %v1774_v13 }
 0x3f4   : >> { %1882 = vmatpush1.bf16.msra.mxu0 %v1697_v30 }
 0x3f5   : >> { %v1770_v28 = vpop.permute.xlu1 %1769  ;;  %v2039_v47 = vpop.permute.xlu0 %2038  ;;  %1883 = vmatprep.subr.bf16.mxu0 %v1700_v8 }
 0x3f6   : >> { %v1781_v59 = vsel %vm626_vm9, %v1770_v28, %v1772_v23 }
 0x3f7   : >> { %1541 = vmatmul.mubr.bf16.gmra.mrb[12].mxu0 %v7078_v33 }
 0x3f8   : >> { %1884 = vmatpush1.bf16.msra.mxu0 %v1699_v44  ;;  %6614 = vmatprep.mubr.msk.bf16.mxu0 %vm1465_vm10, %v7081_v14  ;;  %v7087_v14 = vld [vmem:[%s7811_s15 + $0x60] ss:$8 sps:$4 sm:$0xff]  }
 0x3f9   : >> { %v2041_v36 = vpop.permute.xlu1 %2040  ;;  %v2037_v48 = vpop.permute.xlu0 %2036  ;;  %1885 = vmatprep.subr.bf16.mxu0 %v1702_v35 }
 0x3fa   : >> { %v2061_v57 = vsel %vm821_vm11, %v2039_v47, %v2041_v36  ;;  %v2060_v40 = vsel %vm821_vm11, %v2037_v48, %v2039_v47  ;;  %v7088_v47 = vld [vmem:[%s7811_s15 + $0x74] ss:$8 sps:$4 sm:$0xff]  }
 0x3fc   : >> { %1886 = vmatpush1.bf16.msra.mxu0 %v1701_v50 }
 0x3fd   : >> { %v2045_v49 = vpop.permute.xlu1 %2044  ;;  %v2047_v52 = vpop.permute.xlu0 %2046  ;;  %1887 = vmatprep.subr.bf16.mxu0 %v1776_v62 }
 0x3fe   : >> { %v2063_v61 = vsel %vm821_vm11, %v2045_v49, %v2047_v52  ;;  %v7090_v52 = vld [vmem:[%s7811_s15 + $0x70] ss:$8 sps:$4 sm:$0xff]  }
 0x400   : >> { %1888 = vmatpush1.bf16.msra.mxu0 %v1775_v54 }
 0x401   : >> { %v2043_v11 = vpop.permute.xlu1 %2042  ;;  %v2051_v6 = vpop.permute.xlu0 %2050  ;;  %1889 = vmatprep.subr.bf16.mxu0 %v1778_v5  ;;  %v7093_v5 = vld [vmem:[%s7811_s15 + $0x84] ss:$8 sps:$4 sm:$0xff]  }
 0x402   : >> { %v2062_v27 = vsel %vm821_vm11, %v2043_v11, %v2045_v49 }
 0x404   : >> { %1890 = vmatpush1.bf16.msra.mxu0 %v1777_v53 }
 0x405   : >> { %v2053_v10 = vpop.permute.xlu1 %2052  ;;  %v2049_v9 = vpop.permute.xlu0 %2048  ;;  %1891 = vmatprep.subr.bf16.mxu0 %v1780_v56 }
 0x406   : >> { %v2065_v32 = vsel %vm821_vm11, %v2051_v6, %v2053_v10  ;;  %v2064_v23 = vsel %vm821_vm11, %v2049_v9, %v2051_v6 }
 0x408   : >> { %1892 = vmatpush1.bf16.msra.mxu0 %v1779_v37 }
 0x409   : >> { %v2057_v41 = vpop.permute.xlu1 %2056  ;;  %v2059_v16 = vpop.permute.xlu0 %2058  ;;  %1893 = vmatprep.subr.bf16.mxu0 %v1782_v29 }
 0x40a   : >> { %v2067_v13 = vsel %vm821_vm11, %v2057_v41, %v2059_v16 }
 0x40c   : >> { %1894 = vmatpush1.bf16.msra.mxu0 %v1781_v59 }
 0x40d   : >> { %v2055_v20 = vpop.permute.xlu1 %2054  ;;  %v2099_v63 = vpop.permute.xlu0 %2098  ;;  %2296 = vmatprep.subr.bf16.mxu0 %v2061_v57 }
 0x40e   : >> { %v2066_v8 = vsel %vm821_vm11, %v2055_v20, %v2057_v41 }
 0x40f   : >> { %1904 = vmatmul.mubr.bf16.vlgmr.msra.gmra.mrb[0].mxu0 %v7079_v24 }
 0x410   : >> { %2297 = vmatpush1.bf16.msra.mxu0 %v2060_v40  ;;  %6615 = vmatprep.mubr.msk.bf16.mxu0 %vm1465_vm10, %v7082_v39 }
 0x411   : >> { %v2101_v4 = vpop.permute.xlu1 %2100  ;;  %v2097_v7 = vpop.permute.xlu0 %2096  ;;  %2298 = vmatprep.subr.bf16.mxu0 %v2063_v61 }
 0x412   : >> { %v2121_v28 = vsel %vm842_vm13, %v2099_v63, %v2101_v4  ;;  %v2120_v36 = vsel %vm842_vm13, %v2097_v7, %v2099_v63 }
 0x414   : >> { %2299 = vmatpush1.bf16.msra.mxu0 %v2062_v27 }
 0x415   : >> { %v2105_v31 = vpop.permute.xlu1 %2104  ;;  %v2107_v34 = vpop.permute.xlu0 %2106  ;;  %2300 = vmatprep.subr.bf16.mxu0 %v2065_v32 }
 0x416   : >> { %v2123_v48 = vsel %vm842_vm13, %v2105_v31, %v2107_v34  ;;  %v7094_v34 = vld [vmem:[%s7811_s15 + $0x94] ss:$8 sps:$4 sm:$0xff]  }
 0x417   : >> { %1914 = vmatmul.mubr.bf16.gmra.mrb[4].mxu0 %v7084_v12 }
 0x418   : >> { %2301 = vmatpush1.bf16.msra.mxu0 %v2064_v23  ;;  %6616 = vmatprep.mubr.msk.bf16.mxu0 %vm1465_vm10, %v7085_v22  ;;  %v7096_v23 = vld [vmem:[%s7811_s15 + $0x90] ss:$8 sps:$4 sm:$0xff]  }
 0x419   : >> { %v2103_v30 = vpop.permute.xlu1 %2102  ;;  %v2111_v33 = vpop.permute.xlu0 %2110  ;;  %2302 = vmatprep.subr.bf16.mxu0 %v2067_v13  ;;  %v7097_v13 = vld [vmem:[%s7811_s15 + $0xa4] ss:$8 sps:$4 sm:$0xff]  }
 0x41a   : >> { %v2122_v49 = vsel %vm842_vm13, %v2103_v30, %v2105_v31  ;;  %v7091_v31 = vld [vmem:[%s7811_s15 + $0x80] ss:$8 sps:$4 sm:$0xff]  }
 0x41b   : >> { %v7099_v30 = vld [vmem:[%s7811_s15 + $0xa0] ss:$8 sps:$4 sm:$0xff]  }
 0x41c   : >> { %2303 = vmatpush1.bf16.msra.mxu0 %v2066_v8  ;;  %v7102_v8 = vld [vmem:[%s7811_s15 + $0xb0] ss:$8 sps:$4 sm:$0xff]  }
 0x41d   : >> { %v2113_v44 = vpop.permute.xlu1 %2112  ;;  %v2109_v35 = vpop.permute.xlu0 %2108  ;;  %2304 = vmatprep.subr.bf16.mxu0 %v2121_v28 }
 0x41e   : >> { %v2125_v54 = vsel %vm842_vm13, %v2111_v33, %v2113_v44  ;;  %v2124_v53 = vsel %vm842_vm13, %v2109_v35, %v2111_v33  ;;  %v7100_v33 = vld [vmem:[%s7811_s15 + $0xb4] ss:$8 sps:$4 sm:$0xff]  }
 0x41f   : >> { %1924 = vmatmul.mubr.bf16.gmra.mrb[8].mxu0 %v7087_v14 }
 0x420   : >> { %2305 = vmatpush1.bf16.msra.mxu0 %v2120_v36  ;;  %6617 = vmatprep.mubr.msk.bf16.mxu0 %vm1465_vm10, %v7088_v47 }
 0x421   : >> { %v2117_v50 = vpop.permute.xlu1 %2116  ;;  %v2119_v62 = vpop.permute.xlu0 %2118  ;;  %2306 = vmatprep.subr.bf16.mxu0 %v2123_v48 }
 0x422   : >> { %v2127_v56 = vsel %vm842_vm13, %v2117_v50, %v2119_v62 }
 0x424   : >> { %2307 = vmatpush1.bf16.msra.mxu0 %v2122_v49 }
 0x425   : >> { %v2115_v11 = vpop.permute.xlu1 %2114  ;;  %v2179_v6 = vpop.permute.xlu0 %2178  ;;  %2308 = vmatprep.subr.bf16.mxu0 %v2125_v54 }
 0x426   : >> { %v2126_v37 = vsel %vm842_vm13, %v2115_v11, %v2117_v50 }
 0x427   : >> { %1934 = vmatmul.mubr.bf16.gmra.mrb[12].mxu0 %v7090_v52 }
 0x428   : >> { %2309 = vmatpush1.bf16.msra.mxu0 %v2124_v53  ;;  %6626 = vmatprep.mubr.msk.bf16.mxu0 %vm1465_vm10, %v7093_v5 }
 0x429   : >> { %v2181_v10 = vpop.permute.xlu1 %2180  ;;  %v2177_v9 = vpop.permute.xlu0 %2176  ;;  %2310 = vmatprep.subr.bf16.mxu0 %v2127_v56 }
 0x42a   : >> { %v2201_v29 = vsel %vm872_vm14, %v2179_v6, %v2181_v10  ;;  %v2200_v59 = vsel %vm872_vm14, %v2177_v9, %v2179_v6 }
 0x42c   : >> { %2311 = vmatpush1.bf16.msra.mxu0 %v2126_v37 }
 0x42d   : >> { %v2185_v41 = vpop.permute.xlu1 %2184  ;;  %v2187_v16 = vpop.permute.xlu0 %2186  ;;  %2312 = vmatprep.subr.bf16.mxu0 %v2201_v29 }
 0x42e   : >> { %v2203_v24 = vsel %vm872_vm14, %v2185_v41, %v2187_v16 }
 0x430   : >> { %2313 = vmatpush1.bf16.msra.mxu0 %v2200_v59 }
 0x431   : >> { %v2183_v57 = vpop.permute.xlu1 %2182  ;;  %v2191_v39 = vpop.permute.xlu0 %2190  ;;  %2314 = vmatprep.subr.bf16.mxu0 %v2203_v24 }
 0x432   : >> { %v2202_v20 = vsel %vm872_vm14, %v2183_v57, %v2185_v41 }
 0x434   : >> { %2315 = vmatpush1.bf16.msra.mxu0 %v2202_v20 }
 0x435   : >> { %v2193_v63 = vpop.permute.xlu1 %2192  ;;  %v2189_v40 = vpop.permute.xlu0 %2188 }
 0x436   : >> { %v2205_v61 = vsel %vm872_vm14, %v2191_v39, %v2193_v63  ;;  %v2204_v4 = vsel %vm872_vm14, %v2189_v40, %v2191_v39 }
 0x437   : >> { %2316 = vmatprep.subr.bf16.mxu0 %v2205_v61 }
 0x438   : >> { %2317 = vmatpush1.bf16.msra.mxu0 %v2204_v4 }
 0x439   : >> { %v2197_v7 = vpop.permute.xlu1 %2196  ;;  %v2199_v27 = vpop.permute.xlu0 %2198 }
 0x43a   : >> { %v2207_v12 = vsel %vm872_vm14, %v2197_v7, %v2199_v27 }
 0x43b   : >> { %2318 = vmatprep.subr.bf16.mxu0 %v2207_v12 }
 0x43d   : >> { %v2195_v32 = vpop.permute.xlu1 %2194 }
 0x43e   : >> { %v2206_v22 = vsel %vm872_vm14, %v2195_v32, %v2197_v7 }
 0x43f   : >> { %2319 = vmatpush1.bf16.msra.mxu0 %v2206_v22 }
 0x442   : >> { %2329 = vmatmul.mubr.bf16.vlgmr.msra.gmra.mrb[0].mxu0 %v7091_v31 }
 0x443   : >> { %6627 = vmatprep.mubr.msk.bf16.mxu0 %vm1465_vm10, %v7094_v34 }
 0x44a   : >> { %2339 = vmatmul.mubr.bf16.gmra.mrb[4].mxu0 %v7096_v23 }
 0x44b   : >> { %6628 = vmatprep.mubr.msk.bf16.mxu0 %vm1465_vm10, %v7097_v13 }
 0x452   : >> { %2349 = vmatmul.mubr.bf16.gmra.mrb[8].mxu0 %v7099_v30 }
 0x453   : >> { %6629 = vmatprep.mubr.msk.bf16.mxu0 %vm1465_vm10, %v7100_v33 }
 0x45a   : >> { %2359 = vmatmul.mubr.bf16.gmra.mrb[12].mxu0 %v7102_v8  ;;  %v2441_v35 = vpop.permute.xlu1 %2440 }
 0x45b   : >> { %v2436_v14 = vpop.permute.xlu0 %2435 }
 0x45e   : >> { %v2446_v53 = vpop.permute.xlu1 %2445 }
 0x460   : >> { %v2451_v29 = vpop.permute.xlu0 %2450 }
 0x462   : >> { %v2456_v4 = vpop.permute.xlu1 %2455 }
 0x464   : >> { %v2461_v22 = vpop.permute.xlu0 %2460 }
 0x515   : >> { %v2330_v28 = vpop.f32.mrb[0].mxu0 }
 0x516   : >> { %v2332_v47 = vpop.f32.mrb[1].mxu0  ;;  %v2473_v44 = vadd.f32 %v2436_v14, %v2330_v28 }
 0x517   : >> { %v2334_v36 = vpop.f32.mrb[2].mxu0  ;;  %v2474_v48 = vadd.f32 %v2436_v14, %v2332_v47 }
 0x518   : >> { %v2336_v50 = vpop.f32.mrb[3].mxu0  ;;  %v2475_v62 = vadd.f32 %v2441_v35, %v2334_v36  ;;  %v2489_v52 = vmax.f32 %v2473_v44, 0.0  ;;  %v2466_v44 = vpop.permute.xlu1 %2465 }
 0x519   : >> { %v2476_v49 = vadd.f32 %v2441_v35, %v2336_v50  ;;  %v2490_v5 = vmax.f32 %v2474_v48, 0.0 }
 0x51a   : >> { %v2491_v54 = vmax.f32 %v2475_v62, 0.0  ;;  %v2471_v62 = vpop.permute.xlu0 %2470 }
 0x51b   : >> { %v2492_v11 = vmax.f32 %v2476_v49, 0.0 }
 0x51c   : >> { %v2505_v6 = vpack.c.bf16 %v2491_v54, %v2489_v52 }
 0x51d   : >> { %v2340_v56 = vpop.f32.mrb[4].mxu0  ;;  %v2506_v10 = vpack.c.bf16 %v2492_v11, %v2490_v5 }
 0x51e   : >> { %v2342_v9 = vpop.f32.mrb[5].mxu0  ;;  %2521 = vrot.lane.b32.xlu1 %v2505_v6, %s7294_s6  ;;  %v2477_v37 = vadd.f32 %v2446_v53, %v2340_v56 }
 0x51f   : >> { %v2344_v41 = vpop.f32.mrb[6].mxu0  ;;  %2523 = vrot.lane.b32.xlu0 %v2506_v10, %s7294_s6  ;;  %v2478_v16 = vadd.f32 %v2446_v53, %v2342_v9 }
 0x520   : >> { %v2346_v59 = vpop.f32.mrb[7].mxu0  ;;  %v2479_v24 = vadd.f32 %v2451_v29, %v2344_v41  ;;  %v2493_v39 = vmax.f32 %v2477_v37, 0.0 }
 0x521   : >> { %v2480_v57 = vadd.f32 %v2451_v29, %v2346_v59  ;;  %v2494_v63 = vmax.f32 %v2478_v16, 0.0 }
 0x522   : >> { %v2495_v20 = vmax.f32 %v2479_v24, 0.0 }
 0x523   : >> { %v2496_v40 = vmax.f32 %v2480_v57, 0.0 }
 0x524   : >> { %v2507_v61 = vpack.c.bf16 %v2495_v20, %v2493_v39 }
 0x525   : >> { %v2350_v7 = vpop.f32.mrb[8].mxu0  ;;  %v2508_v27 = vpack.c.bf16 %v2496_v40, %v2494_v63 }
 0x526   : >> { %v2352_v12 = vpop.f32.mrb[9].mxu0  ;;  %2525 = vrot.lane.b32.xlu1 %v2507_v61, %s7294_s6  ;;  %v2481_v32 = vadd.f32 %v2456_v4, %v2350_v7 }
 0x527   : >> { %v2354_v31 = vpop.f32.mrb[10].mxu0  ;;  %2527 = vrot.lane.b32.xlu0 %v2508_v27, %s7294_s6  ;;  %v2482_v34 = vadd.f32 %v2456_v4, %v2352_v12 }
 0x528   : >> { %v2356_v23 = vpop.f32.mrb[11].mxu0  ;;  %v2483_v13 = vadd.f32 %v2461_v22, %v2354_v31  ;;  %v2497_v33 = vmax.f32 %v2481_v32, 0.0 }
 0x529   : >> { %v2484_v30 = vadd.f32 %v2461_v22, %v2356_v23  ;;  %v2498_v14 = vmax.f32 %v2482_v34, 0.0 }
 0x52a   : >> { %v2499_v8 = vmax.f32 %v2483_v13, 0.0 }
 0x52b   : >> { %v2500_v28 = vmax.f32 %v2484_v30, 0.0 }
 0x52c   : >> { %v2509_v47 = vpack.c.bf16 %v2499_v8, %v2497_v33 }
 0x52d   : >> { %v2360_v35 = vpop.f32.mrb[12].mxu0  ;;  %v2510_v36 = vpack.c.bf16 %v2500_v28, %v2498_v14 }
 0x52e   : >> { %v2362_v48 = vpop.f32.mrb[13].mxu0  ;;  %2529 = vrot.lane.b32.xlu1 %v2509_v47, %s7294_s6  ;;  %v2485_v50 = vadd.f32 %v2466_v44, %v2360_v35 }
 0x52f   : >> { %v2364_v49 = vpop.f32.mrb[14].mxu0  ;;  %2531 = vrot.lane.b32.xlu0 %v2510_v36, %s7294_s6  ;;  %v2486_v52 = vadd.f32 %v2466_v44, %v2362_v48 }
 0x530   : >> { %v2366_v54 = vpop.f32.mrb[15].mxu0  ;;  %v2487_v5 = vadd.f32 %v2471_v62, %v2364_v49  ;;  %v2501_v6 = vmax.f32 %v2485_v50, 0.0 }
 0x531   : >> { %v2488_v11 = vadd.f32 %v2471_v62, %v2366_v54  ;;  %v2502_v56 = vmax.f32 %v2486_v52, 0.0 }
 0x532   : >> { %v2503_v53 = vmax.f32 %v2487_v5, 0.0 }
 0x533   : >> { %v2504_v10 = vmax.f32 %v2488_v11, 0.0 }
 0x534   : >> { %v2511_v9 = vpack.c.bf16 %v2503_v53, %v2501_v6 }
 0x535   : >> { %v2512_v37 = vpack.c.bf16 %v2504_v10, %v2502_v56 }
 0x536   : >> { %2533 = vrot.lane.b32.xlu1 %v2511_v9, %s7294_s6 }
 0x537   : >> { %2535 = vrot.lane.b32.xlu0 %v2512_v37, %s7294_s6 }
 0x590   : >> { %v2522_v29 = vpop.permute.xlu1 %2521 }
 0x591   : >> { %2553 = vst.msk [vmem:[#allocation3] sm:$0xff] %vm1179_vm12, %v2522_v29  ;;  %v2524_v41 = vpop.permute.xlu0 %2523 }
 0x592   : >> { %v8156_v16 = vsel %vm242_vm15, %v2522_v29, %v2524_v41  ;;  %2555 = vst.msk [vmem:[#allocation3 + $0x10] sm:$0xff] %vm242_vm15, %v2524_v41 }
 0x593   : >> { %v2616_v59 = vmul.bf16 %v8156_v16, %v7389_v19  ;;  %v2692_v44 = vmul.bf16 %v8156_v16, %v7785_v18  ;;  %v2937_v48 = vmul.bf16 %v8156_v16, %v7805_v38 }
 0x595   : >> { %2835 = vmatprep.subr.bf16.mxu1 %v2616_v59 }
 0x598   : >> { %v2526_v24 = vpop.permute.xlu1 %2525  ;;  %v8161_v57 = vld [vmem:[#allocation3] sm:$0xff] }
 0x599   : >> { %2556 = vst.msk [vmem:[#allocation3 + $0x18] sm:$0xff] %vm1179_vm12, %v2526_v24  ;;  %v2528_v39 = vpop.permute.xlu0 %2527  ;;  %v2615_v20 = vmul.bf16 %v8161_v57, %v7380_v15  ;;  %2643 = vrot.lane.b32.xlu1 %v8161_v57, %s7282_s14  ;;  %v8168_v63 = vld [vmem:[#allocation3 + $0x10] sm:$0xff]  ;;  %v2691_v31 = vmul.bf16 %v8161_v57, %v7721_v42  ;;  %v2936_v13 = vmul.bf16 %v8161_v57, %v7723_v43 }
 0x59a   : >> { %v8171_v40 = vsel %vm242_vm15, %v2526_v24, %v2528_v39  ;;  %2558 = vst.msk [vmem:[#allocation3 + $0x28] sm:$0xff] %vm242_vm15, %v2528_v39  ;;  %2647 = vrot.lane.b32.xlu0 %v8168_v63, %s7282_s14  ;;  %v2693_v4 = vmul.bf16 %v8168_v63, %v7728_v45  ;;  %v2938_v23 = vmul.bf16 %v8168_v63, %v7730_v46 }
 0x59b   : >> { %v2618_v61 = vmul.bf16 %v8171_v40, %v7389_v19  ;;  %2836 = vmatpush1.bf16.msra.mxu1 %v2615_v20  ;;  %v2695_v54 = vmul.bf16 %v8171_v40, %v7785_v18  ;;  %v2940_v11 = vmul.bf16 %v8171_v40, %v7805_v38  ;;  %v3069_v39 = vmul.bf16 %v8156_v16, %v7826_v51 }
 0x59d   : >> { %3020 = vrot.lane.b32.xlu1 %v8161_v57, %s7285_s20  ;;  %2837 = vmatprep.subr.bf16.mxu1 %v2618_v61  ;;  %v3070_v61 = vmul.bf16 %v8168_v63, %v7756_v60 }
 0x59e   : >> { %3024 = vrot.lane.b32.xlu0 %v8168_v63, %s7285_s20 }
 0x5a0   : >> { %v2530_v7 = vpop.permute.xlu1 %2529  ;;  %v8184_v27 = vld [vmem:[#allocation3 + $0x18] sm:$0xff] }
 0x5a1   : >> { %2559 = vst.msk [vmem:[#allocation3 + $0x30] sm:$0xff] %vm1179_vm12, %v2530_v7  ;;  %v2532_v12 = vpop.permute.xlu0 %2531  ;;  %2645 = vrot.lane.b32.xlu1 %v8156_v16, %s7282_s14  ;;  %v2617_v32 = vmul.bf16 %v8184_v27, %v7380_v15  ;;  %v2694_v50 = vmul.bf16 %v8184_v27, %v7721_v42  ;;  %v2939_v62 = vmul.bf16 %v8184_v27, %v7723_v43  ;;  %v8241_v49 = vld [vmem:[#allocation3 + $0x28] sm:$0xff] }
 0x5a2   : >> { %v8192_v22 = vsel %vm242_vm15, %v2530_v7, %v2532_v12  ;;  %2561 = vst.msk [vmem:[#allocation3 + $0x40] sm:$0xff] %vm242_vm15, %v2532_v12  ;;  %2719 = vrot.lane.b32.xlu0 %v2693_v4, %s7287_s22  ;;  %v2696_v52 = vmul.bf16 %v8241_v49, %v7728_v45  ;;  %v2941_v5 = vmul.bf16 %v8241_v49, %v7730_v46 }
 0x5a3   : >> { %v2620_v34 = vmul.bf16 %v8192_v22, %v7389_v19  ;;  %2838 = vmatpush1.bf16.msra.mxu1 %v2617_v32  ;;  %v2698_v37 = vmul.bf16 %v8192_v22, %v7785_v18  ;;  %v2943_v29 = vmul.bf16 %v8192_v22, %v7805_v38  ;;  %v3072_v4 = vmul.bf16 %v8171_v40, %v7826_v51 }
 0x5a4   : >> { %v3071_v7 = vmul.bf16 %v8184_v27, %v7745_v55  ;;  %v3075_v32 = vmul.bf16 %v8192_v22, %v7826_v51 }
 0x5a5   : >> { %2715 = vrot.lane.b32.xlu1 %v2691_v31, %s7287_s22  ;;  %2839 = vmatprep.subr.bf16.mxu1 %v2620_v34 }
 0x5a6   : >> { %2964 = vrot.lane.b32.xlu0 %v2938_v23, %s7288_s12 }
 0x5a8   : >> { %v8206_v30 = vld [vmem:[#allocation3 + $0x30] sm:$0xff]  ;;  %v2534_v33 = vpop.permute.xlu1 %2533 }
 0x5a9   : >> { %v2619_v8 = vmul.bf16 %v8206_v30, %v7380_v15  ;;  %2562 = vst.msk [vmem:[#allocation3 + $0x48] sm:$0xff] %vm1179_vm12, %v2534_v33  ;;  %2960 = vrot.lane.b32.xlu1 %v2936_v13, %s7288_s12  ;;  %v2536_v14 = vpop.permute.xlu0 %2535  ;;  %v8264_v6 = vld [vmem:[#allocation3 + $0x40] sm:$0xff]  ;;  %v2697_v53 = vmul.bf16 %v8206_v30, %v7721_v42  ;;  %v2942_v10 = vmul.bf16 %v8206_v30, %v7723_v43 }
 0x5aa   : >> { %v8213_v28 = vsel %vm242_vm15, %v2534_v33, %v2536_v14  ;;  %2564 = vst.msk [vmem:[#allocation3 + $0x58] sm:$0xff] %vm242_vm15, %v2536_v14  ;;  %2649 = vrot.lane.b32.xlu0 %v8184_v27, %s7282_s14  ;;  %v2699_v56 = vmul.bf16 %v8264_v6, %v7728_v45  ;;  %v2944_v9 = vmul.bf16 %v8264_v6, %v7730_v46 }
 0x5ab   : >> { %v2622_v47 = vmul.bf16 %v8213_v28, %v7389_v19  ;;  %2840 = vmatpush1.bf16.msra.mxu1 %v2619_v8  ;;  %v2701_v20 = vmul.bf16 %v8213_v28, %v7785_v18  ;;  %v2946_v12 = vmul.bf16 %v8213_v28, %v7805_v38  ;;  %v3076_v31 = vmul.bf16 %v8264_v6, %v7756_v60 }
 0x5ac   : >> { %v3074_v34 = vmul.bf16 %v8206_v30, %v7745_v55  ;;  %v3347_v8 = vmul.bf16 %v8168_v63, %v7860_v1 }
 0x5ad   : >> { %3022 = vrot.lane.b32.xlu1 %v8156_v16, %s7285_s20  ;;  %2841 = vmatprep.subr.bf16.mxu1 %v2622_v47 }
 0x5ae   : >> { %3026 = vrot.lane.b32.xlu0 %v8184_v27, %s7285_s20 }
 0x5b0   : >> { %v8226_v35 = vld [vmem:[#allocation3 + $0x48] sm:$0xff] }
 0x5b1   : >> { %v2621_v36 = vmul.bf16 %v8226_v35, %v7380_v15  ;;  %2717 = vrot.lane.b32.xlu1 %v2692_v44, %s7287_s22  ;;  %v8298_v41 = vld [vmem:[#allocation3 + $0x58] sm:$0xff]  ;;  %v2700_v59 = vmul.bf16 %v8226_v35, %v7721_v42  ;;  %v2945_v24 = vmul.bf16 %v8226_v35, %v7723_v43  ;;  %v7105_v42 = vld [vmem:[%s7811_s15 + $0xc4] ss:$8 sps:$4 sm:$0xff]   ;;  %v3077_v38 = vmul.bf16 %v8226_v35, %v7745_v55 }
 0x5b2   : >> { %2651 = vrot.lane.b32.xlu0 %v8171_v40, %s7282_s14  ;;  %6674 = vmatprep.mubr.msk.bf16.mxu1 %vm1465_vm10, %v7105_v42  ;;  %v2702_v43 = vmul.bf16 %v8298_v41, %v7728_v45  ;;  %v2947_v18 = vmul.bf16 %v8298_v41, %v7730_v46  ;;  %v3068_v45 = vmul.bf16 %v8161_v57, %v7745_v55 }
 0x5b3   : >> { %2842 = vmatpush1.bf16.msra.mxu1 %v2621_v36  ;;  %v3073_v46 = vmul.bf16 %v8241_v49, %v7756_v60  ;;  %v3079_v23 = vmul.bf16 %v8298_v41, %v7756_v60  ;;  %v3346_v55 = vmul.bf16 %v8156_v16, %v7867_v2  ;;  %v3349_v44 = vmul.bf16 %v8171_v40, %v7867_v2 }
 0x5b4   : >> { %v3345_v36 = vmul.bf16 %v8161_v57, %v7858_v0 }
 0x5b5   : >> { %2962 = vrot.lane.b32.xlu1 %v2937_v48, %s7288_s12 }
 0x5b6   : >> { %2721 = vrot.lane.b32.xlu0 %v2694_v50, %s7287_s22 }
 0x5b9   : >> { %2653 = vrot.lane.b32.xlu1 %v8241_v49, %s7282_s14 }
 0x5ba   : >> { %2966 = vrot.lane.b32.xlu0 %v2939_v62, %s7288_s12 }
 0x5bd   : >> { %3030 = vrot.lane.b32.xlu1 %v8241_v49, %s7285_s20 }
 0x5be   : >> { %3028 = vrot.lane.b32.xlu0 %v8171_v40, %s7285_s20 }
 0x5c1   : >> { %2725 = vrot.lane.b32.xlu1 %v2696_v52, %s7287_s22  ;;  %v3348_v52 = vmul.bf16 %v8184_v27, %v7858_v0 }
 0x5c2   : >> { %2723 = vrot.lane.b32.xlu0 %v2695_v54, %s7287_s22 }
 0x5c5   : >> { %2970 = vrot.lane.b32.xlu1 %v2941_v5, %s7288_s12  ;;  %v3350_v5 = vmul.bf16 %v8241_v49, %v7860_v1 }
 0x5c6   : >> { %2968 = vrot.lane.b32.xlu0 %v2940_v11, %s7288_s12 }
 0x5c9   : >> { %2655 = vrot.lane.b32.xlu1 %v8206_v30, %s7282_s14 }
 0x5ca   : >> { %2659 = vrot.lane.b32.xlu0 %v8264_v6, %s7282_s14 }
 0x5cd   : >> { %2657 = vrot.lane.b32.xlu1 %v8192_v22, %s7282_s14 }
 0x5ce   : >> { %3036 = vrot.lane.b32.xlu0 %v8264_v6, %s7285_s20 }
 0x5d1   : >> { %2727 = vrot.lane.b32.xlu1 %v2697_v53, %s7287_s22  ;;  %v3353_v53 = vmul.bf16 %v8264_v6, %v7860_v1 }
 0x5d2   : >> { %2731 = vrot.lane.b32.xlu0 %v2699_v56, %s7287_s22 }
 0x5d5   : >> { %2972 = vrot.lane.b32.xlu1 %v2942_v10, %s7288_s12  ;;  %v3352_v10 = vmul.bf16 %v8192_v22, %v7867_v2 }
 0x5d6   : >> { %2976 = vrot.lane.b32.xlu0 %v2944_v9, %s7288_s12 }
 0x5d9   : >> { %3034 = vrot.lane.b32.xlu1 %v8192_v22, %s7285_s20 }
 0x5da   : >> { %2661 = vrot.lane.b32.xlu0 %v8226_v35, %s7282_s14 }
 0x5dd   : >> { %2729 = vrot.lane.b32.xlu1 %v2698_v37, %s7287_s22  ;;  %v3354_v37 = vmul.bf16 %v8226_v35, %v7858_v0 }
 0x5de   : >> { %3038 = vrot.lane.b32.xlu0 %v8226_v35, %s7285_s20 }
 0x5e1   : >> { %2974 = vrot.lane.b32.xlu1 %v2943_v29, %s7288_s12 }
 0x5e2   : >> { %2663 = vrot.lane.b32.xlu0 %v8213_v28, %s7282_s14 }
 0x5e5   : >> { %2665 = vrot.lane.b32.xlu1 %v8298_v41, %s7282_s14 }
 0x5e6   : >> { %2733 = vrot.lane.b32.xlu0 %v2700_v59, %s7287_s22  ;;  %v3351_v59 = vmul.bf16 %v8206_v30, %v7858_v0 }
 0x5e9   : >> { %3032 = vrot.lane.b32.xlu1 %v8206_v30, %s7285_s20 }
 0x5ea   : >> { %2978 = vrot.lane.b32.xlu0 %v2945_v24, %s7288_s12  ;;  %v3078_v24 = vmul.bf16 %v8213_v28, %v7826_v51 }
 0x5ed   : >> { %3094 = vrot.lane.b32.xlu1 %v3069_v39, %s7289_s17 }
 0x5ee   : >> { %3040 = vrot.lane.b32.xlu0 %v8213_v28, %s7285_s20 }
 0x5f1   : >> { %3042 = vrot.lane.b32.xlu1 %v8298_v41, %s7285_s20 }
 0x5f2   : >> { %2735 = vrot.lane.b32.xlu0 %v2701_v20, %s7287_s22  ;;  %v3356_v20 = vmul.bf16 %v8298_v41, %v7860_v1 }
 0x5f5   : >> { %2737 = vrot.lane.b32.xlu1 %v2702_v43, %s7287_s22 }
 0x5f6   : >> { %3096 = vrot.lane.b32.xlu0 %v3070_v61, %s7289_s17 }
 0x5f9   : >> { %2982 = vrot.lane.b32.xlu1 %v2947_v18, %s7288_s12 }
 0x5fa   : >> { %3100 = vrot.lane.b32.xlu0 %v3072_v4, %s7289_s17 }
 0x5fd   : >> { %3092 = vrot.lane.b32.xlu1 %v3068_v45, %s7289_s17 }
 0x5fe   : >> { %3098 = vrot.lane.b32.xlu0 %v3071_v7, %s7289_s17 }
 0x601   : >> { %3102 = vrot.lane.b32.xlu1 %v3073_v46, %s7289_s17  ;;  %v3355_v46 = vmul.bf16 %v8213_v28, %v7867_v2 }
 0x602   : >> { %2980 = vrot.lane.b32.xlu0 %v2946_v12, %s7288_s12 }
 0x605   : >> { %3106 = vrot.lane.b32.xlu1 %v3075_v32, %s7289_s17 }
 0x606   : >> { %3108 = vrot.lane.b32.xlu0 %v3076_v31, %s7289_s17 }
 0x609   : >> { %3104 = vrot.lane.b32.xlu1 %v3074_v34, %s7289_s17 }
 0x60a   : >> { %3110 = vrot.lane.b32.xlu0 %v3077_v38, %s7289_s17 }
 0x60b   : >> { %v2644_v13 = vpop.permute.xlu1 %2643 }
 0x60c   : >> { %v2648_v33 = vpop.permute.xlu0 %2647 }
 0x60d   : >> { %3114 = vrot.lane.b32.xlu1 %v3079_v23, %s7289_s17 }
 0x60e   : >> { %3373 = vrot.lane.b32.xlu0 %v3347_v8, %s7290_s21 }
 0x60f   : >> { %v8364_v14 = vpop.permute.xlu1 %3020 }
 0x610   : >> { %v8368_v47 = vpop.permute.xlu0 %3024 }
 0x611   : >> { %3371 = vrot.lane.b32.xlu1 %v3346_v55, %s7290_s21 }
 0x612   : >> { %3377 = vrot.lane.b32.xlu0 %v3349_v44, %s7290_s21 }
 0x613   : >> { %v2646_v60 = vpop.permute.xlu1 %2645 }
 0x614   : >> { %v2667_v48 = vsel %vm361_vm3, %v2644_v13, %v2646_v60  ;;  %v2668_v50 = vsel %vm361_vm3, %v2646_v60, %v2648_v33  ;;  %v8378_v62 = vpop.permute.xlu0 %2719  ;;  %v3478_v33 = vmul.bf16 %v8156_v16, %v7963_v58  ;;  %v3479_v60 = vmul.bf16 %v8168_v63, %v7907_v26 }
 0x615   : >> { %3369 = vrot.lane.b32.xlu1 %v3345_v36, %s7290_s21  ;;  %2843 = vmatprep.subr.bf16.mxu1 %v2668_v50  ;;  %v3481_v50 = vmul.bf16 %v8171_v40, %v7963_v58 }
 0x616   : >> { %3375 = vrot.lane.b32.xlu0 %v3348_v52, %s7290_s21  ;;  %2844 = vmatpush1.bf16.msra.mxu1 %v2667_v48  ;;  %v3482_v52 = vmul.bf16 %v8241_v49, %v7907_v26 }
 0x617   : >> { %v8384_v54 = vpop.permute.xlu1 %2715 }
 0x618   : >> { %v8388_v11 = vpop.permute.xlu0 %2964 }
 0x619   : >> { %3379 = vrot.lane.b32.xlu1 %v3350_v5, %s7290_s21 }
 0x61a   : >> { %3385 = vrot.lane.b32.xlu0 %v3353_v53, %s7290_s21  ;;  %v3480_v53 = vmul.bf16 %v8184_v27, %v7905_v25 }
 0x61b   : >> { %v8394_v56 = vpop.permute.xlu1 %2960 }
 0x61c   : >> { %v2650_v9 = vpop.permute.xlu0 %2649 }
 0x61d   : >> { %3383 = vrot.lane.b32.xlu1 %v3352_v10, %s7290_s21 }
 0x61e   : >> { %3387 = vrot.lane.b32.xlu0 %v3354_v37, %s7290_s21 }
 0x61f   : >> { %v8402_v29 = vpop.permute.xlu1 %3022 }
 0x620   : >> { %v8408_v39 = vpop.permute.xlu0 %3026 }
 0x621   : >> { %3381 = vrot.lane.b32.xlu1 %v3351_v59, %s7290_s21  ;;  %v3487_v59 = vmul.bf16 %v8213_v28, %v7963_v58 }
 0x622   : >> { %3112 = vrot.lane.b32.xlu0 %v3078_v24, %s7289_s17 }
 0x623   : >> { %v8412_v42 = vpop.permute.xlu1 %2717 }
 0x624   : >> { %v2652_v43 = vpop.permute.xlu0 %2651 }
 0x625   : >> { %3391 = vrot.lane.b32.xlu1 %v3356_v20, %s7290_s21  ;;  %v2669_v4 = vsel %vm361_vm3, %v2650_v9, %v2652_v43  ;;  %v3485_v9 = vmul.bf16 %v8264_v6, %v7907_v26  ;;  %v3486_v20 = vmul.bf16 %v8226_v35, %v7905_v25 }
 0x626   : >> { %3433 = vrot.lane.b32.xlu0 %v8168_v63, %s7291_s13 }
 0x627   : >> { %v8419_v0 = vpop.permute.xlu1 %2962 }
 0x628   : >> { %v8421_v51 = vpop.permute.xlu0 %2721 }
 0x629   : >> { %3431 = vrot.lane.b32.xlu1 %v8156_v16, %s7291_s13  ;;  %v3477_v16 = vmul.bf16 %v8161_v57, %v7905_v25 }
 0x62a   : >> { %3437 = vrot.lane.b32.xlu0 %v8171_v40, %s7291_s13  ;;  %v3484_v40 = vmul.bf16 %v8192_v22, %v7963_v58  ;;  %v6658_v58 = vld [vmem:[%s8028_s7 + $0x80] sm:$0xff] }
 0x62b   : >> { %v2654_v61 = vpop.permute.xlu1 %2653 }
 0x62c   : >> { %v2670_v18 = vsel %vm361_vm3, %v2652_v43, %v2654_v61  ;;  %v8428_v1 = vpop.permute.xlu0 %2966 }
 0x62d   : >> { %3429 = vrot.lane.b32.xlu1 %v8161_v57, %s7291_s13  ;;  %2845 = vmatprep.subr.bf16.mxu1 %v2670_v18 }
 0x62e   : >> { %3435 = vrot.lane.b32.xlu0 %v8184_v27, %s7291_s13  ;;  %2846 = vmatpush1.bf16.msra.mxu1 %v2669_v4 }
 0x62f   : >> { %v3031_v45 = vpop.permute.xlu1 %3030 }
 0x630   : >> { %v8435_v7 = vpop.permute.xlu0 %3028 }
 0x631   : >> { %v8441_v12 = vsel %vm596_vm5, %v8435_v7, %v3031_v45  ;;  %3439 = vrot.lane.b32.xlu1 %v8241_v49, %s7291_s13  ;;  %v3483_v49 = vmul.bf16 %v8206_v30, %v7905_v25  ;;  %v2740_v25 = vsel %vm410_vm8, %v8412_v42, %v8378_v62  ;;  %v2739_v45 = vsel %vm410_vm8, %v8384_v54, %v8412_v42  ;;  %v6662_v62 = vld [vmem:[%s8028_s7 + $0xa0] sm:$0xff]  ;;  %v6664_v42 = vld [vmem:[%s8028_s7 + $0xb0] sm:$0xff] }
 0x632   : >> { %3389 = vrot.lane.b32.xlu0 %v3355_v46, %s7290_s21 }
 0x633   : >> { %v8446_v32 = vpop.permute.xlu1 %2725 }
 0x634   : >> { %v8448_v31 = vpop.permute.xlu0 %2723 }
 0x635   : >> { %3443 = vrot.lane.b32.xlu1 %v8192_v22, %s7291_s13  ;;  %v2742_v46 = vsel %vm410_vm8, %v8448_v31, %v8446_v32 }
 0x636   : >> { %3445 = vrot.lane.b32.xlu0 %v8264_v6, %s7291_s13  ;;  %v3488_v6 = vmul.bf16 %v8298_v41, %v7907_v26  ;;  %v6660_v26 = vld [vmem:[%s8028_s7 + $0x90] sm:$0xff] }
 0x637   : >> { %v8454_v2 = vpop.permute.xlu1 %2970 }
 0x638   : >> { %v8456_v34 = vpop.permute.xlu0 %2968 }
 0x639   : >> { %3441 = vrot.lane.b32.xlu1 %v8206_v30, %s7291_s13 }
 0x63a   : >> { %3449 = vrot.lane.b32.xlu0 %v8213_v28, %s7291_s13  ;;  %v6659_v28 = vld [vmem:[%s8028_s7 + $0x88] sm:$0xff] }
 0x63b   : >> { %v2656_v38 = vpop.permute.xlu1 %2655 }
 0x63c   : >> { %v2660_v23 = vpop.permute.xlu0 %2659 }
 0x63d   : >> { %3451 = vrot.lane.b32.xlu1 %v8298_v41, %s7291_s13  ;;  %v6661_v41 = vld [vmem:[%s8028_s7 + $0x98] sm:$0xff] }
 0x63e   : >> { %3447 = vrot.lane.b32.xlu0 %v8226_v35, %s7291_s13 }
 0x63f   : >> { %v2658_v13 = vpop.permute.xlu1 %2657 }
 0x640   : >> { %v2671_v8 = vsel %vm361_vm3, %v2656_v38, %v2658_v13  ;;  %v2672_v55 = vsel %vm361_vm3, %v2658_v13, %v2660_v23  ;;  %v8470_v44 = vpop.permute.xlu0 %3036  ;;  %v6663_v23 = vld [vmem:[%s8028_s7 + $0xa8] sm:$0xff] }
 0x641   : >> { %3503 = vrot.lane.b32.xlu1 %v3478_v33, %s7292_s10  ;;  %2847 = vmatprep.subr.bf16.mxu1 %v2672_v55  ;;  %v2741_v33 = vsel %vm410_vm8, %v8421_v51, %v8448_v31 }
 0x642   : >> { %3505 = vrot.lane.b32.xlu0 %v3479_v60, %s7292_s10  ;;  %2848 = vmatpush1.bf16.msra.mxu1 %v2671_v8  ;;  %v6665_v8 = vld [vmem:[%s8028_s7 + $0xb8] sm:$0xff]  ;;  %s9732_s7 = smov (%p1194_p3), 17  }
 0x643   : >> { %v8476_v36 = vpop.permute.xlu1 %2727 }
 0x644   : >> { %v2732_v48 = vpop.permute.xlu0 %2731 }
 0x645   : >> { %3501 = vrot.lane.b32.xlu1 %v3477_v16, %s7292_s10 }
 0x646   : >> { %3509 = vrot.lane.b32.xlu0 %v3481_v50, %s7292_s10  ;;  %v7103_v50 = vld [vmem:[%s7811_s15 + $0xc0] ss:$8 sps:$4 sm:$0xff]  }
 0x647   : >> { %v8484_v63 = vpop.permute.xlu1 %2972 }
 0x648   : >> { %v8488_v5 = vpop.permute.xlu0 %2976 }
 0x649   : >> { %3511 = vrot.lane.b32.xlu1 %v3482_v52, %s7292_s10  ;;  %v2985_v52 = vsel %vm575_vm7, %v8419_v0, %v8388_v11 }
 0x64a   : >> { %3507 = vrot.lane.b32.xlu0 %v3480_v53, %s7292_s10  ;;  %v7106_v53 = vld [vmem:[%s7811_s15 + $0xd4] ss:$8 sps:$4 sm:$0xff]  }
 0x64b   : >> { %v8494_v57 = vpop.permute.xlu1 %3034 }
 0x64c   : >> { %v2662_v10 = vpop.permute.xlu0 %2661 }
 0x64d   : >> { %3515 = vrot.lane.b32.xlu1 %v3484_v40, %s7292_s10 }
 0x64e   : >> { %3517 = vrot.lane.b32.xlu0 %v3485_v9, %s7292_s10  ;;  %v2987_v9 = vsel %vm575_vm7, %v8456_v34, %v8454_v2 }
 0x64f   : >> { %v2730_v27 = vpop.permute.xlu1 %2729 }
 0x650   : >> { %v8504_v37 = vpop.permute.xlu0 %3038  ;;  %v2744_v54 = vsel %vm410_vm8, %v2730_v27, %v2732_v48  ;;  %v2743_v60 = vsel %vm410_vm8, %v8476_v36, %v2730_v27 }
 0x651   : >> { %3513 = vrot.lane.b32.xlu1 %v3483_v49, %s7292_s10  ;;  %v2986_v49 = vsel %vm575_vm7, %v8428_v1, %v8456_v34 }
 0x652   : >> { %3521 = vrot.lane.b32.xlu0 %v3487_v59, %s7292_s10  ;;  %v7108_v59 = vld [vmem:[%s7811_s15 + $0xd0] ss:$8 sps:$4 sm:$0xff]  }
 0x653   : >> { %v8510_v22 = vpop.permute.xlu1 %2974 }
 0x654   : >> { %v2664_v24 = vpop.permute.xlu0 %2663 }
 0x655   : >> { %3523 = vrot.lane.b32.xlu1 %v3488_v6, %s7292_s10  ;;  %v2673_v18 = vsel %vm361_vm3, %v2662_v10, %v2664_v24  ;;  %v2984_v10 = vsel %vm575_vm7, %v8394_v56, %v8419_v0  ;;  %v2989_v56 = vsel %vm575_vm7, %v8510_v22, %v8488_v5  ;;  %v7109_v0 = vld [vmem:[%s7811_s15 + $0xe4] ss:$8 sps:$4 sm:$0xff]  }
 0x656   : >> { %3519 = vrot.lane.b32.xlu0 %v3486_v20, %s7292_s10 }
 0x657   : >> { %v2666_v30 = vpop.permute.xlu1 %2665 }
 0x658   : >> { %v2674_v43 = vsel %vm361_vm3, %v2664_v24, %v2666_v30  ;;  %v2734_v61 = vpop.permute.xlu0 %2733  ;;  %v2988_v24 = vsel %vm575_vm7, %v8484_v63, %v8510_v22  ;;  %v3045_v30 = vsel %vm596_vm5, %v8402_v29, %v8368_v47  ;;  %v7112_v63 = vld [vmem:[%s7811_s15 + $0xf4] ss:$8 sps:$4 sm:$0xff]   ;;  %v3046_v47 = vsel %vm596_vm5, %v8408_v39, %v8435_v7 }
 0x659   : >> { %3760 = vperm.xlu1 %7066, %v6658_v58   ;;  %2849 = vmatprep.subr.bf16.mxu1 %v2674_v43  ;;  %v7111_v58 = vld [vmem:[%s7811_s15 + $0xe0] ss:$8 sps:$4 sm:$0xff]   ;;  %v3044_v43 = vsel %vm596_vm5, %v8364_v14, %v8402_v29 }
 0x65a   : >> { %3765 = vperm.xlu0 %7065, %v6659_v28   ;;  %2850 = vmatpush1.bf16.msra.mxu1 %v2673_v18 }
 0x65b   : >> { %v8526_v35 = vpop.permute.xlu1 %3032  ;;  %2851 = vmatprep.subr.bf16.mxu1 %v2740_v25  ;;  %v7114_v25 = vld [vmem:[%s7811_s15 + $0xf0] ss:$8 sps:$4 sm:$0xff]  }
 0x65c   : >> { %v2979_v4 = vpop.permute.xlu0 %2978 }
 0x65d   : >> { %3770 = vperm.xlu1 %7066, %v6660_v26   ;;  %v3049_v26 = vsel %vm596_vm5, %v8494_v57, %v8470_v44 }
 0x65e   : >> { %3775 = vperm.xlu0 %7065, %v6661_v41   ;;  %2852 = vmatpush1.bf16.msra.mxu1 %v2739_v45  ;;  %v7117_v41 = vld [vmem:[%s7811_s15 + $0x104] ss:$8 sps:$4 sm:$0xff]  }
 0x65f   : >> { %v8536_v38 = vpop.permute.xlu1 %3094  ;;  %2853 = vmatprep.subr.bf16.mxu1 %v2742_v46 }
 0x660   : >> { %v8539_v13 = vpop.permute.xlu0 %3040 }
 0x661   : >> { %3780 = vperm.xlu1 %7066, %v6662_v62   ;;  %v3050_v46 = vsel %vm596_vm5, %v8504_v37, %v8539_v13 }
 0x662   : >> { %3785 = vperm.xlu0 %7065, %v6663_v23   ;;  %2854 = vmatpush1.bf16.msra.mxu1 %v2741_v33 }
 0x663   : >> { %v8546_v32 = vpop.permute.xlu1 %3042  ;;  %2855 = vmatprep.subr.bf16.mxu1 %v2744_v54 }
 0x664   : >> { %v2736_v55 = vpop.permute.xlu0 %2735  ;;  %v3051_v39 = vsel %vm596_vm5, %v8539_v13, %v8546_v32 }
 0x665   : >> { %3790 = vperm.xlu1 %7066, %v6664_v42   ;;  %v2745_v48 = vsel %vm410_vm8, %v2734_v61, %v2736_v55 }
 0x666   : >> { %3795 = vperm.xlu0 %7065, %v6665_v8   ;;  %2856 = vmatpush1.bf16.msra.mxu1 %v2743_v60 }
 0x667   : >> { %v2738_v51 = vpop.permute.xlu1 %2737 }
 0x668   : >> { %v2746_v31 = vsel %vm410_vm8, %v2736_v55, %v2738_v51  ;;  %v8552_v16 = vpop.permute.xlu0 %3096 }
 0x669   : >> { %2857 = vmatprep.subr.bf16.mxu1 %v2746_v31  ;;  %7140 = vset.pattern.permute.xlu1 (%p1194_p3), %v7274_v3 }
 0x66a   : >> { %2858 = vmatpush1.bf16.msra.mxu1 %v2745_v48  ;;  %7139 = vset.pattern.permute.xlu0 (%p1194_p3), %v7274_v3 }
 0x66b   : >> { %v2983_v36 = vpop.permute.xlu1 %2982  ;;  %3212 = vmatprep.subr.bf16.mxu1 %v2985_v52 }
 0x66c   : >> { %v8560_v40 = vpop.permute.xlu0 %3100 }
 0x66d   : >> { %2868 = vmatmul.mubr.bf16.vlgmr.msra.gmra.mrb[0].mxu1 %v7103_v50 }
 0x66e   : >> { %3213 = vmatpush1.bf16.msra.mxu1 %v2984_v10  ;;  %6675 = vmatprep.mubr.msk.bf16.mxu1 %vm1465_vm10, %v7106_v53  ;;  %v7115_v53 = vld [vmem:[%s7811_s15 + $0x100] ss:$8 sps:$4 sm:$0xff]  }
 0x66f   : >> { %v8569_v11 = vpop.permute.xlu1 %3092  ;;  %3214 = vmatprep.subr.bf16.mxu1 %v2987_v9 }
 0x670   : >> { %v8571_v27 = vpop.permute.xlu0 %3098  ;;  %v3116_v54 = vsel %vm626_vm9, %v8569_v11, %v8536_v38 }
 0x671   : >> { %v3118_v8 = vsel %vm626_vm9, %v8571_v27, %v8560_v40 }
 0x672   : >> { %3215 = vmatpush1.bf16.msra.mxu1 %v2986_v49 }
 0x673   : >> { %v3103_v2 = vpop.permute.xlu1 %3102  ;;  %3216 = vmatprep.subr.bf16.mxu1 %v2989_v56  ;;  %v7120_v56 = vld [vmem:[%s7811_s15 + $0x110] ss:$8 sps:$4 sm:$0xff]  }
 0x674   : >> { %v2981_v6 = vpop.permute.xlu0 %2980  ;;  %v3119_v37 = vsel %vm626_vm9, %v8560_v40, %v3103_v2 }
 0x675   : >> { %v2991_v20 = vsel %vm575_vm7, %v2981_v6, %v2983_v36  ;;  %2878 = vmatmul.mubr.bf16.gmra.mrb[4].mxu1 %v7108_v59  ;;  %v2990_v5 = vsel %vm575_vm7, %v2979_v4, %v2981_v6  ;;  %v7118_v36 = vld [vmem:[%s7811_s15 + $0x114] ss:$8 sps:$4 sm:$0xff]  }
 0x676   : >> { %3217 = vmatpush1.bf16.msra.mxu1 %v2988_v24  ;;  %6676 = vmatprep.mubr.msk.bf16.mxu1 %vm1465_vm10, %v7109_v0  ;;  %v7121_v0 = vld [vmem:[%s7811_s15 + $0x124] ss:$8 sps:$4 sm:$0xff]  }
 0x677   : >> { %v8586_v1 = vpop.permute.xlu1 %3106  ;;  %3218 = vmatprep.subr.bf16.mxu1 %v2991_v20 }
 0x678   : >> { %v3109_v34 = vpop.permute.xlu0 %3108 }
 0x679   : >> { %v3121_v55 = vsel %vm626_vm9, %v8586_v1, %v3109_v34 }
 0x67a   : >> { %3219 = vmatpush1.bf16.msra.mxu1 %v2990_v5 }
 0x67b   : >> { %v3105_v22 = vpop.permute.xlu1 %3104  ;;  %3220 = vmatprep.subr.bf16.mxu1 %v3045_v30  ;;  %v7123_v30 = vld [vmem:[%s7811_s15 + $0x120] ss:$8 sps:$4 sm:$0xff]  }
 0x67c   : >> { %v3111_v28 = vpop.permute.xlu0 %3110  ;;  %v3120_v31 = vsel %vm626_vm9, %v3105_v22, %v8586_v1 }
 0x67d   : >> { %2888 = vmatmul.mubr.bf16.gmra.mrb[8].mxu1 %v7111_v58 }
 0x67e   : >> { %3221 = vmatpush1.bf16.msra.mxu1 %v3044_v43  ;;  %6677 = vmatprep.mubr.msk.bf16.mxu1 %vm1465_vm10, %v7112_v63  ;;  %v7124_v63 = vld [vmem:[%s7811_s15 + $0x134] ss:$8 sps:$4 sm:$0xff]  }
 0x67f   : >> { %v3115_v61 = vpop.permute.xlu1 %3114  ;;  %3222 = vmatprep.subr.bf16.mxu1 %v8441_v12  ;;  %v3048_v12 = vsel %vm596_vm5, %v8526_v35, %v8494_v57  ;;  %v3117_v35 = vsel %vm626_vm9, %v8536_v38, %v8552_v16 }
 0x680   : >> { %v3374_v18 = vpop.permute.xlu0 %3373 }
 0x682   : >> { %3223 = vmatpush1.bf16.msra.mxu1 %v3046_v47 }
 0x683   : >> { %v3372_v14 = vpop.permute.xlu1 %3371  ;;  %3224 = vmatprep.subr.bf16.mxu1 %v3049_v26  ;;  %v7126_v26 = vld [vmem:[%s7811_s15 + $0x130] ss:$8 sps:$4 sm:$0xff]  }
 0x684   : >> { %v3394_v29 = vsel %vm821_vm11, %v3372_v14, %v3374_v18  ;;  %v3378_v4 = vpop.permute.xlu0 %3377 }
 0x685   : >> { %3410 = vst [vmem:[#allocation4 + $0x8] sm:$0xff] %v3394_v29  ;;  %2898 = vmatmul.mubr.bf16.gmra.mrb[12].mxu1 %v7114_v25 }
 0x686   : >> { %3225 = vmatpush1.bf16.msra.mxu1 %v3048_v12  ;;  %6686 = vmatprep.mubr.msk.bf16.mxu1 %vm1465_vm10, %v7117_v41  ;;  %v7129_v41 = vld [vmem:[%s7811_s15 + $0x144] ss:$8 sps:$4 sm:$0xff]  }
 0x687   : >> { %v3370_v7 = vpop.permute.xlu1 %3369  ;;  %3226 = vmatprep.subr.bf16.mxu1 %v3051_v39 }
 0x688   : >> { %v3393_v44 = vsel %vm821_vm11, %v3370_v7, %v3372_v14  ;;  %v3376_v45 = vpop.permute.xlu0 %3375 }
 0x689   : >> { %3409 = vst [vmem:[#allocation4] sm:$0xff] %v3393_v44  ;;  %v3395_v57 = vsel %vm821_vm11, %v3376_v45, %v3378_v4 }
 0x68a   : >> { %3411 = vst [vmem:[#allocation4 + $0x10] sm:$0xff] %v3395_v57  ;;  %3227 = vmatpush1.bf16.msra.mxu1 %v3050_v46 }
 0x68b   : >> { %v3380_v62 = vpop.permute.xlu1 %3379  ;;  %3228 = vmatprep.subr.bf16.mxu1 %v3117_v35 }
 0x68c   : >> { %v3396_v23 = vsel %vm821_vm11, %v3378_v4, %v3380_v62  ;;  %v3386_v33 = vpop.permute.xlu0 %3385 }
 0x68d   : >> { %3412 = vst [vmem:[#allocation4 + $0x18] sm:$0xff] %v3396_v23 }
 0x68e   : >> { %3229 = vmatpush1.bf16.msra.mxu1 %v3116_v54 }
 0x68f   : >> { %v3384_v13 = vpop.permute.xlu1 %3383  ;;  %3230 = vmatprep.subr.bf16.mxu1 %v3119_v37 }
 0x690   : >> { %v3398_v42 = vsel %vm821_vm11, %v3384_v13, %v3386_v33  ;;  %v3388_v32 = vpop.permute.xlu0 %3387 }
 0x692   : >> { %3231 = vmatpush1.bf16.msra.mxu1 %v3118_v8 }
 0x693   : >> { %v3382_v38 = vpop.permute.xlu1 %3381  ;;  %3232 = vmatprep.subr.bf16.mxu1 %v3121_v55  ;;  %v7127_v55 = vld [vmem:[%s7811_s15 + $0x140] ss:$8 sps:$4 sm:$0xff]  }
 0x694   : >> { %v3397_v60 = vsel %vm821_vm11, %v3382_v38, %v3384_v13  ;;  %v3113_v51 = vpop.permute.xlu0 %3112  ;;  %v7130_v38 = vld [vmem:[%s7811_s15 + $0x154] ss:$8 sps:$4 sm:$0xff]  }
 0x695   : >> { %v3123_v16 = vsel %vm626_vm9, %v3113_v51, %v3115_v61  ;;  %v3122_v52 = vsel %vm626_vm9, %v3111_v28, %v3113_v51  ;;  %v7133_v51 = vld [vmem:[%s7811_s15 + $0x164] ss:$8 sps:$4 sm:$0xff]  }
 0x696   : >> { %3233 = vmatpush1.bf16.msra.mxu1 %v3120_v31  ;;  %v7135_v31 = vld [vmem:[%s7811_s15 + $0x160] ss:$8 sps:$4 sm:$0xff]  }
 0x697   : >> { %v3392_v48 = vpop.permute.xlu1 %3391  ;;  %3234 = vmatprep.subr.bf16.mxu1 %v3123_v16  ;;  %v7136_v16 = vld [vmem:[%s7811_s15 + $0x174] ss:$8 sps:$4 sm:$0xff]  }
 0x698   : >> { %v3434_v50 = vpop.permute.xlu0 %3433 }
 0x69a   : >> { %3235 = vmatpush1.bf16.msra.mxu1 %v3122_v52 }
 0x69b   : >> { %v3432_v40 = vpop.permute.xlu1 %3431  ;;  %3621 = vmatprep.subr.bf16.mxu1 %v3394_v29 }
 0x69c   : >> { %v3454_v10 = vsel %vm842_vm13, %v3432_v40, %v3434_v50  ;;  %v3438_v9 = vpop.permute.xlu0 %3437 }
 0x69d   : >> { %3245 = vmatmul.mubr.bf16.vlgmr.msra.gmra.mrb[0].mxu1 %v7115_v53 }
 0x69e   : >> { %3622 = vmatpush1.bf16.msra.mxu1 %v3393_v44  ;;  %6687 = vmatprep.mubr.msk.bf16.mxu1 %vm1465_vm10, %v7118_v36 }
 0x69f   : >> { %v3430_v11 = vpop.permute.xlu1 %3429  ;;  %3623 = vmatprep.subr.bf16.mxu1 %v3396_v23 }
 0x6a0   : >> { %v3453_v27 = vsel %vm842_vm13, %v3430_v11, %v3432_v40  ;;  %v3436_v49 = vpop.permute.xlu0 %3435 }
 0x6a1   : >> { %v3455_v59 = vsel %vm842_vm13, %v3436_v49, %v3438_v9 }
 0x6a2   : >> { %3624 = vmatpush1.bf16.msra.mxu1 %v3395_v57 }
 0x6a3   : >> { %v3440_v2 = vpop.permute.xlu1 %3439  ;;  %3625 = vmatprep.subr.bf16.mxu1 %v3398_v42 }
 0x6a4   : >> { %v3456_v6 = vsel %vm842_vm13, %v3438_v9, %v3440_v2  ;;  %v3390_v24 = vpop.permute.xlu0 %3389 }
 0x6a5   : >> { %v3399_v20 = vsel %vm821_vm11, %v3388_v32, %v3390_v24  ;;  %v3400_v1 = vsel %vm821_vm11, %v3390_v24, %v3392_v48  ;;  %3255 = vmatmul.mubr.bf16.gmra.mrb[4].mxu1 %v7120_v56  ;;  %v7138_v48 = vld [vmem:[%s7811_s15 + $0x170] ss:$8 sps:$4 sm:$0xff]  }
 0x6a6   : >> { %3626 = vmatpush1.bf16.msra.mxu1 %v3397_v60  ;;  %6688 = vmatprep.mubr.msk.bf16.mxu1 %vm1465_vm10, %v7121_v0  ;;  %v7132_v60 = vld [vmem:[%s7811_s15 + $0x150] ss:$8 sps:$4 sm:$0xff]  }
 0x6a7   : >> { %v3444_v34 = vpop.permute.xlu1 %3443  ;;  %3627 = vmatprep.subr.bf16.mxu1 %v3400_v1 }
 0x6a8   : >> { %v3446_v5 = vpop.permute.xlu0 %3445 }
 0x6a9   : >> { %v3458_v58 = vsel %vm842_vm13, %v3444_v34, %v3446_v5 }
 0x6aa   : >> { %3628 = vmatpush1.bf16.msra.mxu1 %v3399_v20 }
 0x6ab   : >> { %v3442_v22 = vpop.permute.xlu1 %3441  ;;  %3629 = vmatprep.subr.bf16.mxu1 %v3454_v10 }
 0x6ac   : >> { %v3457_v28 = vsel %vm842_vm13, %v3442_v22, %v3444_v34  ;;  %v3450_v43 = vpop.permute.xlu0 %3449 }
 0x6ad   : >> { %3265 = vmatmul.mubr.bf16.gmra.mrb[8].mxu1 %v7123_v30 }
 0x6ae   : >> { %3630 = vmatpush1.bf16.msra.mxu1 %v3453_v27  ;;  %6689 = vmatprep.mubr.msk.bf16.mxu1 %vm1465_vm10, %v7124_v63 }
 0x6af   : >> { %v3452_v61 = vpop.permute.xlu1 %3451  ;;  %3631 = vmatprep.subr.bf16.mxu1 %v3456_v6 }
 0x6b0   : >> { %v3460_v18 = vsel %vm842_vm13, %v3450_v43, %v3452_v61  ;;  %v3448_v47 = vpop.permute.xlu0 %3447 }
 0x6b1   : >> { %v3459_v25 = vsel %vm842_vm13, %v3448_v47, %v3450_v43 }
 0x6b2   : >> { %3632 = vmatpush1.bf16.msra.mxu1 %v3455_v59 }
 0x6b3   : >> { %v3504_v14 = vpop.permute.xlu1 %3503  ;;  %3633 = vmatprep.subr.bf16.mxu1 %v3458_v58 }
 0x6b4   : >> { %v3506_v29 = vpop.permute.xlu0 %3505 }
 0x6b5   : >> { %v3526_v4 = vsel %vm872_vm14, %v3504_v14, %v3506_v29  ;;  %3275 = vmatmul.mubr.bf16.gmra.mrb[12].mxu1 %v7126_v26 }
 0x6b6   : >> { %3634 = vmatpush1.bf16.msra.mxu1 %v3457_v28  ;;  %6698 = vmatprep.mubr.msk.bf16.mxu1 %vm1465_vm10, %v7129_v41 }
 0x6b7   : >> { %v3502_v12 = vpop.permute.xlu1 %3501  ;;  %3635 = vmatprep.subr.bf16.mxu1 %v3460_v18 }
 0x6b8   : >> { %v3525_v39 = vsel %vm872_vm14, %v3502_v12, %v3504_v14  ;;  %v3510_v7 = vpop.permute.xlu0 %3509 }
 0x6ba   : >> { %3636 = vmatpush1.bf16.msra.mxu1 %v3459_v25 }
 0x6bb   : >> { %v3512_v44 = vpop.permute.xlu1 %3511  ;;  %3637 = vmatprep.subr.bf16.mxu1 %v3526_v4 }
 0x6bc   : >> { %v3528_v45 = vsel %vm872_vm14, %v3510_v7, %v3512_v44  ;;  %v3508_v46 = vpop.permute.xlu0 %3507 }
 0x6bd   : >> { %v3527_v57 = vsel %vm872_vm14, %v3508_v46, %v3510_v7 }
 0x6be   : >> { %3638 = vmatpush1.bf16.msra.mxu1 %v3525_v39 }
 0x6bf   : >> { %v3516_v35 = vpop.permute.xlu1 %3515  ;;  %3639 = vmatprep.subr.bf16.mxu1 %v3528_v45 }
 0x6c0   : >> { %v3518_v62 = vpop.permute.xlu0 %3517 }
 0x6c1   : >> { %v3530_v23 = vsel %vm872_vm14, %v3516_v35, %v3518_v62 }
 0x6c2   : >> { %3640 = vmatpush1.bf16.msra.mxu1 %v3527_v57 }
 0x6c3   : >> { %v3514_v33 = vpop.permute.xlu1 %3513  ;;  %3641 = vmatprep.subr.bf16.mxu1 %v3530_v23 }
 0x6c4   : >> { %v3529_v54 = vsel %vm872_vm14, %v3514_v33, %v3516_v35  ;;  %v3522_v37 = vpop.permute.xlu0 %3521 }
 0x6c6   : >> { %3642 = vmatpush1.bf16.msra.mxu1 %v3529_v54 }
 0x6c7   : >> { %v3524_v13 = vpop.permute.xlu1 %3523 }
 0x6c8   : >> { %v3532_v42 = vsel %vm872_vm14, %v3522_v37, %v3524_v13  ;;  %v3520_v32 = vpop.permute.xlu0 %3519 }
 0x6c9   : >> { %v3531_v8 = vsel %vm872_vm14, %v3520_v32, %v3522_v37  ;;  %3643 = vmatprep.subr.bf16.mxu1 %v3532_v42 }
 0x6ca   : >> { %3644 = vmatpush1.bf16.msra.mxu1 %v3531_v8 }
 0x6cd   : >> { %3654 = vmatmul.mubr.bf16.vlgmr.msra.gmra.mrb[0].mxu1 %v7127_v55 }
 0x6ce   : >> { %6699 = vmatprep.mubr.msk.bf16.mxu1 %vm1465_vm10, %v7130_v38 }
 0x6d5   : >> { %3664 = vmatmul.mubr.bf16.gmra.mrb[4].mxu1 %v7132_v60 }
 0x6d6   : >> { %6700 = vmatprep.mubr.msk.bf16.mxu1 %vm1465_vm10, %v7133_v51 }
 0x6d8   : >> { %v3761_v50 = vpop.permute.xlu1 %3760 }
 0x6d9   : >> { %v3766_v40 = vpop.permute.xlu0 %3765 }
 0x6dc   : >> { %v3771_v24 = vpop.permute.xlu1 %3770 }
 0x6dd   : >> { %3674 = vmatmul.mubr.bf16.gmra.mrb[8].mxu1 %v7135_v31  ;;  %v3776_v58 = vpop.permute.xlu0 %3775 }
 0x6de   : >> { %6701 = vmatprep.mubr.msk.bf16.mxu1 %vm1465_vm10, %v7136_v16 }
 0x6e0   : >> { %v3781_v41 = vpop.permute.xlu1 %3780 }
 0x6e1   : >> { %v3786_v39 = vpop.permute.xlu0 %3785 }
 0x6e4   : >> { %v3791_v37 = vpop.permute.xlu1 %3790 }
 0x6e5   : >> { %3684 = vmatmul.mubr.bf16.gmra.mrb[12].mxu1 %v7138_v48  ;;  %v3796_v55 = vpop.permute.xlu0 %3795 }
 0x7a0   : >> { %v3655_v52 = vpop.f32.mrb[0].mxu1 }
 0x7a1   : >> { %v3657_v53 = vpop.f32.mrb[1].mxu1  ;;  %v3798_v36 = vadd.f32 %v3761_v50, %v3655_v52 }
 0x7a2   : >> { %v3659_v10 = vpop.f32.mrb[2].mxu1  ;;  %v3799_v9 = vadd.f32 %v3761_v50, %v3657_v53 }
 0x7a3   : >> { %v3661_v11 = vpop.f32.mrb[3].mxu1  ;;  %v3800_v27 = vadd.f32 %v3766_v40, %v3659_v10  ;;  %v3814_v59 = vmax.f32 %v3798_v36, 0.0 }
 0x7a4   : >> { %v3801_v49 = vadd.f32 %v3766_v40, %v3661_v11  ;;  %v3815_v0 = vmax.f32 %v3799_v9, 0.0 }
 0x7a5   : >> { %v3816_v56 = vmax.f32 %v3800_v27, 0.0 }
 0x7a6   : >> { %v3817_v2 = vmax.f32 %v3801_v49, 0.0 }
 0x7a7   : >> { %v3830_v6 = vpack.c.bf16 %v3816_v56, %v3814_v59 }
 0x7a8   : >> { %v3665_v20 = vpop.f32.mrb[4].mxu1  ;;  %v3831_v1 = vpack.c.bf16 %v3817_v2, %v3815_v0 }
 0x7a9   : >> { %v3667_v34 = vpop.f32.mrb[5].mxu1  ;;  %3846 = vrot.lane.b32.xlu1 %v3830_v6, %s7294_s6  ;;  %v3802_v5 = vadd.f32 %v3771_v24, %v3665_v20 }
 0x7aa   : >> { %v3669_v30 = vpop.f32.mrb[6].mxu1  ;;  %3848 = vrot.lane.b32.xlu0 %v3831_v1, %s7294_s6  ;;  %v3803_v63 = vadd.f32 %v3771_v24, %v3667_v34 }
 0x7ab   : >> { %v3671_v22 = vpop.f32.mrb[7].mxu1  ;;  %v3804_v28 = vadd.f32 %v3776_v58, %v3669_v30  ;;  %v3818_v61 = vmax.f32 %v3802_v5, 0.0 }
 0x7ac   : >> { %v3805_v43 = vadd.f32 %v3776_v58, %v3671_v22  ;;  %v3819_v47 = vmax.f32 %v3803_v63, 0.0 }
 0x7ad   : >> { %v3820_v18 = vmax.f32 %v3804_v28, 0.0 }
 0x7ae   : >> { %v3821_v25 = vmax.f32 %v3805_v43, 0.0 }
 0x7af   : >> { %v3832_v26 = vpack.c.bf16 %v3820_v18, %v3818_v61 }
 0x7b0   : >> { %v3675_v14 = vpop.f32.mrb[8].mxu1  ;;  %v3833_v29 = vpack.c.bf16 %v3821_v25, %v3819_v47 }
 0x7b1   : >> { %v3677_v4 = vpop.f32.mrb[9].mxu1  ;;  %3850 = vrot.lane.b32.xlu1 %v3832_v26, %s7294_s6  ;;  %v3806_v12 = vadd.f32 %v3781_v41, %v3675_v14 }
 0x7b2   : >> { %v3679_v7 = vpop.f32.mrb[10].mxu1  ;;  %3852 = vrot.lane.b32.xlu0 %v3833_v29, %s7294_s6  ;;  %v3807_v44 = vadd.f32 %v3781_v41, %v3677_v4 }
 0x7b3   : >> { %v3681_v45 = vpop.f32.mrb[11].mxu1  ;;  %v3808_v46 = vadd.f32 %v3786_v39, %v3679_v7  ;;  %v3822_v35 = vmax.f32 %v3806_v12, 0.0 }
 0x7b4   : >> { %v3809_v57 = vadd.f32 %v3786_v39, %v3681_v45  ;;  %v3823_v23 = vmax.f32 %v3807_v44, 0.0 }
 0x7b5   : >> { %v3824_v62 = vmax.f32 %v3808_v46, 0.0 }
 0x7b6   : >> { %v3825_v33 = vmax.f32 %v3809_v57, 0.0 }
 0x7b7   : >> { %v3834_v54 = vpack.c.bf16 %v3824_v62, %v3822_v35 }
 0x7b8   : >> { %v3685_v13 = vpop.f32.mrb[12].mxu1  ;;  %v3835_v42 = vpack.c.bf16 %v3825_v33, %v3823_v23 }
 0x7b9   : >> { %v3687_v32 = vpop.f32.mrb[13].mxu1  ;;  %3854 = vrot.lane.b32.xlu1 %v3834_v54, %s7294_s6  ;;  %v3810_v8 = vadd.f32 %v3791_v37, %v3685_v13 }
 0x7ba   : >> { %v3689_v38 = vpop.f32.mrb[14].mxu1  ;;  %3856 = vrot.lane.b32.xlu0 %v3835_v42, %s7294_s6  ;;  %v3811_v60 = vadd.f32 %v3791_v37, %v3687_v32 }
 0x7bb   : >> { %v3691_v51 = vpop.f32.mrb[15].mxu1  ;;  %v3812_v31 = vadd.f32 %v3796_v55, %v3689_v38  ;;  %v3826_v48 = vmax.f32 %v3810_v8, 0.0 }
 0x7bc   : >> { %v3813_v16 = vadd.f32 %v3796_v55, %v3691_v51  ;;  %v3827_v52 = vmax.f32 %v3811_v60, 0.0 }
 0x7bd   : >> { %v3828_v50 = vmax.f32 %v3812_v31, 0.0 }
 0x7be   : >> { %v3829_v53 = vmax.f32 %v3813_v16, 0.0 }
 0x7bf   : >> { %v3836_v36 = vpack.c.bf16 %v3828_v50, %v3826_v48 }
 0x7c0   : >> { %v3837_v40 = vpack.c.bf16 %v3829_v53, %v3827_v52 }
 0x7c1   : >> { %3858 = vrot.lane.b32.xlu1 %v3836_v36, %s7294_s6 }
 0x7c2   : >> { %3860 = vrot.lane.b32.xlu0 %v3837_v40, %s7294_s6 }
 0x7c5   : > { %4266 = vrot.lane.b32.xlu1 (%p1194_p3), %v7380_v15, %s7267_s24 }
 0x7c6   : > { %4012 = vrot.lane.b32.xlu0 (%p1194_p3), %v7387_v17, %s7265_s19 }
 0x7c9   : > { %4268 = vrot.lane.b32.xlu1 (%p1194_p3), %v7389_v19, %s7267_s24  ;;  %s9730_s24 = smov (%p1194_p3), 95  }
 0x7ca   : > { %4014 = vrot.lane.b32.xlu0 (%p1194_p3), %v7394_v21, %s7265_s19  ;;  %s9728_s19 = smov (%p1194_p3), 110  }
 0x81b   : >> { %v3847_v10 = vpop.permute.xlu1 %3846 }
 0x81c   : >> { %3878 = vst.msk [vmem:[#allocation2] sm:$0xff] %vm1179_vm12, %v3847_v10  ;;  %v3849_v9 = vpop.permute.xlu0 %3848 }
 0x81d   : >> { %v3862_v11 = vsel %vm242_vm15, %v3847_v10, %v3849_v9  ;;  %3880 = vst.msk [vmem:[#allocation2 + $0x10] sm:$0xff] %vm242_vm15, %v3849_v9 }
 0x81e   : >> { %3879 = vst [vmem:[#allocation2 + $0x8] sm:$0xff] %v3862_v11 }
 0x823   : >> { %v3851_v27 = vpop.permute.xlu1 %3850  ;;  %v8709_v34 = vld [vmem:[#allocation2] sm:$0xff] (%p1194_p3) }
 0x824   : >> { %3881 = vst.msk [vmem:[#allocation2 + $0x18] sm:$0xff] %vm1179_vm12, %v3851_v27  ;;  %v3853_v49 = vpop.permute.xlu0 %3852  ;;  %v3936_v58 = vmul.bf16 (%p1194_p3), %v8709_v34, %v7380_v15  ;;  %v8721_v22 = vld [vmem:[#allocation2 + $0x10] sm:$0xff] (%p1194_p3) }
 0x825   : >> { %v3863_v59 = vsel %vm242_vm15, %v3851_v27, %v3853_v49  ;;  %3883 = vst.msk [vmem:[#allocation2 + $0x28] sm:$0xff] %vm242_vm15, %v3853_v49  ;;  %v8707_v1 = vld [vmem:[#allocation2 + $0x8] sm:$0xff] (%p1194_p3)  ;;  %3968 = vrot.lane.b32.xlu1 (%p1194_p3), %v8721_v22, %s7270_s27 }
 0x826   : >> { %3882 = vst [vmem:[#allocation2 + $0x20] sm:$0xff] %v3863_v59  ;;  %v3937_v5 = vmul.bf16 (%p1194_p3), %v8707_v1, %v7389_v19  ;;  %3966 = vrot.lane.b32.xlu0 (%p1194_p3), %v8707_v1, %s7270_s27 }
 0x828   : > { %4165 = vmatprep.subr.bf16.mxu0 (%p1194_p3), %v3937_v5 }
 0x829   : > { %4166 = vmatpush1.bf16.msra.mxu0 (%p1194_p3), %v3936_v58  ;;  %4406 = vrot.lane.b32.xlu1 (%p1194_p3), %v7387_v17, %s7266_s23 }
 0x82a   : > { %3964 = vrot.lane.b32.xlu0 (%p1194_p3), %v8709_v34, %s7270_s27 }
 0x82b   : >> { %v3855_v56 = vpop.permute.xlu1 %3854  ;;  %v8723_v28 = vld [vmem:[#allocation2 + $0x18] sm:$0xff] (%p1194_p3) }
 0x82c   : >> { %3884 = vst.msk [vmem:[#allocation2 + $0x30] sm:$0xff] %vm1179_vm12, %v3855_v56  ;;  %v3857_v0 = vpop.permute.xlu0 %3856  ;;  %v3938_v61 = vmul.bf16 (%p1194_p3), %v8723_v28, %v7380_v15  ;;  %v8755_v29 = vld [vmem:[#allocation2 + $0x28] sm:$0xff] (%p1194_p3) }
 0x82d   : >> { %v3864_v2 = vsel %vm242_vm15, %v3855_v56, %v3857_v0  ;;  %3886 = vst.msk [vmem:[#allocation2 + $0x40] sm:$0xff] %vm242_vm15, %v3857_v0  ;;  %v8715_v30 = vld [vmem:[#allocation2 + $0x20] sm:$0xff] (%p1194_p3) }
 0x82e   : >> { %3885 = vst [vmem:[#allocation2 + $0x38] sm:$0xff] %v3864_v2  ;;  %v3939_v63 = vmul.bf16 (%p1194_p3), %v8715_v30, %v7389_v19  ;;  %4408 = vrot.lane.b32.xlu0 (%p1194_p3), %v7394_v21, %s7266_s23  ;;  %3972 = vrot.lane.b32.xlu1 (%p1194_p3), %v8715_v30, %s7270_s27  ;;  %s9729_s23 = smov (%p1194_p3), 96  }
 0x830   : > { %4167 = vmatprep.subr.bf16.mxu0 (%p1194_p3), %v3939_v63 }
 0x831   : > { %4168 = vmatpush1.bf16.msra.mxu0 (%p1194_p3), %v3938_v61 }
 0x832   : > { %1196 = sbr.rel (!%p1194_p3) target bundleno = 709 (0x2c5), region = 90  ;;  %3974 = vrot.lane.b32.xlu0 (%p1194_p3), %v8755_v29, %s7270_s27  ;;  %3970 = vrot.lane.b32.xlu1 (%p1194_p3), %v8723_v28, %s7270_s27 }
 0x833   : >> { %v3859_v6 = vpop.permute.xlu1 %3858  ;;  %v8735_v18 = vld [vmem:[#allocation2 + $0x30] sm:$0xff] (%p1194_p3) }
 0x834   : >> { %3887 = vst.msk [vmem:[#allocation2 + $0x48] sm:$0xff] %vm1179_vm12, %v3859_v6  ;;  %v3861_v24 = vpop.permute.xlu0 %3860  ;;  %v3940_v25 = vmul.bf16 (%p1194_p3), %v8735_v18, %v7380_v15  ;;  %v8765_v4 = vld [vmem:[#allocation2 + $0x40] sm:$0xff] (%p1194_p3) }
 0x835   : >> { %v3865_v20 = vsel %vm242_vm15, %v3859_v6, %v3861_v24  ;;  %3889 = vst.msk [vmem:[#allocation2 + $0x58] sm:$0xff] %vm242_vm15, %v3861_v24  ;;  %v8725_v43 = vld [vmem:[#allocation2 + $0x38] sm:$0xff] (%p1194_p3) }
 0x836   : >> { %3888 = vst [vmem:[#allocation2 + $0x50] sm:$0xff] %v3865_v20  ;;  %v3941_v3 = vmul.bf16 (%p1194_p3), %v8725_v43, %v7389_v19  ;;  %3978 = vrot.lane.b32.xlu0 (%p1194_p3), %v8725_v43, %s7270_s27  ;;  %3980 = vrot.lane.b32.xlu1 (%p1194_p3), %v8765_v4, %s7270_s27 }
 0x838   : > { %4169 = vmatprep.subr.bf16.mxu0 (%p1194_p3), %v3941_v3 }
 0x839   : > { %4170 = vmatpush1.bf16.msra.mxu0 %v3940_v25 }
 0x83a   : > { %3976 = vrot.lane.b32.xlu0 %v8735_v18, %s7270_s27 }
 0x83b   : > { %v8747_v41 = vld [vmem:[#allocation2 + $0x48] sm:$0xff] }
 0x83c   : > { %v3942_v14 = vmul.bf16 %v8747_v41, %v7380_v15  ;;  %v8775_v12 = vld [vmem:[#allocation2 + $0x58] sm:$0xff] }
 0x83d   : > { %v8737_v47 = vld [vmem:[#allocation2 + $0x50] sm:$0xff] }
 0x83e   : > { %v3943_v26 = vmul.bf16 %v8737_v47, %v7389_v19  ;;  %3984 = vrot.lane.b32.xlu1 %v8737_v47, %s7270_s27  ;;  %3986 = vrot.lane.b32.xlu0 %v8775_v12, %s7270_s27 }
 0x840   : > { %4171 = vmatprep.subr.bf16.mxu0 %v3943_v26  ;;  %v7143_v26 = vld [vmem:[#allocation6 + $0xa84] ss:$8 sps:$4 sm:$0xff]  }
 0x841   : > { %4172 = vmatpush1.bf16.msra.mxu0 %v3942_v14  ;;  %6718 = vmatprep.mubr.msk.bf16.mxu0 %vm1465_vm10, %v7143_v26 }
 0x842   : > { %3982 = vrot.lane.b32.xlu1 %v8747_v41, %s7270_s27  ;;  %4693 = vrot.lane.b32.xlu0 %v7389_v19, %s7268_s25 }
 0x846   : > { %4691 = vrot.lane.b32.xlu1 %v7380_v15, %s7268_s25  ;;  %4360 = vrot.lane.b32.xlu0 %v8707_v1, %s7271_s28  ;;  %s9731_s25 = smov 94  }
 0x84a   : > { %4362 = vrot.lane.b32.xlu1 %v8721_v22, %s7271_s28  ;;  %4358 = vrot.lane.b32.xlu0 %v8709_v34, %s7271_s28 }
 0x84e   : > { %4831 = vrot.lane.b32.xlu1 %v7387_v17, %s7269_s26  ;;  %4833 = vrot.lane.b32.xlu0 %v7394_v21, %s7269_s26  ;;  %v8813_v17 = vpop.permute.xlu0 %4012  ;;  %v8815_v21 = vpop.permute.xlu1 %4266 }
 0x84f   : > { %v4020_v39 = vmul.bf16 %v8813_v17, %v8709_v34  ;;  %v4023_v62 = vmul.bf16 %v8813_v17, %v8723_v28  ;;  %v4026_v23 = vmul.bf16 %v8813_v17, %v8735_v18  ;;  %v4274_v8 = vmul.bf16 %v8815_v21, %v8709_v34 }
 0x850   : > { %v4029_v60 = vmul.bf16 %v8813_v17, %v8747_v41  ;;  %v4277_v40 = vmul.bf16 %v8815_v21, %v8723_v28  ;;  %v4280_v10 = vmul.bf16 %v8815_v21, %v8735_v18  ;;  %v4283_v24 = vmul.bf16 %v8815_v21, %v8747_v41 }
 0x852   : > { %4366 = vrot.lane.b32.xlu1 %v8715_v30, %s7271_s28  ;;  %4368 = vrot.lane.b32.xlu0 %v8755_v29, %s7271_s28  ;;  %v8820_v7 = vpop.permute.xlu0 %4014  ;;  %v8822_v44 = vpop.permute.xlu1 %4268 }
 0x853   : > { %v4022_v45 = vmul.bf16 %v8820_v7, %v8721_v22  ;;  %v4025_v46 = vmul.bf16 %v8820_v7, %v8755_v29  ;;  %v4028_v13 = vmul.bf16 %v8820_v7, %v8765_v4  ;;  %v4031_v42 = vmul.bf16 %v8820_v7, %v8775_v12 }
 0x854   : > { %v4276_v51 = vmul.bf16 %v8822_v44, %v8721_v22  ;;  %v4279_v31 = vmul.bf16 %v8822_v44, %v8755_v29  ;;  %v4282_v49 = vmul.bf16 %v8822_v44, %v8765_v4  ;;  %v4285_v59 = vmul.bf16 %v8822_v44, %v8775_v12 }
 0x855   : > { %v8877_v0 = vsel %vm390_vm1, %v8813_v17, %v8820_v7  ;;  %v8896_v3 = vsel %vm555_vm0, %v8815_v21, %v8822_v44 }
 0x856   : > { %4364 = vrot.lane.b32.xlu1 %v8723_v28, %s7271_s28  ;;  %4372 = vrot.lane.b32.xlu0 %v8725_v43, %s7271_s28  ;;  %v4021_v20 = vmul.bf16 %v8877_v0, %v8707_v1  ;;  %v4024_v63 = vmul.bf16 %v8877_v0, %v8715_v30  ;;  %v4027_v61 = vmul.bf16 %v8877_v0, %v8725_v43 }
 0x857   : > { %v4275_v14 = vmul.bf16 %v8896_v3, %v8707_v1 }
 0x85a   : > { %4374 = vrot.lane.b32.xlu1 %v8765_v4, %s7271_s28  ;;  %4370 = vrot.lane.b32.xlu0 %v8735_v18, %s7271_s28 }
 0x85e   : > { %4378 = vrot.lane.b32.xlu1 %v8737_v47, %s7271_s28  ;;  %4380 = vrot.lane.b32.xlu0 %v8775_v12, %s7271_s28 }
 0x862   : > { %4376 = vrot.lane.b32.xlu1 %v8747_v41, %s7271_s28  ;;  %4044 = vrot.lane.b32.xlu0 %v4020_v39, %s7273_s30  ;;  %v4030_v39 = vmul.bf16 %v8877_v0, %v8737_v47 }
 0x866   : > { %4048 = vrot.lane.b32.xlu1 %v4022_v45, %s7273_s30  ;;  %4054 = vrot.lane.b32.xlu0 %v4025_v46, %s7273_s30  ;;  %v4281_v45 = vmul.bf16 %v8896_v3, %v8725_v43 }
 0x86a   : > { %4050 = vrot.lane.b32.xlu1 %v4023_v62, %s7273_s30  ;;  %4056 = vrot.lane.b32.xlu0 %v4026_v23, %s7273_s30  ;;  %v4284_v62 = vmul.bf16 %v8896_v3, %v8737_v47 }
 0x86e   : > { %4060 = vrot.lane.b32.xlu1 %v4028_v13, %s7273_s30  ;;  %4066 = vrot.lane.b32.xlu0 %v4031_v42, %s7273_s30 }
 0x872   : > { %4062 = vrot.lane.b32.xlu1 %v4029_v60, %s7273_s30  ;;  %4298 = vrot.lane.b32.xlu0 %v4274_v8, %s7272_s29 }
 0x876   : > { %4302 = vrot.lane.b32.xlu1 %v4276_v51, %s7272_s29  ;;  %4308 = vrot.lane.b32.xlu0 %v4279_v31, %s7272_s29 }
 0x87a   : > { %4304 = vrot.lane.b32.xlu1 %v4277_v40, %s7272_s29  ;;  %4310 = vrot.lane.b32.xlu0 %v4280_v10, %s7272_s29 }
 0x87e   : > { %4314 = vrot.lane.b32.xlu1 %v4282_v49, %s7272_s29  ;;  %4320 = vrot.lane.b32.xlu0 %v4285_v59, %s7272_s29 }
 0x882   : > { %4316 = vrot.lane.b32.xlu1 %v4283_v24, %s7272_s29  ;;  %4046 = vrot.lane.b32.xlu0 %v4021_v20, %s7273_s30 }
 0x886   : > { %4052 = vrot.lane.b32.xlu1 %v4024_v63, %s7273_s30  ;;  %4058 = vrot.lane.b32.xlu0 %v4027_v61, %s7273_s30 }
 0x88a   : > { %4300 = vrot.lane.b32.xlu0 %v4275_v14, %s7272_s29 }
 0x88e   : > { %4312 = vrot.lane.b32.xlu0 %v4281_v45, %s7272_s29 }
 0x897   : > { %v3969_v35 = vpop.permute.xlu1 %3968 }
 0x898   : > { %v3967_v57 = vpop.permute.xlu0 %3966 }
 0x899   : > { %v3989_v33 = vsel %vm361_vm3, %v3967_v57, %v3969_v35 }
 0x89a   : > { %4173 = vmatprep.subr.bf16.mxu0 %v3989_v33 }
 0x89b   : > { %v8837_v37 = vpop.permute.xlu1 %4406 }
 0x89c   : > { %v3965_v54 = vpop.permute.xlu0 %3964  ;;  %v4414_v23 = vmul.bf16 %v8837_v37, %v8709_v34  ;;  %v4417_v13 = vmul.bf16 %v8837_v37, %v8723_v28  ;;  %v4420_v8 = vmul.bf16 %v8837_v37, %v8735_v18 }
 0x89d   : > { %v3988_v32 = vsel %vm361_vm3, %v3965_v54, %v3967_v57  ;;  %v4278_v57 = vmul.bf16 %v8896_v3, %v8715_v30 }
 0x89e   : > { %4174 = vmatpush1.bf16.msra.mxu0 %v3988_v32 }
 0x8a0   : > { %v8848_v55 = vpop.permute.xlu0 %4408  ;;  %v3973_v38 = vpop.permute.xlu1 %3972 }
 0x8a1   : > { %v4416_v25 = vmul.bf16 %v8848_v55, %v8721_v22  ;;  %v8914_v46 = vsel %vm606_vm4, %v8837_v37, %v8848_v55  ;;  %v4419_v54 = vmul.bf16 %v8848_v55, %v8755_v29  ;;  %v4422_v32 = vmul.bf16 %v8848_v55, %v8765_v4 }
 0x8a2   : > { %v4415_v35 = vmul.bf16 %v8914_v46, %v8707_v1  ;;  %v4418_v33 = vmul.bf16 %v8914_v46, %v8715_v30  ;;  %v4421_v42 = vmul.bf16 %v8914_v46, %v8725_v43  ;;  %v4424_v31 = vmul.bf16 %v8914_v46, %v8737_v47 }
 0x8a3   : > { %4442 = vrot.lane.b32.xlu1 %v4416_v25, %s9728_s19 }
 0x8a4   : > { %v3975_v16 = vpop.permute.xlu0 %3974  ;;  %v3971_v48 = vpop.permute.xlu1 %3970  ;;  %4440 = vrot.lane.b32.xlu0 %v4415_v35, %s9728_s19 }
 0x8a5   : > { %v3991_v50 = vsel %vm361_vm3, %v3973_v38, %v3975_v16  ;;  %v3990_v52 = vsel %vm361_vm3, %v3971_v48, %v3973_v38  ;;  %v4425_v16 = vmul.bf16 %v8848_v55, %v8775_v12 }
 0x8a6   : > { %4175 = vmatprep.subr.bf16.mxu0 %v3991_v50  ;;  %v4423_v50 = vmul.bf16 %v8837_v37, %v8747_v41 }
 0x8a7   : > { %4176 = vmatpush1.bf16.msra.mxu0 %v3990_v52  ;;  %4064 = vrot.lane.b32.xlu1 %v4030_v39, %s7273_s30 }
 0x8a8   : > { %v3979_v53 = vpop.permute.xlu0 %3978  ;;  %v3981_v36 = vpop.permute.xlu1 %3980  ;;  %4438 = vrot.lane.b32.xlu0 %v4414_v23, %s9728_s19 }
 0x8a9   : > { %v3993_v9 = vsel %vm361_vm3, %v3979_v53, %v3981_v36 }
 0x8aa   : > { %4177 = vmatprep.subr.bf16.mxu0 %v3993_v9 }
 0x8ab   : > { %4306 = vrot.lane.b32.xlu1 %v4278_v57, %s7272_s29 }
 0x8ac   : > { %v3977_v11 = vpop.permute.xlu0 %3976  ;;  %4448 = vrot.lane.b32.xlu0 %v4419_v54, %s9728_s19 }
 0x8ad   : > { %v3992_v56 = vsel %vm361_vm3, %v3977_v11, %v3979_v53 }
 0x8ae   : > { %4178 = vmatpush1.bf16.msra.mxu0 %v3992_v56 }
 0x8af   : > { %4318 = vrot.lane.b32.xlu1 %v4284_v62, %s7272_s29 }
 0x8b0   : > { %v3985_v27 = vpop.permute.xlu1 %3984  ;;  %v3987_v2 = vpop.permute.xlu0 %3986  ;;  %4452 = vrot.lane.b32.xlu0 %v4421_v42, %s9728_s19 }
 0x8b1   : > { %v3995_v5 = vsel %vm361_vm3, %v3985_v27, %v3987_v2 }
 0x8b2   : > { %4179 = vmatprep.subr.bf16.mxu0 %v3995_v5 }
 0x8b3   : > { %4446 = vrot.lane.b32.xlu1 %v4418_v33, %s9728_s19 }
 0x8b4   : > { %v3983_v6 = vpop.permute.xlu1 %3982  ;;  %v8948_v60 = vpop.permute.xlu0 %4693  ;;  %4450 = vrot.lane.b32.xlu0 %v4420_v8, %s9728_s19 }
 0x8b5   : > { %v3994_v58 = vsel %vm361_vm3, %v3983_v6, %v3985_v27  ;;  %v4701_v53 = vmul.bf16 %v8948_v60, %v8721_v22  ;;  %v4704_v10 = vmul.bf16 %v8948_v60, %v8755_v29  ;;  %v4707_v2 = vmul.bf16 %v8948_v60, %v8765_v4 }
 0x8b6   : > { %4180 = vmatpush1.bf16.msra.mxu0 %v3994_v58  ;;  %v4710_v20 = vmul.bf16 %v8948_v60, %v8775_v12 }
 0x8b7   : > { %4444 = vrot.lane.b32.xlu1 %v4417_v13, %s9728_s19 }
 0x8b8   : > { %v8946_v38 = vpop.permute.xlu1 %4691  ;;  %4460 = vrot.lane.b32.xlu0 %v4425_v16, %s9728_s19  ;;  %v8969_v52 = vpop.permute.xlu0 %4360 }
 0x8b9   : > { %v8955_v51 = vsel %vm801_vm2, %v8946_v38, %v8948_v60  ;;  %v4699_v36 = vmul.bf16 %v8946_v38, %v8709_v34  ;;  %v4702_v27 = vmul.bf16 %v8946_v38, %v8723_v28  ;;  %v4705_v6 = vmul.bf16 %v8946_v38, %v8735_v18 }
 0x8ba   : > { %v4700_v48 = vmul.bf16 %v8955_v51, %v8707_v1  ;;  %v4703_v40 = vmul.bf16 %v8955_v51, %v8715_v30  ;;  %v4706_v49 = vmul.bf16 %v8955_v51, %v8725_v43  ;;  %v4709_v24 = vmul.bf16 %v8955_v51, %v8737_v47 }
 0x8bb   : > { %4454 = vrot.lane.b32.xlu1 %v4422_v32, %s9728_s19  ;;  %v4708_v63 = vmul.bf16 %v8946_v38, %v8747_v41 }
 0x8bc   : > { %4725 = vrot.lane.b32.xlu0 %v4700_v48, %s9729_s23  ;;  %v8981_v9 = vpop.permute.xlu1 %4362  ;;  %v8983_v11 = vpop.permute.xlu0 %4358 }
 0x8bf   : > { %4458 = vrot.lane.b32.xlu1 %v4424_v31, %s9728_s19 }
 0x8c0   : > { %4723 = vrot.lane.b32.xlu0 %v4699_v36, %s9729_s23  ;;  %v8993_v59 = vpop.permute.xlu1 %4831  ;;  %v8995_v56 = vpop.permute.xlu0 %4833 }
 0x8c1   : > { %v9051_v62 = vsel %vm852_vm6, %v8993_v59, %v8995_v56  ;;  %v4841_v32 = vmul.bf16 %v8995_v56, %v8721_v22  ;;  %v4839_v8 = vmul.bf16 %v8993_v59, %v8709_v34  ;;  %v4844_v48 = vmul.bf16 %v8995_v56, %v8755_v29 }
 0x8c2   : > { %v4840_v54 = vmul.bf16 %v9051_v62, %v8707_v1 }
 0x8c3   : > { %4456 = vrot.lane.b32.xlu1 %v4423_v50, %s9728_s19 }
 0x8c4   : > { %4733 = vrot.lane.b32.xlu0 %v4704_v10, %s9729_s23  ;;  %v9007_v5 = vpop.permute.xlu1 %4366  ;;  %v9009_v58 = vpop.permute.xlu0 %4368 }
 0x8c7   : > { %4727 = vrot.lane.b32.xlu1 %v4701_v53, %s9729_s23  ;;  %v4846_v53 = vmul.bf16 %v9051_v62, %v8725_v43 }
 0x8c8   : > { %4737 = vrot.lane.b32.xlu0 %v4706_v49, %s9729_s23  ;;  %v9018_v61 = vpop.permute.xlu1 %4364  ;;  %v9020_v25 = vpop.permute.xlu0 %4372 }
 0x8cb   : > { %4731 = vrot.lane.b32.xlu1 %v4703_v40, %s9729_s23  ;;  %v4845_v40 = vmul.bf16 %v8993_v59, %v8735_v18 }
 0x8cc   : > { %4735 = vrot.lane.b32.xlu0 %v4705_v6, %s9729_s23  ;;  %v9026_v26 = vpop.permute.xlu1 %4374  ;;  %v9028_v14 = vpop.permute.xlu0 %4370 }
 0x8cf   : > { %4729 = vrot.lane.b32.xlu1 %v4702_v27, %s9729_s23  ;;  %v4850_v27 = vmul.bf16 %v8995_v56, %v8775_v12 }
 0x8d0   : > { %4745 = vrot.lane.b32.xlu0 %v4710_v20, %s9729_s23  ;;  %v9034_v39 = vpop.permute.xlu1 %4378  ;;  %v9040_v45 = vpop.permute.xlu0 %4380 }
 0x8d3   : > { %4739 = vrot.lane.b32.xlu1 %v4707_v2, %s9729_s23 }
 0x8d4   : > { %4785 = vrot.lane.b32.xlu0 %v8707_v1, %s9730_s24  ;;  %v9046_v57 = vpop.permute.xlu1 %4376  ;;  %v4045_v35 = vpop.permute.xlu0 %4044  ;;  %v4843_v1 = vmul.bf16 %v9051_v62, %v8715_v30 }
 0x8d7   : > { %4743 = vrot.lane.b32.xlu1 %v4709_v24, %s9729_s23 }
 0x8d8   : > { %4783 = vrot.lane.b32.xlu0 %v8709_v34, %s9730_s24  ;;  %v4049_v23 = vpop.permute.xlu1 %4048  ;;  %v4055_v33 = vpop.permute.xlu0 %4054  ;;  %v4842_v34 = vmul.bf16 %v8993_v59, %v8723_v28 }
 0x8db   : > { %4741 = vrot.lane.b32.xlu1 %v4708_v63, %s9729_s23 }
 0x8dc   : > { %4793 = vrot.lane.b32.xlu0 %v8755_v29, %s9730_s24  ;;  %v4051_v13 = vpop.permute.xlu1 %4050  ;;  %v4057_v42 = vpop.permute.xlu0 %4056  ;;  %v4847_v29 = vmul.bf16 %v8995_v56, %v8765_v4 }
 0x8df   : > { %4787 = vrot.lane.b32.xlu1 %v8721_v22, %s9730_s24 }
 0x8e0   : > { %4797 = vrot.lane.b32.xlu0 %v8725_v43, %s9730_s24  ;;  %v4061_v31 = vpop.permute.xlu1 %4060  ;;  %v4067_v16 = vpop.permute.xlu0 %4066  ;;  %v4849_v43 = vmul.bf16 %v9051_v62, %v8737_v47 }
 0x8e3   : > { %4791 = vrot.lane.b32.xlu1 %v8715_v30, %s9730_s24 }
 0x8e4   : > { %4795 = vrot.lane.b32.xlu0 %v8735_v18, %s9730_s24  ;;  %v4063_v22 = vpop.permute.xlu1 %4062  ;;  %v4299_v50 = vpop.permute.xlu0 %4298  ;;  %v4848_v18 = vmul.bf16 %v8993_v59, %v8747_v41 }
 0x8e7   : > { %4789 = vrot.lane.b32.xlu1 %v8723_v28, %s9730_s24 }
 0x8e8   : > { %4805 = vrot.lane.b32.xlu0 %v8775_v12, %s9730_s24  ;;  %v4303_v30 = vpop.permute.xlu1 %4302  ;;  %v4309_v36 = vpop.permute.xlu0 %4308 }
 0x8eb   : > { %4799 = vrot.lane.b32.xlu1 %v8765_v4, %s9730_s24 }
 0x8ec   : > { %4865 = vrot.lane.b32.xlu0 %v4840_v54, %s9731_s25  ;;  %v4305_v28 = vpop.permute.xlu1 %4304  ;;  %v9086_v10 = vpop.permute.xlu0 %4310 }
 0x8ef   : > { %4803 = vrot.lane.b32.xlu1 %v8737_v47, %s9730_s24 }
 0x8f0   : > { %4863 = vrot.lane.b32.xlu0 %v4839_v8, %s9731_s25  ;;  %v4315_v4 = vpop.permute.xlu1 %4314  ;;  %v9094_v49 = vpop.permute.xlu0 %4320 }
 0x8f3   : > { %4801 = vrot.lane.b32.xlu1 %v8747_v41, %s9730_s24 }
 0x8f4   : > { %4873 = vrot.lane.b32.xlu0 %v4844_v48, %s9731_s25  ;;  %v9099_v2 = vpop.permute.xlu1 %4316  ;;  %v4047_v6 = vpop.permute.xlu0 %4046 }
 0x8f5   : > { %v4068_v47 = vsel %vm410_vm8, %v4045_v35, %v4047_v6  ;;  %v4069_v24 = vsel %vm410_vm8, %v4047_v6, %v4049_v23 }
 0x8f6   : > { %4181 = vmatprep.subr.bf16.mxu0 %v4069_v24  ;;  %v7146_v24 = vld [vmem:[#allocation6 + $0xa90] ss:$8 sps:$4 sm:$0xff]  }
 0x8f7   : > { %4867 = vrot.lane.b32.xlu1 %v4841_v32, %s9731_s25  ;;  %4182 = vmatpush1.bf16.msra.mxu0 %v4068_v47 }
 0x8f8   : > { %4877 = vrot.lane.b32.xlu0 %v4846_v53, %s9731_s25  ;;  %v4053_v12 = vpop.permute.xlu1 %4052  ;;  %v4059_v20 = vpop.permute.xlu0 %4058  ;;  %v7144_v53 = vld [vmem:[#allocation6 + $0xa94] ss:$8 sps:$4 sm:$0xff]  }
 0x8f9   : > { %v4070_v63 = vsel %vm410_vm8, %v4051_v13, %v4053_v12  ;;  %v4071_v54 = vsel %vm410_vm8, %v4053_v12, %v4055_v33  ;;  %v4073_v41 = vsel %vm410_vm8, %v4059_v20, %v4061_v31  ;;  %v4072_v35 = vsel %vm410_vm8, %v4057_v42, %v4059_v20  ;;  %v6703_v33 = vld [vmem:[%s9709_s4 + $0x3c8] sm:$0xff]  ;;  %v6702_v13 = vld [vmem:[%s9709_s4 + $0x3c0] sm:$0xff]  ;;  %v6708_v20 = vld [vmem:[%s9709_s4 + $0x3f0] sm:$0xff] }
 0x8fa   : > { %4183 = vmatprep.subr.bf16.mxu0 %v4071_v54  ;;  %v7141_v31 = vld [vmem:[#allocation6 + $0xa80] ss:$8 sps:$4 sm:$0xff]   ;;  %v7147_v12 = vld [vmem:[#allocation6 + $0xaa4] ss:$8 sps:$4 sm:$0xff]  }
 0x8fb   : > { %4871 = vrot.lane.b32.xlu1 %v4843_v1, %s9731_s25  ;;  %4184 = vmatpush1.bf16.msra.mxu0 %v4070_v63 }
 0x8fc   : > { %4875 = vrot.lane.b32.xlu0 %v4845_v40, %s9731_s25  ;;  %v4301_v8 = vpop.permute.xlu0 %4300  ;;  %4185 = vmatprep.subr.bf16.mxu0 %v4073_v41  ;;  %v6705_v40 = vld [vmem:[%s9709_s4 + $0x3d8] sm:$0xff] }
 0x8fd   : > { %v4323_v42 = vsel %vm575_vm7, %v4301_v8, %v4303_v30  ;;  %v6709_v41 = vld [vmem:[%s9709_s4 + $0x3f8] sm:$0xff] }
 0x8ff   : > { %4869 = vrot.lane.b32.xlu1 %v4842_v34, %s9731_s25  ;;  %4186 = vmatpush1.bf16.msra.mxu0 %v4072_v35 }
 0x900   : > { %4885 = vrot.lane.b32.xlu0 %v4850_v27, %s9731_s25  ;;  %v4313_v1 = vpop.permute.xlu0 %4312  ;;  %v6706_v27 = vld [vmem:[%s9709_s4 + $0x3e0] sm:$0xff] }
 0x903   : > { %4879 = vrot.lane.b32.xlu1 %v4847_v29, %s9731_s25 }
 0x904   : > { %5122 = vperm.xlu0 %7139, %v6702_v13   ;;  %v4385_v13 = vsel %vm596_vm5, %v9007_v5, %v9009_v58  ;;  %v4386_v58 = vsel %vm596_vm5, %v9028_v14, %v9020_v25 }
 0x907   : > { %4883 = vrot.lane.b32.xlu1 %v4849_v43, %s9731_s25  ;;  %v4322_v43 = vsel %vm575_vm7, %v4299_v50, %v4301_v8  ;;  %v6707_v50 = vld [vmem:[%s9709_s4 + $0x3e8] sm:$0xff] }
 0x908   : > { %5137 = vperm.xlu0 %7139, %v6705_v40  }
 0x90b   : > { %4881 = vrot.lane.b32.xlu1 %v4848_v18, %s9731_s25 }
 0x90c   : > { %5147 = vperm.xlu0 %7139, %v6707_v50  }
 0x90f   : > { %5127 = vperm.xlu1 %7140, %v6703_v33  }
 0x910   : > { %5157 = vperm.xlu0 %7139, %v6709_v41  }
 0x915   : > { %v9106_v32 = vpop.permute.xlu1 %4442 }
 0x916   : > { %v9121_v29 = vpop.permute.xlu0 %4440 }
 0x917   : > { %v4463_v40 = vsel %vm626_vm9, %v9121_v29, %v9106_v32 }
 0x919   : > { %v4065_v23 = vpop.permute.xlu1 %4064 }
 0x91a   : > { %v4074_v48 = vsel %vm410_vm8, %v4063_v22, %v4065_v23  ;;  %v4075_v34 = vsel %vm410_vm8, %v4065_v23, %v4067_v16  ;;  %v6704_v16 = vld [vmem:[%s9709_s4 + $0x3d0] sm:$0xff]  ;;  %v9132_v6 = vpop.permute.xlu0 %4438 }
 0x91b   : > { %4187 = vmatprep.subr.bf16.mxu0 %v4075_v34  ;;  %5132 = vperm.xlu1 %7140, %v6704_v16  }
 0x91c   : > { %4188 = vmatpush1.bf16.msra.mxu0 %v4074_v48  ;;  %v7149_v48 = vld [vmem:[#allocation6 + $0xaa0] ss:$8 sps:$4 sm:$0xff]  }
 0x91d   : > { %v4307_v22 = vpop.permute.xlu1 %4306  ;;  %4558 = vmatprep.subr.bf16.mxu0 %v4323_v42  ;;  %v7152_v42 = vld [vmem:[#allocation6 + $0xab0] ss:$8 sps:$4 sm:$0xff]  }
 0x91e   : > { %v4325_v30 = vsel %vm575_vm7, %v4307_v22, %v4309_v36  ;;  %v4324_v47 = vsel %vm575_vm7, %v4305_v28, %v4307_v22  ;;  %v4327_v36 = vsel %vm575_vm7, %v4313_v1, %v4315_v4  ;;  %v4449_v54 = vpop.permute.xlu0 %4448  ;;  %v4326_v28 = vsel %vm575_vm7, %v9086_v10, %v4313_v1  ;;  %v7150_v1 = vld [vmem:[#allocation6 + $0xab4] ss:$8 sps:$4 sm:$0xff]  }
 0x91f   : > { %4198 = vmatmul.mubr.bf16.vlgmr.msra.gmra.mrb[0].mxu0 %v7141_v31  ;;  %5142 = vperm.xlu1 %7140, %v6706_v27   ;;  %v4383_v10 = vsel %vm596_vm5, %v8969_v52, %v8981_v9  ;;  %v4384_v9 = vsel %vm596_vm5, %v9018_v61, %v9007_v5  ;;  %v4389_v22 = vsel %vm596_vm5, %v9034_v39, %v9040_v45 }
 0x920   : > { %4559 = vmatpush1.bf16.msra.mxu0 %v4322_v43  ;;  %6719 = vmatprep.mubr.msk.bf16.mxu0 %vm1465_vm10, %v7144_v53  ;;  %v4462_v45 = vsel %vm626_vm9, %v9132_v6, %v9121_v29 }
 0x921   : > { %v4319_v18 = vpop.permute.xlu1 %4318  ;;  %4560 = vmatprep.subr.bf16.mxu0 %v4325_v30 }
 0x922   : > { %v4329_v4 = vsel %vm575_vm7, %v4319_v18, %v9094_v49  ;;  %v4453_v35 = vpop.permute.xlu0 %4452  ;;  %v4328_v23 = vsel %vm575_vm7, %v9099_v2, %v4319_v18  ;;  %v4382_v49 = vsel %vm596_vm5, %v8983_v11, %v8969_v52  ;;  %v4387_v52 = vsel %vm596_vm5, %v9020_v25, %v9026_v26  ;;  %v7155_v11 = vld [vmem:[#allocation6 + $0xac4] ss:$8 sps:$4 sm:$0xff]  }
 0x923   : > { %5152 = vperm.xlu1 %7140, %v6708_v20   ;;  %v4388_v26 = vsel %vm596_vm5, %v9046_v57, %v9034_v39  ;;  %v7156_v20 = vld [vmem:[#allocation6 + $0xad4] ss:$8 sps:$4 sm:$0xff]  }
 0x924   : > { %4561 = vmatpush1.bf16.msra.mxu0 %v4324_v47 }
 0x925   : > { %v4447_v63 = vpop.permute.xlu1 %4446  ;;  %4562 = vmatprep.subr.bf16.mxu0 %v4327_v36  ;;  %v7153_v36 = vld [vmem:[#allocation6 + $0xac0] ss:$8 sps:$4 sm:$0xff]  }
 0x926   : > { %v4451_v33 = vpop.permute.xlu0 %4450  ;;  %v4465_v43 = vsel %vm626_vm9, %v4447_v63, %v4449_v54 }
 0x927   : > { %4208 = vmatmul.mubr.bf16.gmra.mrb[4].mxu0 %v7146_v24  ;;  %v4466_v50 = vsel %vm626_vm9, %v4451_v33, %v4453_v35 }
 0x928   : > { %4563 = vmatpush1.bf16.msra.mxu0 %v4326_v28  ;;  %6720 = vmatprep.mubr.msk.bf16.mxu0 %vm1465_vm10, %v7147_v12 }
 0x929   : > { %v4445_v8 = vpop.permute.xlu1 %4444  ;;  %4564 = vmatprep.subr.bf16.mxu0 %v4329_v4 }
 0x92a   : > { %v4461_v31 = vpop.permute.xlu0 %4460  ;;  %v4464_v39 = vsel %vm626_vm9, %v4445_v8, %v4447_v63 }
 0x92c   : > { %4565 = vmatpush1.bf16.msra.mxu0 %v4328_v23  ;;  %v7158_v23 = vld [vmem:[#allocation6 + $0xad0] ss:$8 sps:$4 sm:$0xff]  }
 0x92d   : > { %v4455_v34 = vpop.permute.xlu1 %4454  ;;  %4566 = vmatprep.subr.bf16.mxu0 %v4383_v10  ;;  %v7159_v10 = vld [vmem:[#allocation6 + $0xae4] ss:$8 sps:$4 sm:$0xff]  }
 0x92e   : > { %v4726_v16 = vpop.permute.xlu0 %4725  ;;  %v4467_v57 = vsel %vm626_vm9, %v4453_v35, %v4455_v34 }
 0x92f   : > { %4218 = vmatmul.mubr.bf16.gmra.mrb[8].mxu0 %v7149_v48 }
 0x930   : > { %4567 = vmatpush1.bf16.msra.mxu0 %v4382_v49  ;;  %6721 = vmatprep.mubr.msk.bf16.mxu0 %vm1465_vm10, %v7150_v1 }
 0x931   : > { %v4459_v2 = vpop.permute.xlu1 %4458  ;;  %4568 = vmatprep.subr.bf16.mxu0 %v4385_v13 }
 0x932   : > { %v4724_v61 = vpop.permute.xlu0 %4723  ;;  %v4469_v47 = vsel %vm626_vm9, %v4459_v2, %v4461_v31 }
 0x933   : > { %v4747_v41 = vsel %vm821_vm11, %v4724_v61, %v4726_v16 }
 0x934   : > { %4569 = vmatpush1.bf16.msra.mxu0 %v4384_v9  ;;  %v7161_v9 = vld [vmem:[#allocation6 + $0xae0] ss:$8 sps:$4 sm:$0xff]  }
 0x935   : > { %v4457_v53 = vpop.permute.xlu1 %4456  ;;  %4570 = vmatprep.subr.bf16.mxu0 %v4387_v52  ;;  %v7162_v52 = vld [vmem:[#allocation6 + $0xaf4] ss:$8 sps:$4 sm:$0xff]  }
 0x936   : > { %v4734_v14 = vpop.permute.xlu0 %4733  ;;  %v4468_v24 = vsel %vm626_vm9, %v4457_v53, %v4459_v2 }
 0x937   : > { %4228 = vmatmul.mubr.bf16.gmra.mrb[12].mxu0 %v7152_v42 }
 0x938   : > { %4571 = vmatpush1.bf16.msra.mxu0 %v4386_v58  ;;  %6730 = vmatprep.mubr.msk.bf16.mxu0 %vm1465_vm10, %v7155_v11 }
 0x939   : > { %v4728_v5 = vpop.permute.xlu1 %4727  ;;  %4572 = vmatprep.subr.bf16.mxu0 %v4389_v22 }
 0x93a   : > { %v4738_v27 = vpop.permute.xlu0 %4737  ;;  %v4748_v12 = vsel %vm821_vm11, %v4726_v16, %v4728_v5 }
 0x93c   : > { %4573 = vmatpush1.bf16.msra.mxu0 %v4388_v26  ;;  %v7164_v26 = vld [vmem:[#allocation6 + $0xaf0] ss:$8 sps:$4 sm:$0xff]  }
 0x93d   : > { %v4732_v25 = vpop.permute.xlu1 %4731  ;;  %4574 = vmatprep.subr.bf16.mxu0 %v4463_v40 }
 0x93e   : > { %v4736_v18 = vpop.permute.xlu0 %4735  ;;  %v4750_v28 = vsel %vm821_vm11, %v4732_v25, %v4734_v14 }
 0x93f   : > { %v4751_v33 = vsel %vm821_vm11, %v4736_v18, %v4738_v27 }
 0x940   : > { %4575 = vmatpush1.bf16.msra.mxu0 %v4462_v45 }
 0x941   : > { %v4730_v30 = vpop.permute.xlu1 %4729  ;;  %4576 = vmatprep.subr.bf16.mxu0 %v4465_v43 }
 0x942   : > { %v4746_v6 = vpop.permute.xlu0 %4745  ;;  %v4749_v35 = vsel %vm821_vm11, %v4730_v30, %v4732_v25  ;;  %v7167_v25 = vld [vmem:[#allocation6 + $0xb04] ss:$8 sps:$4 sm:$0xff]  }
 0x944   : > { %4577 = vmatpush1.bf16.msra.mxu0 %v4464_v39 }
 0x945   : > { %v4740_v32 = vpop.permute.xlu1 %4739  ;;  %4578 = vmatprep.subr.bf16.mxu0 %v4467_v57 }
 0x946   : > { %v4786_v54 = vpop.permute.xlu0 %4785  ;;  %v4752_v48 = vsel %vm821_vm11, %v4738_v27, %v4740_v32 }
 0x948   : > { %4579 = vmatpush1.bf16.msra.mxu0 %v4466_v50 }
 0x949   : > { %v4744_v29 = vpop.permute.xlu1 %4743  ;;  %4580 = vmatprep.subr.bf16.mxu0 %v4469_v47 }
 0x94a   : > { %v4784_v8 = vpop.permute.xlu0 %4783  ;;  %v4754_v49 = vsel %vm821_vm11, %v4744_v29, %v4746_v6 }
 0x94b   : > { %v4807_v16 = vsel %vm842_vm13, %v4784_v8, %v4786_v54 }
 0x94c   : > { %4581 = vmatpush1.bf16.msra.mxu0 %v4468_v24 }
 0x94d   : > { %v4742_v63 = vpop.permute.xlu1 %4741  ;;  %4983 = vmatprep.subr.bf16.mxu0 %v4748_v12 }
 0x94e   : > { %v4794_v34 = vpop.permute.xlu0 %4793  ;;  %v4753_v31 = vsel %vm821_vm11, %v4742_v63, %v4744_v29 }
 0x94f   : > { %4591 = vmatmul.mubr.bf16.vlgmr.msra.gmra.mrb[0].mxu0 %v7153_v36 }
 0x950   : > { %4984 = vmatpush1.bf16.msra.mxu0 %v4747_v41  ;;  %6731 = vmatprep.mubr.msk.bf16.mxu0 %vm1465_vm10, %v7156_v20 }
 0x951   : > { %v4788_v4 = vpop.permute.xlu1 %4787  ;;  %4985 = vmatprep.subr.bf16.mxu0 %v4750_v28 }
 0x952   : > { %v4798_v2 = vpop.permute.xlu0 %4797  ;;  %v4808_v42 = vsel %vm842_vm13, %v4786_v54, %v4788_v4 }
 0x954   : > { %4986 = vmatpush1.bf16.msra.mxu0 %v4749_v35 }
 0x955   : > { %v4792_v1 = vpop.permute.xlu1 %4791  ;;  %4987 = vmatprep.subr.bf16.mxu0 %v4752_v48  ;;  %v7168_v48 = vld [vmem:[#allocation6 + $0xb14] ss:$8 sps:$4 sm:$0xff]  }
 0x956   : > { %v4796_v53 = vpop.permute.xlu0 %4795  ;;  %v4810_v58 = vsel %vm842_vm13, %v4792_v1, %v4794_v34  ;;  %v7173_v34 = vld [vmem:[#allocation6 + $0xb20] ss:$8 sps:$4 sm:$0xff]  }
 0x957   : > { %4601 = vmatmul.mubr.bf16.gmra.mrb[4].mxu0 %v7158_v23  ;;  %v4811_v43 = vsel %vm842_vm13, %v4796_v53, %v4798_v2  ;;  %v7165_v23 = vld [vmem:[#allocation6 + $0xb00] ss:$8 sps:$4 sm:$0xff]  }
 0x958   : > { %4988 = vmatpush1.bf16.msra.mxu0 %v4751_v33  ;;  %6732 = vmatprep.mubr.msk.bf16.mxu0 %vm1465_vm10, %v7159_v10  ;;  %v7170_v10 = vld [vmem:[#allocation6 + $0xb10] ss:$8 sps:$4 sm:$0xff]   ;;  %v7174_v33 = vld [vmem:[#allocation6 + $0xb34] ss:$8 sps:$4 sm:$0xff]  }
 0x959   : > { %v4790_v13 = vpop.permute.xlu1 %4789  ;;  %4989 = vmatprep.subr.bf16.mxu0 %v4754_v49  ;;  %v7176_v49 = vld [vmem:[#allocation6 + $0xb30] ss:$8 sps:$4 sm:$0xff]  }
 0x95a   : > { %v4806_v5 = vpop.permute.xlu0 %4805  ;;  %v4809_v61 = vsel %vm842_vm13, %v4790_v13, %v4792_v1  ;;  %v7171_v1 = vld [vmem:[#allocation6 + $0xb24] ss:$8 sps:$4 sm:$0xff]  }
 0x95c   : > { %4990 = vmatpush1.bf16.msra.mxu0 %v4753_v31 }
 0x95d   : > { %v4800_v11 = vpop.permute.xlu1 %4799  ;;  %4991 = vmatprep.subr.bf16.mxu0 %v4808_v42 }
 0x95e   : > { %v4812_v40 = vsel %vm842_vm13, %v4798_v2, %v4800_v11  ;;  %v4866_v45 = vpop.permute.xlu0 %4865 }
 0x95f   : > { %4611 = vmatmul.mubr.bf16.gmra.mrb[8].mxu0 %v7161_v9 }
 0x960   : > { %4992 = vmatpush1.bf16.msra.mxu0 %v4807_v16  ;;  %6733 = vmatprep.mubr.msk.bf16.mxu0 %vm1465_vm10, %v7162_v52 }
 0x961   : > { %v4804_v22 = vpop.permute.xlu1 %4803  ;;  %4993 = vmatprep.subr.bf16.mxu0 %v4810_v58 }
 0x962   : > { %v4814_v30 = vsel %vm842_vm13, %v4804_v22, %v4806_v5  ;;  %v4864_v39 = vpop.permute.xlu0 %4863 }
 0x963   : > { %v4887_v47 = vsel %vm872_vm14, %v4864_v39, %v4866_v45 }
 0x964   : > { %4994 = vmatpush1.bf16.msra.mxu0 %v4809_v61 }
 0x965   : > { %v4802_v14 = vpop.permute.xlu1 %4801  ;;  %4995 = vmatprep.subr.bf16.mxu0 %v4812_v40 }
 0x966   : > { %v4813_v57 = vsel %vm842_vm13, %v4802_v14, %v4804_v22  ;;  %v4874_v50 = vpop.permute.xlu0 %4873 }
 0x967   : > { %4621 = vmatmul.mubr.bf16.gmra.mrb[12].mxu0 %v7164_v26 }
 0x968   : > { %4996 = vmatpush1.bf16.msra.mxu0 %v4811_v43  ;;  %6742 = vmatprep.mubr.msk.bf16.mxu0 %vm1465_vm10, %v7167_v25 }
 0x969   : > { %v4868_v27 = vpop.permute.xlu1 %4867  ;;  %4997 = vmatprep.subr.bf16.mxu0 %v4814_v30 }
 0x96a   : > { %v4888_v32 = vsel %vm872_vm14, %v4866_v45, %v4868_v27  ;;  %v4878_v24 = vpop.permute.xlu0 %4877 }
 0x96c   : > { %4998 = vmatpush1.bf16.msra.mxu0 %v4813_v57 }
 0x96d   : > { %v4872_v18 = vpop.permute.xlu1 %4871  ;;  %4999 = vmatprep.subr.bf16.mxu0 %v4888_v32 }
 0x96e   : > { %v4890_v29 = vsel %vm872_vm14, %v4872_v18, %v4874_v50  ;;  %v4876_v20 = vpop.permute.xlu0 %4875 }
 0x96f   : > { %v4891_v54 = vsel %vm872_vm14, %v4876_v20, %v4878_v24 }
 0x970   : > { %5000 = vmatpush1.bf16.msra.mxu0 %v4887_v47 }
 0x971   : > { %v4870_v6 = vpop.permute.xlu1 %4869  ;;  %5001 = vmatprep.subr.bf16.mxu0 %v4890_v29 }
 0x972   : > { %v4889_v36 = vsel %vm872_vm14, %v4870_v6, %v4872_v18  ;;  %v4886_v28 = vpop.permute.xlu0 %4885 }
 0x974   : > { %5002 = vmatpush1.bf16.msra.mxu0 %v4889_v36 }
 0x975   : > { %v4880_v12 = vpop.permute.xlu1 %4879 }
 0x976   : > { %v4892_v63 = vsel %vm872_vm14, %v4878_v24, %v4880_v12 }
 0x977   : > { %5003 = vmatprep.subr.bf16.mxu0 %v4892_v63 }
 0x978   : > { %5004 = vmatpush1.bf16.msra.mxu0 %v4891_v54 }
 0x979   : > { %v4884_v41 = vpop.permute.xlu1 %4883 }
 0x97a   : > { %v4894_v4 = vsel %vm872_vm14, %v4884_v41, %v4886_v28 }
 0x97b   : > { %5005 = vmatprep.subr.bf16.mxu0 %v4894_v4 }
 0x97d   : > { %v4882_v8 = vpop.permute.xlu1 %4881 }
 0x97e   : > { %v4893_v35 = vsel %vm872_vm14, %v4882_v8, %v4884_v41 }
 0x97f   : > { %5006 = vmatpush1.bf16.msra.mxu0 %v4893_v35 }
 0x982   : > { %5016 = vmatmul.mubr.bf16.vlgmr.msra.gmra.mrb[0].mxu0 %v7165_v23 }
 0x983   : > { %6743 = vmatprep.mubr.msk.bf16.mxu0 %vm1465_vm10, %v7168_v48  ;;  %v5123_v13 = vpop.permute.xlu0 %5122 }
 0x987   : > { %v5138_v27 = vpop.permute.xlu0 %5137 }
 0x98a   : > { %5026 = vmatmul.mubr.bf16.gmra.mrb[4].mxu0 %v7170_v10 }
 0x98b   : > { %6744 = vmatprep.mubr.msk.bf16.mxu0 %vm1465_vm10, %v7171_v1  ;;  %v5148_v28 = vpop.permute.xlu0 %5147 }
 0x98e   : > { %v5128_v42 = vpop.permute.xlu1 %5127 }
 0x992   : > { %5036 = vmatmul.mubr.bf16.gmra.mrb[8].mxu0 %v7173_v34 }
 0x993   : > { %6745 = vmatprep.mubr.msk.bf16.mxu0 %vm1465_vm10, %v7174_v33 }
 0x99a   : > { %5046 = vmatmul.mubr.bf16.gmra.mrb[12].mxu0 %v7176_v49  ;;  %v5133_v25 = vpop.permute.xlu1 %5132 }
 0x99e   : > { %v5143_v12 = vpop.permute.xlu1 %5142 }
 0xa55   : > { %v5017_v2 = vpop.f32.mrb[0].mxu0 }
 0xa56   : > { %v5019_v31 = vpop.f32.mrb[1].mxu0  ;;  %v5160_v9 = vadd.f32 %v5123_v13, %v5017_v2 }
 0xa57   : > { %v5021_v52 = vpop.f32.mrb[2].mxu0  ;;  %v5161_v11 = vadd.f32 %v5123_v13, %v5019_v31  ;;  %v5153_v13 = vpop.permute.xlu1 %5152 }
 0xa58   : > { %v5023_v53 = vpop.f32.mrb[3].mxu0  ;;  %v5162_v16 = vadd.f32 %v5128_v42, %v5021_v52  ;;  %v5176_v22 = vmax.f32 %v5160_v9, 0.0  ;;  %v5158_v52 = vpop.permute.xlu0 %5157 }
 0xa59   : > { %v5163_v58 = vadd.f32 %v5128_v42, %v5023_v53  ;;  %v5177_v61 = vmax.f32 %v5161_v11, 0.0 }
 0xa5a   : > { %v5178_v5 = vmax.f32 %v5162_v16, 0.0 }
 0xa5b   : > { %v5179_v26 = vmax.f32 %v5163_v58, 0.0 }
 0xa5c   : > { %v5192_v40 = vpack.c.bf16 %v5178_v5, %v5176_v22 }
 0xa5d   : > { %v5027_v14 = vpop.f32.mrb[4].mxu0  ;;  %v5193_v45 = vpack.c.bf16 %v5179_v26, %v5177_v61 }
 0xa5e   : > { %v5029_v43 = vpop.f32.mrb[5].mxu0  ;;  %5208 = vrot.lane.b32.xlu1 %v5192_v40, %s9732_s7  ;;  %v5164_v30 = vadd.f32 %v5133_v25, %v5027_v14 }
 0xa5f   : > { %v5031_v39 = vpop.f32.mrb[6].mxu0  ;;  %5210 = vrot.lane.b32.xlu0 %v5193_v45, %s9732_s7  ;;  %v5165_v57 = vadd.f32 %v5133_v25, %v5029_v43 }
 0xa60   : > { %v5033_v32 = vpop.f32.mrb[7].mxu0  ;;  %v5166_v18 = vadd.f32 %v5138_v27, %v5031_v39  ;;  %v5180_v47 = vmax.f32 %v5164_v30, 0.0 }
 0xa61   : > { %v5167_v50 = vadd.f32 %v5138_v27, %v5033_v32  ;;  %v5181_v6 = vmax.f32 %v5165_v57, 0.0 }
 0xa62   : > { %v5182_v29 = vmax.f32 %v5166_v18, 0.0 }
 0xa63   : > { %v5183_v24 = vmax.f32 %v5167_v50, 0.0 }
 0xa64   : > { %v5194_v36 = vpack.c.bf16 %v5182_v29, %v5180_v47 }
 0xa65   : > { %v5037_v20 = vpop.f32.mrb[8].mxu0  ;;  %v5195_v63 = vpack.c.bf16 %v5183_v24, %v5181_v6 }
 0xa66   : > { %v5039_v54 = vpop.f32.mrb[9].mxu0  ;;  %5212 = vrot.lane.b32.xlu1 %v5194_v36, %s9732_s7  ;;  %v5168_v41 = vadd.f32 %v5143_v12, %v5037_v20 }
 0xa67   : > { %v5041_v4 = vpop.f32.mrb[10].mxu0  ;;  %5214 = vrot.lane.b32.xlu0 %v5195_v63, %s9732_s7  ;;  %v5169_v8 = vadd.f32 %v5143_v12, %v5039_v54 }
 0xa68   : > { %v5043_v35 = vpop.f32.mrb[11].mxu0  ;;  %v5170_v23 = vadd.f32 %v5148_v28, %v5041_v4  ;;  %v5184_v10 = vmax.f32 %v5168_v41, 0.0 }
 0xa69   : > { %v5171_v48 = vadd.f32 %v5148_v28, %v5043_v35  ;;  %v5185_v34 = vmax.f32 %v5169_v8, 0.0 }
 0xa6a   : > { %v5186_v1 = vmax.f32 %v5170_v23, 0.0 }
 0xa6b   : > { %v5187_v33 = vmax.f32 %v5171_v48, 0.0 }
 0xa6c   : > { %v5196_v49 = vpack.c.bf16 %v5186_v1, %v5184_v10 }
 0xa6d   : > { %v5047_v2 = vpop.f32.mrb[12].mxu0  ;;  %v5197_v31 = vpack.c.bf16 %v5187_v33, %v5185_v34 }
 0xa6e   : > { %v5049_v9 = vpop.f32.mrb[13].mxu0  ;;  %5216 = vrot.lane.b32.xlu1 %v5196_v49, %s9732_s7  ;;  %v5172_v42 = vadd.f32 %v5153_v13, %v5047_v2 }
 0xa6f   : > { %v5051_v11 = vpop.f32.mrb[14].mxu0  ;;  %5218 = vrot.lane.b32.xlu0 %v5197_v31, %s9732_s7  ;;  %v5173_v53 = vadd.f32 %v5153_v13, %v5049_v9 }
 0xa70   : > { %v5053_v16 = vpop.f32.mrb[15].mxu0  ;;  %v5174_v58 = vadd.f32 %v5158_v52, %v5051_v11  ;;  %v5188_v5 = vmax.f32 %v5172_v42, 0.0 }
 0xa71   : > { %v5175_v22 = vadd.f32 %v5158_v52, %v5053_v16  ;;  %v5189_v26 = vmax.f32 %v5173_v53, 0.0 }
 0xa72   : > { %v5190_v61 = vmax.f32 %v5174_v58, 0.0 }
 0xa73   : > { %v5191_v40 = vmax.f32 %v5175_v22, 0.0 }
 0xa74   : > { %v5198_v25 = vpack.c.bf16 %v5190_v61, %v5188_v5 }
 0xa75   : > { %v5199_v14 = vpack.c.bf16 %v5191_v40, %v5189_v26 }
 0xa76   : > { %5220 = vrot.lane.b32.xlu1 %v5198_v25, %s9732_s7 }
 0xa77   : > { %5222 = vrot.lane.b32.xlu0 %v5199_v14, %s9732_s7 }
 0xad0   : > { %v5209_v45 = vpop.permute.xlu1 %5208 }
 0xad1   : > { %5240 = vst.msk [vmem:[#allocation3] sm:$0xff] %vm1179_vm12, %v5209_v45  ;;  %v5211_v43 = vpop.permute.xlu0 %5210 }
 0xad2   : > { %v9231_v30 = vsel %vm242_vm15, %v5209_v45, %v5211_v43  ;;  %5242 = vst.msk [vmem:[#allocation3 + $0x10] sm:$0xff] %vm242_vm15, %v5211_v43 }
 0xad3   : > { %v5292_v27 = vmul.bf16 %v9231_v30, %v7389_v19  ;;  %v5368_v34 = vmul.bf16 %v9231_v30, %v8877_v0  ;;  %v5745_v14 = vmul.bf16 %v9231_v30, %v8914_v46 }
 0xad5   : > { %5511 = vmatprep.subr.bf16.mxu1 %v5292_v27 }
 0xad8   : > { %v5213_v39 = vpop.permute.xlu1 %5212  ;;  %v9236_v57 = vld [vmem:[#allocation3] sm:$0xff] }
 0xad9   : > { %5243 = vst.msk [vmem:[#allocation3 + $0x18] sm:$0xff] %vm1179_vm12, %v5213_v39  ;;  %v5215_v32 = vpop.permute.xlu0 %5214  ;;  %v5291_v18 = vmul.bf16 %v9236_v57, %v7380_v15  ;;  %5319 = vrot.lane.b32.xlu1 %v9236_v57, %s7270_s27  ;;  %v9243_v50 = vld [vmem:[#allocation3 + $0x10] sm:$0xff]  ;;  %v5367_v41 = vmul.bf16 %v9236_v57, %v8813_v17  ;;  %v5612_v4 = vmul.bf16 %v9236_v57, %v8815_v21 }
 0xada   : > { %v9246_v47 = vsel %vm242_vm15, %v5213_v39, %v5215_v32  ;;  %5245 = vst.msk [vmem:[#allocation3 + $0x28] sm:$0xff] %vm242_vm15, %v5215_v32  ;;  %5323 = vrot.lane.b32.xlu0 %v9243_v50, %s7270_s27  ;;  %v5369_v6 = vmul.bf16 %v9243_v50, %v8820_v7  ;;  %v5614_v28 = vmul.bf16 %v9243_v50, %v8822_v44 }
 0xadb   : > { %v5294_v29 = vmul.bf16 %v9246_v47, %v7389_v19  ;;  %5512 = vmatpush1.bf16.msra.mxu1 %v5291_v18  ;;  %v5371_v9 = vmul.bf16 %v9246_v47, %v8877_v0  ;;  %v5616_v52 = vmul.bf16 %v9246_v47, %v8896_v3  ;;  %v5746_v43 = vmul.bf16 %v9243_v50, %v8848_v55 }
 0xadc   : > { %v5748_v27 = vmul.bf16 %v9246_v47, %v8914_v46 }
 0xadd   : > { %5696 = vrot.lane.b32.xlu1 %v9236_v57, %s7271_s28  ;;  %5513 = vmatprep.subr.bf16.mxu1 %v5294_v29 }
 0xade   : > { %5700 = vrot.lane.b32.xlu0 %v9243_v50, %s7271_s28 }
 0xae0   : > { %v5217_v24 = vpop.permute.xlu1 %5216  ;;  %v9259_v36 = vld [vmem:[#allocation3 + $0x18] sm:$0xff] }
 0xae1   : > { %5246 = vst.msk [vmem:[#allocation3 + $0x30] sm:$0xff] %vm1179_vm12, %v5217_v24  ;;  %v5219_v12 = vpop.permute.xlu0 %5218  ;;  %5321 = vrot.lane.b32.xlu1 %v9231_v30, %s7270_s27  ;;  %v5293_v20 = vmul.bf16 %v9259_v36, %v7380_v15  ;;  %v5370_v13 = vmul.bf16 %v9259_v36, %v8813_v17  ;;  %v9314_v2 = vld [vmem:[#allocation3 + $0x28] sm:$0xff]  ;;  %v5747_v39 = vmul.bf16 %v9259_v36, %v8837_v37 }
 0xae2   : > { %v9267_v63 = vsel %vm242_vm15, %v5217_v24, %v5219_v12  ;;  %5248 = vst.msk [vmem:[#allocation3 + $0x40] sm:$0xff] %vm242_vm15, %v5219_v12  ;;  %5395 = vrot.lane.b32.xlu0 %v5369_v6, %s7273_s30  ;;  %v5372_v31 = vmul.bf16 %v9314_v2, %v8820_v7  ;;  %v5617_v42 = vmul.bf16 %v9314_v2, %v8822_v44 }
 0xae3   : > { %v5296_v54 = vmul.bf16 %v9267_v63, %v7389_v19  ;;  %5514 = vmatpush1.bf16.msra.mxu1 %v5293_v20  ;;  %v5374_v5 = vmul.bf16 %v9267_v63, %v8877_v0  ;;  %v5619_v61 = vmul.bf16 %v9267_v63, %v8896_v3  ;;  %v5751_v18 = vmul.bf16 %v9267_v63, %v8914_v46 }
 0xae5   : > { %5391 = vrot.lane.b32.xlu1 %v5367_v41, %s7273_s30  ;;  %5515 = vmatprep.subr.bf16.mxu1 %v5296_v54  ;;  %v6023_v54 = vmul.bf16 %v9243_v50, %v8948_v60 }
 0xae6   : > { %5640 = vrot.lane.b32.xlu0 %v5614_v28, %s7272_s29 }
 0xae8   : > { %v9281_v8 = vld [vmem:[#allocation3 + $0x30] sm:$0xff]  ;;  %v5221_v35 = vpop.permute.xlu1 %5220 }
 0xae9   : > { %v5295_v23 = vmul.bf16 %v9281_v8, %v7380_v15  ;;  %5249 = vst.msk [vmem:[#allocation3 + $0x48] sm:$0xff] %vm1179_vm12, %v5221_v35  ;;  %5636 = vrot.lane.b32.xlu1 %v5612_v4, %s7272_s29  ;;  %v5223_v48 = vpop.permute.xlu0 %5222  ;;  %v9339_v11 = vld [vmem:[#allocation3 + $0x40] sm:$0xff]  ;;  %v5373_v53 = vmul.bf16 %v9281_v8, %v8813_v17  ;;  %v5618_v58 = vmul.bf16 %v9281_v8, %v8815_v21 }
 0xaea   : > { %v9288_v10 = vsel %vm242_vm15, %v5221_v35, %v5223_v48  ;;  %5251 = vst.msk [vmem:[#allocation3 + $0x58] sm:$0xff] %vm242_vm15, %v5223_v48  ;;  %5325 = vrot.lane.b32.xlu0 %v9259_v36, %s7270_s27  ;;  %v5375_v16 = vmul.bf16 %v9339_v11, %v8820_v7  ;;  %v5620_v22 = vmul.bf16 %v9339_v11, %v8822_v44 }
 0xaeb   : > { %v5298_v1 = vmul.bf16 %v9288_v10, %v7389_v19  ;;  %5516 = vmatpush1.bf16.msra.mxu1 %v5295_v23  ;;  %v5613_v19 = vmul.bf16 %v9231_v30, %v8896_v3  ;;  %v5377_v45 = vmul.bf16 %v9288_v10, %v8877_v0  ;;  %v5622_v32 = vmul.bf16 %v9288_v10, %v8896_v3 }
 0xaec   : > { %v5752_v29 = vmul.bf16 %v9339_v11, %v8848_v55  ;;  %v5750_v6 = vmul.bf16 %v9281_v8, %v8837_v37  ;;  %v6025_v4 = vmul.bf16 %v9246_v47, %v8955_v51  ;;  %v6021_v35 = vmul.bf16 %v9236_v57, %v8946_v38 }
 0xaed   : > { %5698 = vrot.lane.b32.xlu1 %v9231_v30, %s7271_s28  ;;  %5517 = vmatprep.subr.bf16.mxu1 %v5298_v1 }
 0xaee   : > { %5702 = vrot.lane.b32.xlu0 %v9259_v36, %s7271_s28 }
 0xaf0   : > { %v9301_v33 = vld [vmem:[#allocation3 + $0x48] sm:$0xff] }
 0xaf1   : > { %v5297_v49 = vmul.bf16 %v9301_v33, %v7380_v15  ;;  %5393 = vrot.lane.b32.xlu1 %v5368_v34, %s7273_s30  ;;  %v5615_v15 = vmul.bf16 %v9259_v36, %v8815_v21  ;;  %v9373_v26 = vld [vmem:[#allocation3 + $0x58] sm:$0xff]  ;;  %v5376_v40 = vmul.bf16 %v9301_v33, %v8813_v17  ;;  %v5621_v25 = vmul.bf16 %v9301_v33, %v8815_v21  ;;  %v7179_v17 = vld [vmem:[#allocation6 + $0xb44] ss:$8 sps:$4 sm:$0xff]  }
 0xaf2   : > { %5327 = vrot.lane.b32.xlu0 %v9246_v47, %s7270_s27  ;;  %6755 = vmatprep.mubr.msk.bf16.mxu1 %vm1465_vm10, %v7179_v17  ;;  %v5378_v21 = vmul.bf16 %v9373_v26, %v8820_v7  ;;  %v5623_v0 = vmul.bf16 %v9373_v26, %v8822_v44  ;;  %v5744_v7 = vmul.bf16 %v9236_v57, %v8837_v37 }
 0xaf3   : > { %5518 = vmatpush1.bf16.msra.mxu1 %v5297_v49  ;;  %v5749_v44 = vmul.bf16 %v9314_v2, %v8848_v55  ;;  %v5753_v3 = vmul.bf16 %v9301_v33, %v8837_v37  ;;  %v5755_v12 = vmul.bf16 %v9373_v26, %v8848_v55  ;;  %v6022_v37 = vmul.bf16 %v9231_v30, %v8955_v51 }
 0xaf4   : > { %v6024_v34 = vmul.bf16 %v9259_v36, %v8946_v38 }
 0xaf5   : > { %5638 = vrot.lane.b32.xlu1 %v5613_v19, %s7272_s29  ;;  %v6026_v19 = vmul.bf16 %v9314_v2, %v8948_v60 }
 0xaf6   : > { %5397 = vrot.lane.b32.xlu0 %v5370_v13, %s7273_s30 }
 0xaf9   : > { %5329 = vrot.lane.b32.xlu1 %v9314_v2, %s7270_s27 }
 0xafa   : > { %5642 = vrot.lane.b32.xlu0 %v5615_v15, %s7272_s29  ;;  %v6029_v15 = vmul.bf16 %v9339_v11, %v8948_v60 }
 0xafd   : > { %5706 = vrot.lane.b32.xlu1 %v9314_v2, %s7271_s28 }
 0xafe   : > { %5704 = vrot.lane.b32.xlu0 %v9246_v47, %s7271_s28 }
 0xb01   : > { %5401 = vrot.lane.b32.xlu1 %v5372_v31, %s7273_s30 }
 0xb02   : > { %5399 = vrot.lane.b32.xlu0 %v5371_v9, %s7273_s30  ;;  %v6028_v9 = vmul.bf16 %v9267_v63, %v8955_v51 }
 0xb05   : > { %5646 = vrot.lane.b32.xlu1 %v5617_v42, %s7272_s29 }
 0xb06   : > { %5644 = vrot.lane.b32.xlu0 %v5616_v52, %s7272_s29  ;;  %v6030_v52 = vmul.bf16 %v9301_v33, %v8946_v38 }
 0xb09   : > { %5331 = vrot.lane.b32.xlu1 %v9281_v8, %s7270_s27 }
 0xb0a   : > { %5335 = vrot.lane.b32.xlu0 %v9339_v11, %s7270_s27 }
 0xb0d   : > { %5333 = vrot.lane.b32.xlu1 %v9267_v63, %s7270_s27 }
 0xb0e   : > { %5712 = vrot.lane.b32.xlu0 %v9339_v11, %s7271_s28 }
 0xb11   : > { %5403 = vrot.lane.b32.xlu1 %v5373_v53, %s7273_s30 }
 0xb12   : > { %5407 = vrot.lane.b32.xlu0 %v5375_v16, %s7273_s30  ;;  %v6027_v16 = vmul.bf16 %v9281_v8, %v8946_v38 }
 0xb15   : > { %5648 = vrot.lane.b32.xlu1 %v5618_v58, %s7272_s29 }
 0xb16   : > { %5652 = vrot.lane.b32.xlu0 %v5620_v22, %s7272_s29 }
 0xb19   : > { %5710 = vrot.lane.b32.xlu1 %v9267_v63, %s7271_s28 }
 0xb1a   : > { %5337 = vrot.lane.b32.xlu0 %v9301_v33, %s7270_s27 }
 0xb1d   : > { %5405 = vrot.lane.b32.xlu1 %v5374_v5, %s7273_s30 }
 0xb1e   : > { %5714 = vrot.lane.b32.xlu0 %v9301_v33, %s7271_s28 }
 0xb21   : > { %5650 = vrot.lane.b32.xlu1 %v5619_v61, %s7272_s29  ;;  %v5754_v61 = vmul.bf16 %v9288_v10, %v8914_v46 }
 0xb22   : > { %5339 = vrot.lane.b32.xlu0 %v9288_v10, %s7270_s27 }
 0xb25   : > { %5341 = vrot.lane.b32.xlu1 %v9373_v26, %s7270_s27 }
 0xb26   : > { %5409 = vrot.lane.b32.xlu0 %v5376_v40, %s7273_s30 }
 0xb29   : > { %5708 = vrot.lane.b32.xlu1 %v9281_v8, %s7271_s28 }
 0xb2a   : > { %5654 = vrot.lane.b32.xlu0 %v5621_v25, %s7272_s29  ;;  %v6032_v25 = vmul.bf16 %v9373_v26, %v8948_v60 }
 0xb2d   : > { %5770 = vrot.lane.b32.xlu1 %v5745_v14, %s9728_s19 }
 0xb2e   : > { %5716 = vrot.lane.b32.xlu0 %v9288_v10, %s7271_s28 }
 0xb31   : > { %5718 = vrot.lane.b32.xlu1 %v9373_v26, %s7271_s28 }
 0xb32   : > { %5411 = vrot.lane.b32.xlu0 %v5377_v45, %s7273_s30 }
 0xb35   : > { %5413 = vrot.lane.b32.xlu1 %v5378_v21, %s7273_s30 }
 0xb36   : > { %5772 = vrot.lane.b32.xlu0 %v5746_v43, %s9728_s19 }
 0xb39   : > { %5658 = vrot.lane.b32.xlu1 %v5623_v0, %s7272_s29 }
 0xb3a   : > { %5776 = vrot.lane.b32.xlu0 %v5748_v27, %s9728_s19 }
 0xb3d   : > { %5768 = vrot.lane.b32.xlu1 %v5744_v7, %s9728_s19 }
 0xb3e   : > { %5774 = vrot.lane.b32.xlu0 %v5747_v39, %s9728_s19  ;;  %v6031_v39 = vmul.bf16 %v9288_v10, %v8955_v51 }
 0xb41   : > { %5778 = vrot.lane.b32.xlu1 %v5749_v44, %s9728_s19 }
 0xb42   : > { %5656 = vrot.lane.b32.xlu0 %v5622_v32, %s7272_s29 }
 0xb45   : > { %5782 = vrot.lane.b32.xlu1 %v5751_v18, %s9728_s19 }
 0xb46   : > { %5784 = vrot.lane.b32.xlu0 %v5752_v29, %s9728_s19 }
 0xb49   : > { %5780 = vrot.lane.b32.xlu1 %v5750_v6, %s9728_s19 }
 0xb4a   : > { %5786 = vrot.lane.b32.xlu0 %v5753_v3, %s9728_s19 }
 0xb4b   : > { %v5320_v24 = vpop.permute.xlu1 %5319 }
 0xb4c   : > { %v5324_v20 = vpop.permute.xlu0 %5323 }
 0xb4d   : > { %5790 = vrot.lane.b32.xlu1 %v5755_v12, %s9728_s19 }
 0xb4e   : > { %6049 = vrot.lane.b32.xlu0 %v6023_v54, %s9729_s23 }
 0xb4f   : > { %v5697_v41 = vpop.permute.xlu1 %5696 }
 0xb50   : > { %v5701_v28 = vpop.permute.xlu0 %5700 }
 0xb51   : > { %6047 = vrot.lane.b32.xlu1 %v6022_v37, %s9729_s23 }
 0xb52   : > { %6053 = vrot.lane.b32.xlu0 %v6025_v4, %s9729_s23 }
 0xb53   : > { %v5322_v55 = vpop.permute.xlu1 %5321 }
 0xb54   : > { %v5343_v23 = vsel %vm361_vm3, %v5320_v24, %v5322_v55  ;;  %v5344_v48 = vsel %vm361_vm3, %v5322_v55, %v5324_v20  ;;  %v9448_v1 = vpop.permute.xlu0 %5395  ;;  %v6154_v20 = vmul.bf16 %v9231_v30, %v9051_v62  ;;  %v6153_v55 = vmul.bf16 %v9236_v57, %v8993_v59 }
 0xb55   : > { %6045 = vrot.lane.b32.xlu1 %v6021_v35, %s9729_s23  ;;  %5519 = vmatprep.subr.bf16.mxu1 %v5344_v48  ;;  %v6157_v35 = vmul.bf16 %v9246_v47, %v9051_v62 }
 0xb56   : > { %6051 = vrot.lane.b32.xlu0 %v6024_v34, %s9729_s23  ;;  %5520 = vmatpush1.bf16.msra.mxu1 %v5343_v23  ;;  %v6156_v34 = vmul.bf16 %v9259_v36, %v8993_v59 }
 0xb57   : > { %v9454_v49 = vpop.permute.xlu1 %5391 }
 0xb58   : > { %v5641_v13 = vpop.permute.xlu0 %5640 }
 0xb59   : > { %6055 = vrot.lane.b32.xlu1 %v6026_v19, %s9729_s23 }
 0xb5a   : > { %6061 = vrot.lane.b32.xlu0 %v6029_v15, %s9729_s23 }
 0xb5b   : > { %v5637_v31 = vpop.permute.xlu1 %5636 }
 0xb5c   : > { %v5326_v42 = vpop.permute.xlu0 %5325 }
 0xb5d   : > { %6059 = vrot.lane.b32.xlu1 %v6028_v9, %s9729_s23 }
 0xb5e   : > { %6063 = vrot.lane.b32.xlu0 %v6030_v52, %s9729_s23 }
 0xb5f   : > { %v5699_v53 = vpop.permute.xlu1 %5698 }
 0xb60   : > { %v9471_v58 = vsel %vm596_vm5, %v5697_v41, %v5699_v53  ;;  %v9474_v22 = vsel %vm596_vm5, %v5699_v53, %v5701_v28  ;;  %v5703_v5 = vpop.permute.xlu0 %5702  ;;  %v6155_v28 = vmul.bf16 %v9243_v50, %v8995_v56 }
 0xb61   : > { %6057 = vrot.lane.b32.xlu1 %v6027_v16, %s9729_s23 }
 0xb62   : > { %5788 = vrot.lane.b32.xlu0 %v5754_v61, %s9728_s19 }
 0xb63   : > { %v9480_v40 = vpop.permute.xlu1 %5393 }
 0xb64   : > { %v5328_v38 = vpop.permute.xlu0 %5327 }
 0xb65   : > { %6067 = vrot.lane.b32.xlu1 %v6032_v25, %s9729_s23  ;;  %v5345_v0 = vsel %vm361_vm3, %v5326_v42, %v5328_v38  ;;  %v6162_v42 = vmul.bf16 %v9301_v33, %v8993_v59 }
 0xb66   : > { %6109 = vrot.lane.b32.xlu0 %v9243_v50, %s9730_s24  ;;  %v6158_v50 = vmul.bf16 %v9314_v2, %v8995_v56 }
 0xb67   : > { %v5639_v14 = vpop.permute.xlu1 %5638 }
 0xb68   : > { %v9488_v17 = vsel %vm575_vm7, %v5637_v31, %v5639_v14  ;;  %v9491_v46 = vsel %vm575_vm7, %v5639_v14, %v5641_v13  ;;  %v9493_v45 = vpop.permute.xlu0 %5397  ;;  %v6161_v13 = vmul.bf16 %v9339_v11, %v8995_v56  ;;  %v6163_v31 = vmul.bf16 %v9288_v10, %v9051_v62 }
 0xb69   : > { %6107 = vrot.lane.b32.xlu1 %v9231_v30, %s9730_s24 }
 0xb6a   : > { %6113 = vrot.lane.b32.xlu0 %v9246_v47, %s9730_s24  ;;  %v6160_v47 = vmul.bf16 %v9267_v63, %v9051_v62  ;;  %v6746_v62 = vld [vmem:[%s9709_s4 + $0x400] sm:$0xff] }
 0xb6b   : > { %v5330_v60 = vpop.permute.xlu1 %5329 }
 0xb6c   : > { %v5346_v21 = vsel %vm361_vm3, %v5328_v38, %v5330_v60  ;;  %v9500_v43 = vpop.permute.xlu0 %5642 }
 0xb6d   : > { %6105 = vrot.lane.b32.xlu1 %v9236_v57, %s9730_s24  ;;  %5521 = vmatprep.subr.bf16.mxu1 %v5346_v21 }
 0xb6e   : > { %6111 = vrot.lane.b32.xlu0 %v9259_v36, %s9730_s24  ;;  %5522 = vmatpush1.bf16.msra.mxu1 %v5345_v0  ;;  %v6159_v36 = vmul.bf16 %v9281_v8, %v8993_v59  ;;  %v5416_v59 = vsel %vm410_vm8, %v9480_v40, %v9448_v1 }
 0xb6f   : > { %v5707_v27 = vpop.permute.xlu1 %5706 }
 0xb70   : > { %v5705_v7 = vpop.permute.xlu0 %5704 }
 0xb71   : > { %v9510_v44 = vsel %vm596_vm5, %v5703_v5, %v5705_v7  ;;  %v9513_v32 = vsel %vm596_vm5, %v5705_v7, %v5707_v27  ;;  %6115 = vrot.lane.b32.xlu1 %v9314_v2, %s9730_s24  ;;  %v7177_v27 = vld [vmem:[#allocation6 + $0xb40] ss:$8 sps:$4 sm:$0xff]  }
 0xb72   : > { %6065 = vrot.lane.b32.xlu0 %v6031_v39, %s9729_s23 }
 0xb73   : > { %v9518_v18 = vpop.permute.xlu1 %5401 }
 0xb74   : > { %v9520_v29 = vpop.permute.xlu0 %5399 }
 0xb75   : > { %6119 = vrot.lane.b32.xlu1 %v9267_v63, %s9730_s24  ;;  %v5418_v16 = vsel %vm410_vm8, %v9520_v29, %v9518_v18  ;;  %v5417_v1 = vsel %vm410_vm8, %v9493_v45, %v9520_v29  ;;  %v7180_v45 = vld [vmem:[#allocation6 + $0xb54] ss:$8 sps:$4 sm:$0xff]  }
 0xb76   : > { %6121 = vrot.lane.b32.xlu0 %v9339_v11, %s9730_s24  ;;  %v6164_v11 = vmul.bf16 %v9373_v26, %v8995_v56 }
 0xb77   : > { %v9526_v51 = vpop.permute.xlu1 %5646 }
 0xb78   : > { %v9528_v6 = vpop.permute.xlu0 %5644 }
 0xb79   : > { %6117 = vrot.lane.b32.xlu1 %v9281_v8, %s9730_s24  ;;  %v5663_v18 = vsel %vm575_vm7, %v9528_v6, %v9526_v51 }
 0xb7a   : > { %6125 = vrot.lane.b32.xlu0 %v9288_v10, %s9730_s24 }
 0xb7b   : > { %v5332_v3 = vpop.permute.xlu1 %5331 }
 0xb7c   : > { %v5336_v24 = vpop.permute.xlu0 %5335 }
 0xb7d   : > { %6127 = vrot.lane.b32.xlu1 %v9373_v26, %s9730_s24  ;;  %v5415_v26 = vsel %vm410_vm8, %v9454_v49, %v9480_v40 }
 0xb7e   : > { %6123 = vrot.lane.b32.xlu0 %v9301_v33, %s9730_s24 }
 0xb7f   : > { %v5334_v12 = vpop.permute.xlu1 %5333 }
 0xb80   : > { %v5347_v54 = vsel %vm361_vm3, %v5332_v3, %v5334_v12  ;;  %v5348_v41 = vsel %vm361_vm3, %v5334_v12, %v5336_v24  ;;  %v9542_v37 = vpop.permute.xlu0 %5712  ;;  %v5662_v24 = vsel %vm575_vm7, %v9500_v43, %v9528_v6 }
 0xb81   : > { %6179 = vrot.lane.b32.xlu1 %v6154_v20, %s9731_s25  ;;  %5523 = vmatprep.subr.bf16.mxu1 %v5348_v41  ;;  %v7183_v20 = vld [vmem:[#allocation6 + $0xb64] ss:$8 sps:$4 sm:$0xff]  }
 0xb82   : > { %6181 = vrot.lane.b32.xlu0 %v6155_v28, %s9731_s25  ;;  %5524 = vmatpush1.bf16.msra.mxu1 %v5347_v54 }
 0xb83   : > { %v5404_v4 = vpop.permute.xlu1 %5403 }
 0xb84   : > { %v5408_v30 = vpop.permute.xlu0 %5407 }
 0xb85   : > { %6177 = vrot.lane.b32.xlu1 %v6153_v55, %s9731_s25  ;;  %v7186_v55 = vld [vmem:[#allocation6 + $0xb74] ss:$8 sps:$4 sm:$0xff]  }
 0xb86   : > { %6185 = vrot.lane.b32.xlu0 %v6157_v35, %s9731_s25 }
 0xb87   : > { %v9554_v23 = vpop.permute.xlu1 %5648 }
 0xb88   : > { %v9558_v48 = vpop.permute.xlu0 %5652 }
 0xb89   : > { %6187 = vrot.lane.b32.xlu1 %v6158_v50, %s9731_s25 }
 0xb8a   : > { %6183 = vrot.lane.b32.xlu0 %v6156_v34, %s9731_s25 }
 0xb8b   : > { %v9564_v57 = vpop.permute.xlu1 %5710 }
 0xb8c   : > { %v5338_v19 = vpop.permute.xlu0 %5337  ;;  %v5725_v34 = vsel %vm596_vm5, %v9564_v57, %v9542_v37 }
 0xb8d   : > { %6191 = vrot.lane.b32.xlu1 %v6160_v47, %s9731_s25  ;;  %v7191_v47 = vld [vmem:[#allocation6 + $0xb84] ss:$8 sps:$4 sm:$0xff]  }
 0xb8e   : > { %6193 = vrot.lane.b32.xlu0 %v6161_v13, %s9731_s25 }
 0xb8f   : > { %v5406_v2 = vpop.permute.xlu1 %5405 }
 0xb90   : > { %v9574_v15 = vpop.permute.xlu0 %5714  ;;  %v5420_v25 = vsel %vm410_vm8, %v5406_v2, %v5408_v30  ;;  %v5419_v40 = vsel %vm410_vm8, %v5404_v4, %v5406_v2  ;;  %v7185_v4 = vld [vmem:[#allocation6 + $0xb60] ss:$8 sps:$4 sm:$0xff]  }
 0xb91   : > { %6189 = vrot.lane.b32.xlu1 %v6159_v36, %s9731_s25 }
 0xb92   : > { %6197 = vrot.lane.b32.xlu0 %v6163_v31, %s9731_s25 }
 0xb93   : > { %v5651_v63 = vpop.permute.xlu1 %5650 }
 0xb94   : > { %v5340_v9 = vpop.permute.xlu0 %5339  ;;  %v5665_v12 = vsel %vm575_vm7, %v5651_v63, %v9558_v48  ;;  %v7188_v48 = vld [vmem:[#allocation6 + $0xb70] ss:$8 sps:$4 sm:$0xff]  }
 0xb95   : > { %6199 = vrot.lane.b32.xlu1 %v6164_v11, %s9731_s25  ;;  %v5349_v53 = vsel %vm361_vm3, %v5338_v19, %v5340_v9 }
 0xb96   : > { %6195 = vrot.lane.b32.xlu0 %v6162_v42, %s9731_s25 }
 0xb97   : > { %v5342_v8 = vpop.permute.xlu1 %5341 }
 0xb98   : > { %v5350_v10 = vsel %vm361_vm3, %v5340_v9, %v5342_v8  ;;  %v5410_v52 = vpop.permute.xlu0 %5409 }
 0xb99   : > { %6422 = vperm.xlu1 %7140, %v6746_v62   ;;  %5525 = vmatprep.subr.bf16.mxu1 %v5350_v10 }
 0xb9a   : > { %5526 = vmatpush1.bf16.msra.mxu1 %v5349_v53 }
 0xb9b   : > { %v9594_v56 = vpop.permute.xlu1 %5708  ;;  %5527 = vmatprep.subr.bf16.mxu1 %v5416_v59 }
 0xb9c   : > { %v5655_v33 = vpop.permute.xlu0 %5654 }
 0xb9e   : > { %5528 = vmatpush1.bf16.msra.mxu1 %v5415_v26 }
 0xb9f   : > { %v9602_v5 = vpop.permute.xlu1 %5770  ;;  %5529 = vmatprep.subr.bf16.mxu1 %v5418_v16 }
 0xba0   : > { %v9604_v61 = vpop.permute.xlu0 %5716 }
 0xba1   : > { %v5726_v36 = vsel %vm596_vm5, %v9574_v15, %v9604_v61 }
 0xba2   : > { %5530 = vmatpush1.bf16.msra.mxu1 %v5417_v1 }
 0xba3   : > { %v9610_v38 = vpop.permute.xlu1 %5718  ;;  %5531 = vmatprep.subr.bf16.mxu1 %v5420_v25  ;;  %v7189_v25 = vld [vmem:[#allocation6 + $0xb80] ss:$8 sps:$4 sm:$0xff]  }
 0xba4   : > { %v5412_v49 = vpop.permute.xlu0 %5411 }
 0xba5   : > { %v5421_v0 = vsel %vm410_vm8, %v5410_v52, %v5412_v49 }
 0xba6   : > { %5532 = vmatpush1.bf16.msra.mxu1 %v5419_v40 }
 0xba7   : > { %v5414_v14 = vpop.permute.xlu1 %5413 }
 0xba8   : > { %v5422_v60 = vsel %vm410_vm8, %v5412_v49, %v5414_v14  ;;  %v9614_v21 = vpop.permute.xlu0 %5772 }
 0xba9   : > { %5533 = vmatprep.subr.bf16.mxu1 %v5422_v60  ;;  %v5793_v31 = vsel %vm626_vm9, %v9602_v5, %v9614_v21 }
 0xbaa   : > { %5534 = vmatpush1.bf16.msra.mxu1 %v5421_v0 }
 0xbab   : > { %v5659_v7 = vpop.permute.xlu1 %5658  ;;  %5888 = vmatprep.subr.bf16.mxu1 %v9491_v46  ;;  %v7182_v46 = vld [vmem:[#allocation6 + $0xb50] ss:$8 sps:$4 sm:$0xff]  }
 0xbac   : > { %v9618_v39 = vpop.permute.xlu0 %5776 }
 0xbad   : > { %5544 = vmatmul.mubr.bf16.vlgmr.msra.gmra.mrb[0].mxu1 %v7177_v27 }
 0xbae   : > { %5889 = vmatpush1.bf16.msra.mxu1 %v9488_v17  ;;  %6756 = vmatprep.mubr.msk.bf16.mxu1 %vm1465_vm10, %v7180_v45  ;;  %v5664_v17 = vsel %vm575_vm7, %v9554_v23, %v5651_v63  ;;  %v7194_v45 = vld [vmem:[#allocation6 + $0xb90] ss:$8 sps:$4 sm:$0xff]  }
 0xbaf   : > { %v5769_v29 = vpop.permute.xlu1 %5768  ;;  %5890 = vmatprep.subr.bf16.mxu1 %v5663_v18 }
 0xbb0   : > { %v9625_v3 = vpop.permute.xlu0 %5774  ;;  %v5792_v42 = vsel %vm626_vm9, %v5769_v29, %v9602_v5 }
 0xbb1   : > { %v5794_v52 = vsel %vm626_vm9, %v9625_v3, %v9618_v39 }
 0xbb2   : > { %5891 = vmatpush1.bf16.msra.mxu1 %v5662_v24 }
 0xbb3   : > { %v5779_v54 = vpop.permute.xlu1 %5778  ;;  %5892 = vmatprep.subr.bf16.mxu1 %v5665_v12 }
 0xbb4   : > { %v5657_v51 = vpop.permute.xlu0 %5656  ;;  %v5795_v15 = vsel %vm626_vm9, %v9618_v39, %v5779_v54  ;;  %v7197_v54 = vld [vmem:[#allocation6 + $0xba0] ss:$8 sps:$4 sm:$0xff]  }
 0xbb5   : > { %v5667_v41 = vsel %vm575_vm7, %v5657_v51, %v5659_v7  ;;  %5554 = vmatmul.mubr.bf16.gmra.mrb[4].mxu1 %v7182_v46  ;;  %v5666_v6 = vsel %vm575_vm7, %v5655_v33, %v5657_v51  ;;  %v7195_v7 = vld [vmem:[#allocation6 + $0xba4] ss:$8 sps:$4 sm:$0xff]   ;;  %v7198_v51 = vld [vmem:[#allocation6 + $0xbb4] ss:$8 sps:$4 sm:$0xff]  }
 0xbb6   : > { %5893 = vmatpush1.bf16.msra.mxu1 %v5664_v17  ;;  %6757 = vmatprep.mubr.msk.bf16.mxu1 %vm1465_vm10, %v7183_v20 }
 0xbb7   : > { %v5783_v28 = vpop.permute.xlu1 %5782  ;;  %5894 = vmatprep.subr.bf16.mxu1 %v5667_v41 }
 0xbb8   : > { %v5785_v43 = vpop.permute.xlu0 %5784 }
 0xbb9   : > { %v5797_v53 = vsel %vm626_vm9, %v5783_v28, %v5785_v43 }
 0xbba   : > { %5895 = vmatpush1.bf16.msra.mxu1 %v5666_v6 }
 0xbbb   : > { %v5781_v30 = vpop.permute.xlu1 %5780  ;;  %5896 = vmatprep.subr.bf16.mxu1 %v9474_v22 }
 0xbbc   : > { %v5787_v35 = vpop.permute.xlu0 %5786  ;;  %v5796_v26 = vsel %vm626_vm9, %v5781_v30, %v5783_v28  ;;  %v7200_v30 = vld [vmem:[#allocation6 + $0xbb0] ss:$8 sps:$4 sm:$0xff]  }
 0xbbd   : > { %5564 = vmatmul.mubr.bf16.gmra.mrb[8].mxu1 %v7185_v4 }
 0xbbe   : > { %5897 = vmatpush1.bf16.msra.mxu1 %v9471_v58  ;;  %6758 = vmatprep.mubr.msk.bf16.mxu1 %vm1465_vm10, %v7186_v55  ;;  %v5724_v58 = vsel %vm596_vm5, %v9594_v56, %v9564_v57 }
 0xbbf   : > { %v5791_v23 = vpop.permute.xlu1 %5790  ;;  %5898 = vmatprep.subr.bf16.mxu1 %v9513_v32  ;;  %v5727_v32 = vsel %vm596_vm5, %v9604_v61, %v9610_v38  ;;  %v7192_v38 = vld [vmem:[#allocation6 + $0xb94] ss:$8 sps:$4 sm:$0xff]  }
 0xbc0   : > { %v6050_v50 = vpop.permute.xlu0 %6049 }
 0xbc2   : > { %5899 = vmatpush1.bf16.msra.mxu1 %v9510_v44 }
 0xbc3   : > { %v6048_v19 = vpop.permute.xlu1 %6047  ;;  %5900 = vmatprep.subr.bf16.mxu1 %v5725_v34 }
 0xbc4   : > { %v6070_v22 = vsel %vm821_vm11, %v6048_v19, %v6050_v50  ;;  %v6054_v13 = vpop.permute.xlu0 %6053 }
 0xbc5   : > { %6086 = vst [vmem:[#allocation4 + $0x8] sm:$0xff] %v6070_v22  ;;  %5574 = vmatmul.mubr.bf16.gmra.mrb[12].mxu1 %v7188_v48 }
 0xbc6   : > { %5901 = vmatpush1.bf16.msra.mxu1 %v5724_v58  ;;  %6767 = vmatprep.mubr.msk.bf16.mxu1 %vm1465_vm10, %v7191_v47 }
 0xbc7   : > { %v6046_v44 = vpop.permute.xlu1 %6045  ;;  %5902 = vmatprep.subr.bf16.mxu1 %v5727_v32 }
 0xbc8   : > { %v6069_v37 = vsel %vm821_vm11, %v6046_v44, %v6048_v19  ;;  %v6052_v2 = vpop.permute.xlu0 %6051 }
 0xbc9   : > { %6085 = vst [vmem:[#allocation4] sm:$0xff] %v6069_v37  ;;  %v6071_v57 = vsel %vm821_vm11, %v6052_v2, %v6054_v13 }
 0xbca   : > { %6087 = vst [vmem:[#allocation4 + $0x10] sm:$0xff] %v6071_v57  ;;  %5903 = vmatpush1.bf16.msra.mxu1 %v5726_v36 }
 0xbcb   : > { %v6056_v63 = vpop.permute.xlu1 %6055  ;;  %5904 = vmatprep.subr.bf16.mxu1 %v5793_v31 }
 0xbcc   : > { %v6072_v11 = vsel %vm821_vm11, %v6054_v13, %v6056_v63  ;;  %v6062_v9 = vpop.permute.xlu0 %6061 }
 0xbcd   : > { %6088 = vst [vmem:[#allocation4 + $0x18] sm:$0xff] %v6072_v11 }
 0xbce   : > { %5905 = vmatpush1.bf16.msra.mxu1 %v5792_v42 }
 0xbcf   : > { %v6060_v62 = vpop.permute.xlu1 %6059  ;;  %5906 = vmatprep.subr.bf16.mxu1 %v5795_v15  ;;  %v7201_v15 = vld [vmem:[#allocation6 + $0xbc0] ss:$8 sps:$4 sm:$0xff]  }
 0xbd0   : > { %v6074_v8 = vsel %vm821_vm11, %v6060_v62, %v6062_v9  ;;  %v6064_v10 = vpop.permute.xlu0 %6063 }
 0xbd2   : > { %5907 = vmatpush1.bf16.msra.mxu1 %v5794_v52  ;;  %v7209_v52 = vld [vmem:[#allocation6 + $0xbe0] ss:$8 sps:$4 sm:$0xff]  }
 0xbd3   : > { %v6058_v59 = vpop.permute.xlu1 %6057  ;;  %5908 = vmatprep.subr.bf16.mxu1 %v5797_v53  ;;  %v7210_v53 = vld [vmem:[#allocation6 + $0xbf4] ss:$8 sps:$4 sm:$0xff]  }
 0xbd4   : > { %v6073_v56 = vsel %vm821_vm11, %v6058_v59, %v6060_v62  ;;  %v5789_v33 = vpop.permute.xlu0 %5788  ;;  %v7204_v62 = vld [vmem:[#allocation6 + $0xbd4] ss:$8 sps:$4 sm:$0xff]   ;;  %v7212_v59 = vld [vmem:[#allocation6 + $0xbf0] ss:$8 sps:$4 sm:$0xff]  }
 0xbd5   : > { %v5799_v16 = vsel %vm626_vm9, %v5789_v33, %v5791_v23  ;;  %v5798_v1 = vsel %vm626_vm9, %v5787_v35, %v5789_v33  ;;  %v7203_v35 = vld [vmem:[#allocation6 + $0xbc4] ss:$8 sps:$4 sm:$0xff]  }
 0xbd6   : > { %5909 = vmatpush1.bf16.msra.mxu1 %v5796_v26 }
 0xbd7   : > { %v6068_v5 = vpop.permute.xlu1 %6067  ;;  %5910 = vmatprep.subr.bf16.mxu1 %v5799_v16 }
 0xbd8   : > { %v6110_v61 = vpop.permute.xlu0 %6109 }
 0xbda   : > { %5911 = vmatpush1.bf16.msra.mxu1 %v5798_v1 }
 0xbdb   : > { %v6108_v49 = vpop.permute.xlu1 %6107  ;;  %6297 = vmatprep.subr.bf16.mxu1 %v6070_v22 }
 0xbdc   : > { %v6130_v40 = vsel %vm842_vm13, %v6108_v49, %v6110_v61  ;;  %v6114_v14 = vpop.permute.xlu0 %6113 }
 0xbdd   : > { %5921 = vmatmul.mubr.bf16.vlgmr.msra.gmra.mrb[0].mxu1 %v7189_v25 }
 0xbde   : > { %6298 = vmatpush1.bf16.msra.mxu1 %v6069_v37  ;;  %6768 = vmatprep.mubr.msk.bf16.mxu1 %vm1465_vm10, %v7192_v38 }
 0xbdf   : > { %v6106_v60 = vpop.permute.xlu1 %6105  ;;  %6299 = vmatprep.subr.bf16.mxu1 %v6072_v11 }
 0xbe0   : > { %v6129_v21 = vsel %vm842_vm13, %v6106_v60, %v6108_v49  ;;  %v6112_v0 = vpop.permute.xlu0 %6111 }
 0xbe1   : > { %v6131_v27 = vsel %vm842_vm13, %v6112_v0, %v6114_v14 }
 0xbe2   : > { %6300 = vmatpush1.bf16.msra.mxu1 %v6071_v57 }
 0xbe3   : > { %v6116_v39 = vpop.permute.xlu1 %6115  ;;  %6301 = vmatprep.subr.bf16.mxu1 %v6074_v8  ;;  %v7206_v8 = vld [vmem:[#allocation6 + $0xbd0] ss:$8 sps:$4 sm:$0xff]  }
 0xbe4   : > { %v6132_v18 = vsel %vm842_vm13, %v6114_v14, %v6116_v39  ;;  %v6066_v29 = vpop.permute.xlu0 %6065 }
 0xbe5   : > { %v6075_v3 = vsel %vm821_vm11, %v6064_v10, %v6066_v29  ;;  %v6076_v24 = vsel %vm821_vm11, %v6066_v29, %v6068_v5  ;;  %5931 = vmatmul.mubr.bf16.gmra.mrb[4].mxu1 %v7194_v45  ;;  %v7207_v10 = vld [vmem:[#allocation6 + $0xbe4] ss:$8 sps:$4 sm:$0xff]  }
 0xbe6   : > { %6302 = vmatpush1.bf16.msra.mxu1 %v6073_v56  ;;  %6769 = vmatprep.mubr.msk.bf16.mxu1 %vm1465_vm10, %v7195_v7 }
 0xbe7   : > { %v6120_v46 = vpop.permute.xlu1 %6119  ;;  %6303 = vmatprep.subr.bf16.mxu1 %v6076_v24 }
 0xbe8   : > { %v6122_v12 = vpop.permute.xlu0 %6121 }
 0xbe9   : > { %v6134_v20 = vsel %vm842_vm13, %v6120_v46, %v6122_v12 }
 0xbea   : > { %6304 = vmatpush1.bf16.msra.mxu1 %v6075_v3 }
 0xbeb   : > { %v6118_v17 = vpop.permute.xlu1 %6117  ;;  %6305 = vmatprep.subr.bf16.mxu1 %v6130_v40 }
 0xbec   : > { %v6133_v41 = vsel %vm842_vm13, %v6118_v17, %v6120_v46  ;;  %v6126_v28 = vpop.permute.xlu0 %6125 }
 0xbed   : > { %5941 = vmatmul.mubr.bf16.gmra.mrb[8].mxu1 %v7197_v54 }
 0xbee   : > { %6306 = vmatpush1.bf16.msra.mxu1 %v6129_v21  ;;  %6770 = vmatprep.mubr.msk.bf16.mxu1 %vm1465_vm10, %v7198_v51 }
 0xbef   : > { %v6128_v43 = vpop.permute.xlu1 %6127  ;;  %6307 = vmatprep.subr.bf16.mxu1 %v6132_v18 }
 0xbf0   : > { %v6136_v6 = vsel %vm842_vm13, %v6126_v28, %v6128_v43  ;;  %v6124_v4 = vpop.permute.xlu0 %6123 }
 0xbf1   : > { %v6135_v55 = vsel %vm842_vm13, %v6124_v4, %v6126_v28 }
 0xbf2   : > { %6308 = vmatpush1.bf16.msra.mxu1 %v6131_v27 }
 0xbf3   : > { %v6180_v23 = vpop.permute.xlu1 %6179  ;;  %6309 = vmatprep.subr.bf16.mxu1 %v6134_v20 }
 0xbf4   : > { %v6182_v50 = vpop.permute.xlu0 %6181 }
 0xbf5   : > { %v6202_v48 = vsel %vm872_vm14, %v6180_v23, %v6182_v50  ;;  %5951 = vmatmul.mubr.bf16.gmra.mrb[12].mxu1 %v7200_v30 }
 0xbf6   : > { %6310 = vmatpush1.bf16.msra.mxu1 %v6133_v41  ;;  %6779 = vmatprep.mubr.msk.bf16.mxu1 %vm1465_vm10, %v7203_v35 }
 0xbf7   : > { %v6178_v34 = vpop.permute.xlu1 %6177  ;;  %6311 = vmatprep.subr.bf16.mxu1 %v6136_v6 }
 0xbf8   : > { %v6201_v47 = vsel %vm872_vm14, %v6178_v34, %v6180_v23  ;;  %v6186_v19 = vpop.permute.xlu0 %6185 }
 0xbfa   : > { %6312 = vmatpush1.bf16.msra.mxu1 %v6135_v55 }
 0xbfb   : > { %v6188_v22 = vpop.permute.xlu1 %6187  ;;  %6313 = vmatprep.subr.bf16.mxu1 %v6202_v48 }
 0xbfc   : > { %v6204_v13 = vsel %vm872_vm14, %v6186_v19, %v6188_v22  ;;  %v6184_v58 = vpop.permute.xlu0 %6183 }
 0xbfd   : > { %v6203_v32 = vsel %vm872_vm14, %v6184_v58, %v6186_v19 }
 0xbfe   : > { %6314 = vmatpush1.bf16.msra.mxu1 %v6201_v47 }
 0xbff   : > { %v6192_v44 = vpop.permute.xlu1 %6191  ;;  %6315 = vmatprep.subr.bf16.mxu1 %v6204_v13 }
 0xc00   : > { %v6194_v37 = vpop.permute.xlu0 %6193 }
 0xc01   : > { %v6206_v2 = vsel %vm872_vm14, %v6192_v44, %v6194_v37 }
 0xc02   : > { %6316 = vmatpush1.bf16.msra.mxu1 %v6203_v32 }
 0xc03   : > { %v6190_v36 = vpop.permute.xlu1 %6189  ;;  %6317 = vmatprep.subr.bf16.mxu1 %v6206_v2 }
 0xc04   : > { %v6205_v57 = vsel %vm872_vm14, %v6190_v36, %v6192_v44  ;;  %v6198_v31 = vpop.permute.xlu0 %6197 }
 0xc06   : > { %6318 = vmatpush1.bf16.msra.mxu1 %v6205_v57 }
 0xc07   : > { %v6200_v63 = vpop.permute.xlu1 %6199 }
 0xc08   : > { %v6208_v11 = vsel %vm872_vm14, %v6198_v31, %v6200_v63  ;;  %v6196_v9 = vpop.permute.xlu0 %6195 }
 0xc09   : > { %v6207_v42 = vsel %vm872_vm14, %v6196_v9, %v6198_v31  ;;  %6319 = vmatprep.subr.bf16.mxu1 %v6208_v11 }
 0xc0a   : > { %6320 = vmatpush1.bf16.msra.mxu1 %v6207_v42 }
 0xc0d   : > { %6330 = vmatmul.mubr.bf16.vlgmr.msra.gmra.mrb[0].mxu1 %v7201_v15 }
 0xc0e   : > { %6780 = vmatprep.mubr.msk.bf16.mxu1 %vm1465_vm10, %v7204_v62 }
 0xc15   : > { %6340 = vmatmul.mubr.bf16.gmra.mrb[4].mxu1 %v7206_v8 }
 0xc16   : > { %6781 = vmatprep.mubr.msk.bf16.mxu1 %vm1465_vm10, %v7207_v10 }
 0xc18   : > { %v6423_v56 = vpop.permute.xlu1 %6422 }
 0xc1d   : > { %6350 = vmatmul.mubr.bf16.gmra.mrb[8].mxu1 %v7209_v52 }
 0xc1e   : > { %6782 = vmatprep.mubr.msk.bf16.mxu1 %vm1465_vm10, %v7210_v53 }
 0xc25   : > { %6360 = vmatmul.mubr.bf16.gmra.mrb[12].mxu1 %v7212_v59 }
 0xce0   : > { %v6331_v33 = vpop.f32.mrb[0].mxu1 }
 0xce1   : > { %v6425_v26 = vadd.f32 %v6423_v56, %v6331_v33  ;;  %v6333_v16 = vpop.f32.mrb[1].mxu1 }
 0xce2   : > { %v6426_v5 = vadd.f32 %v6423_v56, %v6333_v16  ;;  %v6335_v61 = vpop.f32.mrb[2].mxu1 }
 0xce3   : > { %6427 = vst [vmem:[%s7378_s16] sm:$0xff] %v6425_v26  ;;  %v6337_v1 = vpop.f32.mrb[3].mxu1 }
 0xce4   : > { %6428 = vst [vmem:[%s7378_s16 + $0x8] sm:$0xff] %v6426_v5 }
 0xce8   : > { %v6341_v25 = vpop.f32.mrb[4].mxu1 }
 0xce9   : > { %v6343_v38 = vpop.f32.mrb[5].mxu1 }
 0xcea   : > { %v6345_v49 = vpop.f32.mrb[6].mxu1 }
 0xceb   : > { %v6347_v40 = vpop.f32.mrb[7].mxu1 }
 0xcf0   : > { %v6351_v14 = vpop.f32.mrb[8].mxu1 }
 0xcf1   : > { %v6353_v60 = vpop.f32.mrb[9].mxu1 }
 0xcf2   : > { %v6355_v21 = vpop.f32.mrb[10].mxu1 }
 0xcf3   : > { %v6357_v0 = vpop.f32.mrb[11].mxu1 }
 0xcf8   : > { %v6361_v27 = vpop.f32.mrb[12].mxu1 }
 0xcf9   : > { %v6363_v45 = vpop.f32.mrb[13].mxu1 }
 0xcfa   : > { %v6365_v7 = vpop.f32.mrb[14].mxu1 }
 0xcfb   : > { %v6367_v39 = vpop.f32.mrb[15].mxu1 }
 0xcfc PF: > { %s16_s18 = sadd.s32 1, %s7255_s18  }
 0xcfd   : > { %p13_p5 = scmp.ge.s32.totalorder %s16_s18, 4  }
 0xcff   :  { %15 = sbr.rel (!%p13_p5) target bundleno = 1 (0x1), region = 101 }
 0xd06   :  { %6450 = vsyncpa [#allocation7], 1 }
 0xd07   :  { %6452 = vsyncpa [#allocation7 + $0x1], 1 }

</bundles_post_ra>
